<compile_context>
chip_gen: v7x
topology: tpu7x:2x2x1
jax: 0.10.0
libtpu: 0.0.40
codegen_flags: <defaults>
</compile_context>

<pallas_src>
import functools

import jax
import jax.numpy as jnp
from jax import lax
from jax.experimental import pallas as pl
from jax.experimental.pallas import tpu as pltpu

EPS = 1e-5             # PyTorch BatchNorm1d default eps
CHAIN_DEPTH = 3        # each residual group chains three k=3 convs
HALO = CHAIN_DEPTH     # halo rows per side needed by that chain
PAD_ROWS = 8           # halo rows travel in 8-row (sublane-aligned) blocks

# The fused chain loses 1 valid row per conv from each end of the extended window; the
# output is taken from extended rows [PAD_ROWS, PAD_ROWS + TL), so junk in the outer
# (PAD_ROWS - HALO) rows never reaches it ONLY while PAD_ROWS >= HALO == CHAIN_DEPTH.
assert HALO == CHAIN_DEPTH and PAD_ROWS >= HALO


def _round_up(n, m):
    return (n + m - 1) // m * m


def _choose_tiling(L, target):
    """Return (TL, Lp): L-tile (multiple of 16) and padded length (multiple of TL)."""
    L16 = _round_up(L, 16)
    target = max(16, (target // 16) * 16)
    if L16 <= target:
        return L16, L16
    # prefer an exact divisor of L (no L padding at all)
    for t in range(target, 15, -16):
        if L % t == 0:
            return t, L
    # otherwise pick the candidate that minimizes the padded length (ties -> bigger tile)
    best = None
    for t in range(target, 15, -16):
        lp = _round_up(L, t)
        if best is None or lp < best[1] or (lp == best[1] and t > best[0]):
            best = (t, lp)
    return best


def _default_config():
    """Per-generation (tl_target, vmem_limit_bytes) defaults."""
    try:
        dk = jax.devices()[0].device_kind.lower()
    except Exception:
        dk = ""
    if "7" in dk:                                   # v7x: 64 MiB VMEM per TC
        return 512, 48 * 1024 * 1024
    if any(t in dk for t in ("v4", "v5", "v6")):    # 128 MiB VMEM parts
        return 1024, 96 * 1024 * 1024
    return 512, 48 * 1024 * 1024                    # unknown -> conservative


# --------------------------------------------------------------------------
# Row-shift helpers (result[r] = h[r -/+ 1]); wrapped rows never reach the valid
# region of the fused conv chain.  Probe pltpu.roll once so the tap assignment is
# correct regardless of rotate convention; fall back to concat shifts if needed.
# --------------------------------------------------------------------------
def _probe_roll():
    try:
        def k(x_ref, o_ref):
            o_ref[...] = pltpu.roll(x_ref[...], 1, 0)

        x = lax.broadcasted_iota(jnp.float32, (32, 128), 0).astype(jnp.bfloat16)
        out = jax.block_until_ready(
            pl.pallas_call(k, out_shape=jax.ShapeDtypeStruct((32, 128), jnp.bfloat16))(x))
        if bool(out[1, 0] == x[0, 0]):        # numpy/jnp.roll convention
            return (lambda h: pltpu.roll(h, 1, 0),
                    lambda h: pltpu.roll(h, h.shape[0] - 1, 0))
        if bool(out[1, 0] == x[2, 0]):        # opposite rotate convention
            return (lambda h: pltpu.roll(h, h.shape[0] - 1, 0),
                    lambda h: pltpu.roll(h, 1, 0))
        raise ValueError("unexpected pltpu.roll semantics")
    except Exception:
        return (lambda h: jnp.concatenate([h[-1:], h[:-1]], axis=0),
                lambda h: jnp.concatenate([h[1:], h[:1]], axis=0))


_SHIFT_DOWN, _SHIFT_UP = _probe_roll()   # down: result[r]=h[r-1], up: result[r]=h[r+1]


# --------------------------------------------------------------------------
# Fused residual-group kernel:
#   conv_a(k3)+BN+ReLU -> conv_b(k3)+BN+ReLU -> conv_c(k3)+BN
#   + shortcut (1x1 conv + BN, or BN-only) -> ReLU
#   [+ optional tail 1x1 conv + BN + ReLU  (conv10)]
# --------------------------------------------------------------------------
def _make_group_kernel(L_true, TL, has_sc_w, has_tail):
    Lext = TL + 2 * PAD_ROWS

    def conv3_bn(h, w_ref, sb_ref):
        # y[r] = h[r-1] @ w[0] + h[r] @ w[1] + h[r+1] @ w[2]   (f32 accumulate)
        # NOTE: on 256-wide-MXU chips (v6e/v7x) a Cin==128 group could stack the three
        # taps along K (K=3*Cin, single dot); kept as three dots here for portability.
        acc = jnp.dot(h, w_ref[1], preferred_element_type=jnp.float32)
        acc = acc + jnp.dot(_SHIFT_DOWN(h), w_ref[0],
                            preferred_element_type=jnp.float32)
        acc = acc + jnp.dot(_SHIFT_UP(h), w_ref[2],
                            preferred_element_type=jnp.float32)
        sb = sb_ref[...]
        return acc * sb[0:1, :] + sb[1:2, :]

    def kernel(*refs):
        it = iter(refs[:-1])
        x_ref, halo_ref = next(it), next(it)
        wa, sba = next(it), next(it)
        wb, sbb = next(it), next(it)
        wc, sbc = next(it), next(it)
        wsc = next(it) if has_sc_w else None
        sbsc = next(it)
        wt = sbt = None
        if has_tail:
            wt, sbt = next(it), next(it)
        o_ref = refs[-1]

        l = pl.program_id(1)
        x_tile = x_ref[0]                     # (TL, Cin)  bf16
        halo = halo_ref[0]                    # (16, Cin)  bf16
        # Extended window: rows 5..7 = x[l*TL-3 .. -1], rows 8..TL+7 = the tile,
        # rows TL+8..TL+10 = x[(l+1)*TL .. +2]; the remaining pad rows are zero.
        xe = jnp.concatenate([halo[:PAD_ROWS], x_tile, halo[PAD_ROWS:]], axis=0)

        # Global row index of every extended row.  Rows outside [0, L_true) — sequence
        # boundaries and the L-padding appended by the wrapper — must behave exactly like
        # Conv1d zero padding, so mask both the input and the intermediates.
        g = l * TL + lax.broadcasted_iota(jnp.int32, (Lext, 1), 0) - PAD_ROWS
        in_range = jnp.logical_and(g >= 0, g < L_true)
        xe = jnp.where(in_range, xe, 0).astype(jnp.bfloat16)

        h = conv3_bn(xe, wa, sba)                                   # valid ext rows [6, TL+10)
        h = jnp.where(in_range, jnp.maximum(h, 0.0), 0.0).astype(jnp.bfloat16)
        h = conv3_bn(h, wb, sbb)                                    # valid ext rows [7, TL+9)
        h = jnp.where(in_range, jnp.maximum(h, 0.0), 0.0).astype(jnp.bfloat16)
        main = conv3_bn(h, wc, sbc)[PAD_ROWS:PAD_ROWS + TL, :]      # valid ext rows [8, TL+8)

        if has_sc_w:                          # 1x1 conv + folded BN shortcut
            sc = jnp.dot(x_tile, wsc[0], preferred_element_type=jnp.float32)
            ssb = sbsc[...]
            sc = sc * ssb[0:1, :] + ssb[1:2, :]
        else:                                 # BN-only shortcut (bn_shortcut3)
            ssb = sbsc[...]
            sc = x_tile.astype(jnp.float32) * ssb[0:1, :] + ssb[1:2, :]

        out = jnp.maximum(main + sc, 0.0)

        if has_tail:                          # fused conv10 (1x1) + bn10 + ReLU
            tsb = sbt[...]
            t = jnp.dot(out.astype(jnp.bfloat16), wt[0],
                        preferred_element_type=jnp.float32)
            out = jnp.maximum(t * tsb[0:1, :] + tsb[1:2, :], 0.0)

        o_ref[0] = out.astype(o_ref.dtype)

    return kernel


def _build_halo(x, tl):
    """Per-tile halo side array (B, NL*16, C) built from cheap slices (no pad / gather):
    8-row left block (5 zero rows + the 3 rows preceding the tile) then an 8-row right
    block (3 rows following the tile + 5 zero rows).  Zeros appear automatically at the
    sequence boundaries."""
    B, L, C = x.shape
    nl = L // tl
    xr = x.reshape(B, nl, tl, C)
    zl = jnp.zeros((B, 1, HALO, C), x.dtype)
    lo = jnp.concatenate([zl, xr[:, :-1, tl - HALO:, :]], axis=1)   # (B, nl, 3, C)
    hi = jnp.concatenate([xr[:, 1:, :HALO, :], zl], axis=1)         # (B, nl, 3, C)
    zp = jnp.zeros((B, nl, PAD_ROWS - HALO, C), x.dtype)
    halo = jnp.concatenate([zp, lo, hi, zp], axis=2)                # (B, nl, 16, C)
    return halo.reshape(B, nl * 2 * PAD_ROWS, C)


def _fused_group(x, convs, shortcut, tail, tl, L_true, vmem_limit_bytes):
    """One fused residual group.

    x        : (B, Lp, Cin_p) bf16, channel-padded, Lp % tl == 0.
    convs    : [(w, sb)] * 3 with w (3, Cin_p, Cout_p) bf16, sb (2, Cout_p) f32.
    shortcut : (w_or_None, sb) -- 1x1 conv + BN, or BN-only when w is None.
    tail     : optional (w, sb) for the fused 1x1 conv10 + bn10 + ReLU.
    """
    B, Lp, cin = x.shape
    nl = Lp // tl
    halo = _build_halo(x, tl)

    args = [x, halo]
    in_specs = [
        pl.BlockSpec((1, tl, cin), lambda b, l: (b, l, 0)),
        pl.BlockSpec((1, 2 * PAD_ROWS, cin), lambda b, l: (b, l, 0)),
    ]
    # NOTE: weight / scale-bias blocks have constant index maps; on v7x with very large
    # channel counts, pipeline_mode=pl.Buffered(1) here would halve their VMEM footprint.
    for w, sb in convs:
        args += [w, sb]
        in_specs += [pl.BlockSpec(w.shape, lambda b, l: (0, 0, 0)),
                     pl.BlockSpec(sb.shape, lambda b, l: (0, 0))]
    has_sc_w = shortcut[0] is not None
    if has_sc_w:
        args.append(shortcut[0])
        in_specs.append(pl.BlockSpec(shortcut[0].shape, lambda b, l: (0, 0, 0)))
    args.append(shortcut[1])
    in_specs.append(pl.BlockSpec(shortcut[1].shape, lambda b, l: (0, 0)))
    has_tail = tail is not None
    if has_tail:
        args += [tail[0], tail[1]]
        in_specs += [pl.BlockSpec(tail[0].shape, lambda b, l: (0, 0, 0)),
                     pl.BlockSpec(tail[1].shape, lambda b, l: (0, 0))]

    cout = tail[0].shape[-1] if has_tail else convs[-1][0].shape[-1]

    flops = 0
    for w, _ in convs:
        flops += 2 * B * (Lp + 2 * PAD_ROWS * nl) * w.shape[0] * w.shape[1] * w.shape[2]
    if has_sc_w:
        flops += 2 * B * Lp * shortcut[0].shape[1] * shortcut[0].shape[2]
    if has_tail:
        flops += 2 * B * Lp * tail[0].shape[1] * tail[0].shape[2]
    bytes_accessed = sum(int(a.size) * a.dtype.itemsize for a in args)
    bytes_accessed += B * Lp * cout * 2

    return pl.pallas_call(
        _make_group_kernel(L_true, tl, has_sc_w, has_tail),
        out_shape=jax.ShapeDtypeStruct((B, Lp, cout), jnp.bfloat16),
        grid_spec=pltpu.PrefetchScalarGridSpec(
            num_scalar_prefetch=0,
            grid=(B, nl),
            in_specs=in_specs,
            out_specs=pl.BlockSpec((1, tl, cout), lambda b, l: (b, l, 0)),
        ),
        compiler_params=pltpu.CompilerParams(
            dimension_semantics=("parallel", "parallel"),
            vmem_limit_bytes=int(vmem_limit_bytes),
        ),
        cost_estimate=pl.CostEstimate(flops=int(flops), transcendentals=0,
                                      bytes_accessed=int(bytes_accessed)),
    )(*args)


# --------------------------------------------------------------------------
# One-time parameter preparation (hoisted out of the forward): fold BN into f32
# scale/bias, transpose weights to (K, Cin, Cout), zero-pad channels to multiples
# of 128, cast weights to bf16.
# --------------------------------------------------------------------------
def _fold_bn(conv_b, gamma, beta, mean, var):
    scale = gamma / jnp.sqrt(var + EPS)
    bias = beta - mean * scale + conv_b * scale
    return scale, bias


def _prep_conv(p, cin_p, cout_p):
    w = jnp.transpose(p["w"], (2, 1, 0))                     # (K, Cin, Cout)
    _, cin, cout = w.shape
    w = jnp.pad(w, ((0, 0), (0, cin_p - cin), (0, cout_p - cout))).astype(jnp.bfloat16)
    scale, bias = _fold_bn(p["b"], p["gamma"], p["beta"], p["mean"], p["var"])
    sb = jnp.pad(jnp.stack([scale, bias]).astype(jnp.float32),
                 ((0, 0), (0, cout_p - cout)))
    return w, sb


def _prep_bn(p, cout_p):
    scale, bias = _fold_bn(0.0, p["gamma"], p["beta"], p["mean"], p["var"])
    sb = jnp.stack([scale, bias]).astype(jnp.float32)
    return jnp.pad(sb, ((0, 0), (0, cout_p - sb.shape[1])))


def prepare_params(P, F):
    """Run once; returns the device-ready parameter pytree for convblock_pallas."""
    fp = _round_up(F, 128)
    f2p = _round_up(2 * F, 128)
    # NOTE: if the real model's F is far below 128 the channel zero-padding wastes most
    # MXU lanes; that needs a layout change (tap stacking / packing seq into lanes).
    return {
        "g1_convs": [_prep_conv(P["conv1"], fp, fp),
                     _prep_conv(P["conv2"], fp, fp),
                     _prep_conv(P["conv3"], fp, fp)],
        "g1_short": _prep_conv(P["shortcut1"], fp, fp),
        "g2_convs": [_prep_conv(P["conv4"], fp, f2p),
                     _prep_conv(P["conv5"], f2p, f2p),
                     _prep_conv(P["conv6"], f2p, f2p)],
        "g2_short": _prep_conv(P["shortcut2"], fp, f2p),
        "g3_convs": [_prep_conv(P["conv7"], f2p, f2p),
                     _prep_conv(P["conv8"], f2p, f2p),
                     _prep_conv(P["conv9"], f2p, f2p)],
        # self.shortcut3 conv exists in __init__ but forward() only applies bn_shortcut3.
        "g3_short_sb": _prep_bn(P["bn_shortcut3"], f2p),
        "g3_tail": _prep_conv(P["conv10"], f2p, fp),
    }


# --------------------------------------------------------------------------
# ConvBlock forward (channels-last, no permutes): 3 fused Pallas calls
# --------------------------------------------------------------------------
@functools.partial(jax.jit, static_argnames=("tl_target", "vmem_limit_bytes"))
def _convblock_impl(x, prep, tl_target, vmem_limit_bytes):
    B, L, F = x.shape
    fp = _round_up(F, 128)
    tl, Lp = _choose_tiling(L, tl_target)

    # single pad pass: channels -> fp, sequence -> multiple of the tile
    xb = jnp.pad(x, ((0, 0), (0, Lp - L), (0, fp - F))).astype(jnp.bfloat16)

    # group 1: conv1 -> conv2 -> conv3, shortcut1 (1x1) -> ReLU
    ob1 = _fused_group(xb, prep["g1_convs"], prep["g1_short"], None,
                       tl, L, vmem_limit_bytes)
    # group 2: conv4 -> conv5 -> conv6, shortcut2 (1x1) -> ReLU
    ob2 = _fused_group(ob1, prep["g2_convs"], prep["g2_short"], None,
                       tl, L, vmem_limit_bytes)
    # group 3: conv7 -> conv8 -> conv9, BN-only shortcut -> ReLU, + conv10/bn10/ReLU tail
    ob4 = _fused_group(ob2, prep["g3_convs"], (None, prep["g3_short_sb"]),
                       prep["g3_tail"], tl, L, vmem_limit_bytes)

    return ob4[:, :L, :F].astype(jnp.float32)


def convblock_pallas(x, prep, tl_target=None, vmem_limit_bytes=None):
    d_tl, d_vm = _default_config()
    if tl_target is None:
        tl_target = d_tl
    if vmem_limit_bytes is None:
        vmem_limit_bytes = d_vm
    return _convblock_impl(x, prep, tl_target=tl_target,
                           vmem_limit_bytes=vmem_limit_bytes)


# --------------------------------------------------------------------------
# Deterministic parameter init (kaiming_normal fan_in/relu conv weights, zero
# conv bias, randomized-but-deterministic BN affine + running stats).
# --------------------------------------------------------------------------
def _init_conv(key, cin, cout, k):
    std = (2.0 / (cin * k)) ** 0.5
    w = jax.random.normal(key, (cout, cin, k), jnp.float32) * std
    b = jnp.zeros((cout,), jnp.float32)
    return w, b


def _init_bn(key, c):
    k1, k2, k3, k4 = jax.random.split(key, 4)
    gamma = 1.0 + 0.1 * jax.random.normal(k1, (c,), jnp.float32)
    beta = 0.1 * jax.random.normal(k2, (c,), jnp.float32)
    mean = 0.1 * jax.random.normal(k3, (c,), jnp.float32)
    var = jax.random.uniform(k4, (c,), jnp.float32, minval=0.5, maxval=1.5)
    return gamma, beta, mean, var


def make_params(key, F):
    keys = iter(jax.random.split(key, 40))
    P = {}

    def conv_layer(name, cin, cout, k):
        w, b = _init_conv(next(keys), cin, cout, k)
        g, be, m, v = _init_bn(next(keys), cout)
        P[name] = dict(w=w, b=b, gamma=g, beta=be, mean=m, var=v)

    conv_layer("conv1", F, F, 3)
    conv_layer("conv2", F, F, 3)
    conv_layer("conv3", F, F, 3)
    conv_layer("shortcut1", F, F, 1)
    conv_layer("conv4", F, 2 * F, 3)
    conv_layer("conv5", 2 * F, 2 * F, 3)
    conv_layer("conv6", 2 * F, 2 * F, 3)
    conv_layer("shortcut2", F, 2 * F, 1)
    conv_layer("conv7", 2 * F, 2 * F, 3)
    conv_layer("conv8", 2 * F, 2 * F, 3)
    conv_layer("conv9", 2 * F, 2 * F, 3)
    # self.shortcut3 is defined but unused by forward(); only bn_shortcut3 is applied.
    g, be, m, v = _init_bn(next(keys), 2 * F)
    P["bn_shortcut3"] = dict(gamma=g, beta=be, mean=m, var=v)
    conv_layer("conv10", 2 * F, F, 1)
    return P


# --------------------------------------------------------------------------
# Pure-JAX f32 reference mirroring the PyTorch NCL graph exactly
# --------------------------------------------------------------------------
def _ref_conv_bn(x_ncl, p, relu=True):
    k = p["w"].shape[-1]
    pad = k // 2
    y = lax.conv_general_dilated(
        x_ncl, p["w"], window_strides=(1,), padding=[(pad, pad)],
        dimension_numbers=("NCH", "OIH", "NCH"))
    y = y + p["b"][None, :, None]
    y = ((y - p["mean"][None, :, None])
         / jnp.sqrt(p["var"][None, :, None] + EPS)
         * p["gamma"][None, :, None] + p["beta"][None, :, None])
    if relu:
        y = jnp.maximum(y, 0.0)
    return y


def convblock_ref(x, P):
    xc = jnp.transpose(x, (0, 2, 1))  # (B, F, L)
    cx = _ref_conv_bn(xc, P["conv1"])
    cy = _ref_conv_bn(cx, P["conv2"])
    cz = _ref_conv_bn(cy, P["conv3"], relu=False)
    sy = _ref_conv_bn(xc, P["shortcut1"], relu=False)
    ob1 = jnp.maximum(cz + sy, 0.0)

    cx = _ref_conv_bn(ob1, P["conv4"])
    cy = _ref_conv_bn(cx, P["conv5"])
    cz = _ref_conv_bn(cy, P["conv6"], relu=False)
    sy = _ref_conv_bn(ob1, P["shortcut2"], relu=False)
    ob2 = jnp.maximum(cz + sy, 0.0)

    cx = _ref_conv_bn(ob2, P["conv7"])
    cy = _ref_conv_bn(cx, P["conv8"])
    cz = _ref_conv_bn(cy, P["conv9"], relu=False)
    p = P["bn_shortcut3"]
    sy = ((ob2 - p["mean"][None, :, None])
          / jnp.sqrt(p["var"][None, :, None] + EPS)
          * p["gamma"][None, :, None] + p["beta"][None, :, None])
    ob3 = jnp.maximum(cz + sy, 0.0)

    ob4 = _ref_conv_bn(ob3, P["conv10"])
    return jnp.transpose(ob4, (0, 2, 1))


if __name__ == "__main__":
    B, L, F = 2, 16, 8
    key = jax.random.PRNGKey(0)
    kx, kx2, kp = jax.random.split(key, 3)
    x = jax.random.normal(kx, (B, L, F), jnp.float32)
    P = make_params(kp, F)
    prep = prepare_params(P, F)          # one-time, outside the jitted forward

    out = jax.block_until_ready(convblock_pallas(x, prep))
    ref = convblock_ref(x, P)
    assert out.shape == (B, L, F), out.shape
    err = float(jnp.max(jnp.abs(out - ref)))
    scale = float(jnp.max(jnp.abs(ref))) + 1e-6
    # bf16 activations/weights over a 12-layer chain -> compare with a relative bound
    assert err / scale < 5e-2, (err, scale)

    # exercise the multi-tile + ragged-L path (interior halos, boundary masking and the
    # L-padding of the final partial tile): L=40 with 16-row tiles -> grid (B, 3)
    x2 = jax.random.normal(kx2, (B, 40, F), jnp.float32)
    out2 = jax.block_until_ready(convblock_pallas(x2, prep, tl_target=16))
    ref2 = convblock_ref(x2, P)
    err2 = float(jnp.max(jnp.abs(out2 - ref2)))
    scale2 = float(jnp.max(jnp.abs(ref2))) + 1e-6
    assert err2 / scale2 < 5e-2, (err2, scale2)

    print("KERNEL_OK")
</pallas_src>

<mosaic_0001>
module attributes {stable_mosaic.version = 11 : i64} {
  func.func @k(%arg0: memref<32x128xbf16, #tpu.memory_space<vmem>>, %arg1: memref<32x128xbf16, #tpu.memory_space<vmem>>) attributes {dimension_semantics = [], scalar_prefetch = 0 : i64, scratch_operands = 0 : i64, tpu.core_type = #tpu.core_type<tc>} {
    %c0 = arith.constant 0 : index
    %c0_0 = arith.constant 0 : index
    %0 = vector.load %arg0[%c0, %c0_0] : memref<32x128xbf16, #tpu.memory_space<vmem>>, vector<32x128xbf16>
    %c1_i32 = arith.constant 1 : i32
    %1 = tpu.dynamic_rotate %0 by %c1_i32 dim 0 : vector<32x128xbf16>, i32 -> vector<32x128xbf16>
    %c0_1 = arith.constant 0 : index
    %c0_2 = arith.constant 0 : index
    %2 = vector.load %arg1[%c0_1, %c0_2] : memref<32x128xbf16, #tpu.memory_space<vmem>>, vector<32x128xbf16>
    tpu.vector_store %arg1[%c0_1, %c0_2], %1 {strides = array<i32>} : memref<32x128xbf16, #tpu.memory_space<vmem>>, vector<32x128xbf16>,
    return
  }
}

module attributes {stable_mosaic.version = 11 : i64} {
  func.func @kernel(%arg0: i32, %arg1: i32, %arg2: memref<1x16x128xbf16, #tpu.memory_space<vmem>>, %arg3: memref<1x16x128xbf16, #tpu.memory_space<vmem>>, %arg4: memref<3x128x128xbf16, #tpu.memory_space<vmem>>, %arg5: memref<2x128xf32, #tpu.memory_space<vmem>>, %arg6: memref<3x128x128xbf16, #tpu.memory_space<vmem>>, %arg7: memref<2x128xf32, #tpu.memory_space<vmem>>, %arg8: memref<3x128x128xbf16, #tpu.memory_space<vmem>>, %arg9: memref<2x128xf32, #tpu.memory_space<vmem>>, %arg10: memref<2x128xf32, #tpu.memory_space<vmem>>, %arg11: memref<1x128x128xbf16, #tpu.memory_space<vmem>>, %arg12: memref<2x128xf32, #tpu.memory_space<vmem>>, %arg13: memref<1x16x128xbf16, #tpu.memory_space<vmem>>) attributes {dimension_semantics = [#tpu.dimension_semantics<parallel>, #tpu.dimension_semantics<parallel>], iteration_bounds = array<i64: 2, 1>, scalar_prefetch = 0 : i64, scratch_operands = 0 : i64, tpu.core_type = #tpu.core_type<tc>, window_params = [{transform_indices = @transform_0, window_bounds = array<i64: 1, 16, 128>}, {transform_indices = @transform_1, window_bounds = array<i64: 1, 16, 128>}, {pipeline_mode = #tpu.pipeline_mode<synchronous>, transform_indices = @transform_2, window_bounds = array<i64: 3, 128, 128>}, {pipeline_mode = #tpu.pipeline_mode<synchronous>, transform_indices = @transform_3, window_bounds = array<i64: 2, 128>}, {pipeline_mode = #tpu.pipeline_mode<synchronous>, transform_indices = @transform_4, window_bounds = array<i64: 3, 128, 128>}, {pipeline_mode = #tpu.pipeline_mode<synchronous>, transform_indices = @transform_5, window_bounds = array<i64: 2, 128>}, {pipeline_mode = #tpu.pipeline_mode<synchronous>, transform_indices = @transform_6, window_bounds = array<i64: 3, 128, 128>}, {pipeline_mode = #tpu.pipeline_mode<synchronous>, transform_indices = @transform_7, window_bounds = array<i64: 2, 128>}, {pipeline_mode = #tpu.pipeline_mode<synchronous>, transform_indices = @transform_8, window_bounds = array<i64: 2, 128>}, {pipeline_mode = #tpu.pipeline_mode<synchronous>, transform_indices = @transform_9, window_bounds = array<i64: 1, 128, 128>}, {pipeline_mode = #tpu.pipeline_mode<synchronous>, transform_indices = @transform_10, window_bounds = array<i64: 2, 128>}, {transform_indices = @transform_11, window_bounds = array<i64: 1, 16, 128>}]} {
    %c0 = arith.constant 0 : index
    %c0_0 = arith.constant 0 : index
    %c0_1 = arith.constant 0 : index
    %0 = vector.load %arg2[%c0, %c0_0, %c0_1] : memref<1x16x128xbf16, #tpu.memory_space<vmem>>, vector<1x16x128xbf16>
    %1 = vector.shape_cast %0 : vector<1x16x128xbf16> to vector<16x128xbf16>
    %c0_2 = arith.constant 0 : index
    %c0_3 = arith.constant 0 : index
    %c0_4 = arith.constant 0 : index
    %2 = vector.load %arg3[%c0_2, %c0_3, %c0_4] : memref<1x16x128xbf16, #tpu.memory_space<vmem>>, vector<1x16x128xbf16>
    %3 = vector.shape_cast %2 : vector<1x16x128xbf16> to vector<16x128xbf16>
    %4 = vector.extract_strided_slice %3 {offsets = [0, 0], sizes = [8, 128], strides = [1, 1]} : vector<16x128xbf16> to vector<8x128xbf16>
    %5 = vector.extract_strided_slice %3 {offsets = [8, 0], sizes = [8, 128], strides = [1, 1]} : vector<16x128xbf16> to vector<8x128xbf16>
    %6 = tpu.concatenate %4, %1, %5 in 0 : vector<8x128xbf16>, vector<16x128xbf16>, vector<8x128xbf16> -> vector<32x128xbf16>
    %c16_i32 = arith.constant 16 : i32
    %7 = arith.muli %arg1, %c16_i32 : i32
    %8 = tpu.iota {dimensions = array<i32: 0>} : vector<32x1xi32>
    %9 = vector.broadcast %7 : i32 to vector<32x1xi32>
    %10 = arith.addi %9, %8 : vector<32x1xi32>
    %c8_i32 = arith.constant 8 : i32
    %11 = vector.broadcast %c8_i32 : i32 to vector<32x1xi32>
    %12 = arith.subi %10, %11 : vector<32x1xi32>
    %c0_i32 = arith.constant 0 : i32
    %13 = vector.broadcast %c0_i32 : i32 to vector<32x1xi32>
    %14 = arith.cmpi sge, %12, %13 : vector<32x1xi32>
    %c16_i32_5 = arith.constant 16 : i32
    %15 = vector.broadcast %c16_i32_5 : i32 to vector<32x1xi32>
    %16 = arith.cmpi slt, %12, %15 : vector<32x1xi32>
    %17 = arith.andi %14, %16 : vector<32x1xi1>
    %c0_i32_6 = arith.constant 0 : i32
    %18 = arith.sitofp %c0_i32_6 : i32 to bf16
    %19 = vector.shape_cast %17 : vector<32x1xi1> to vector<32x1xi1>
    %20 = vector.broadcast %19 : vector<32x1xi1> to vector<32x128xi1>
    %21 = vector.broadcast %18 : bf16 to vector<32x128xbf16>
    %22 = arith.select %20, %6, %21 : vector<32x128xi1>, vector<32x128xbf16>
    %c1 = arith.constant 1 : index
    %c0_7 = arith.constant 0 : index
    %c0_8 = arith.constant 0 : index
    %23 = vector.load %arg4[%c1, %c0_7, %c0_8] : memref<3x128x128xbf16, #tpu.memory_space<vmem>>, vector<1x128x128xbf16>
    %24 = vector.shape_cast %23 : vector<1x128x128xbf16> to vector<128x128xbf16>
    %cst = arith.constant dense<0.000000e+00> : vector<32x128xf32>
    %25 = tpu.matmul %22, %24, %cst {dimension_numbers = #tpu.dot_dimension_numbers<[1], [0], [0], [1], [0, 0, 1, 1], [], []>} : vector<32x128xbf16>, vector<128x128xbf16>, vector<32x128xf32> -> vector<32x128xf32>
    %26 = vector.extract_strided_slice %22 {offsets = [31, 0], sizes = [1, 128], strides = [1, 1]} : vector<32x128xbf16> to vector<1x128xbf16>
    %27 = vector.extract_strided_slice %22 {offsets = [0, 0], sizes = [31, 128], strides = [1, 1]} : vector<32x128xbf16> to vector<31x128xbf16>
    %28 = tpu.concatenate %26, %27 in 0 : vector<1x128xbf16>, vector<31x128xbf16> -> vector<32x128xbf16>
    %c0_9 = arith.constant 0 : index
    %c0_10 = arith.constant 0 : index
    %c0_11 = arith.constant 0 : index
    %29 = vector.load %arg4[%c0_9, %c0_10, %c0_11] : memref<3x128x128xbf16, #tpu.memory_space<vmem>>, vector<1x128x128xbf16>
    %30 = vector.shape_cast %29 : vector<1x128x128xbf16> to vector<128x128xbf16>
    %cst_12 = arith.constant dense<0.000000e+00> : vector<32x128xf32>
    %31 = tpu.matmul %28, %30, %cst_12 {dimension_numbers = #tpu.dot_dimension_numbers<[1], [0], [0], [1], [0, 0, 1, 1], [], []>} : vector<32x128xbf16>, vector<128x128xbf16>, vector<32x128xf32> -> vector<32x128xf32>
    %32 = arith.addf %25, %31 : vector<32x128xf32>
    %33 = vector.extract_strided_slice %22 {offsets = [1, 0], sizes = [31, 128], strides = [1, 1]} : vector<32x128xbf16> to vector<31x128xbf16>
    %34 = vector.extract_strided_slice %22 {offsets = [0, 0], sizes = [1, 128], strides = [1, 1]} : vector<32x128xbf16> to vector<1x128xbf16>
    %35 = tpu.concatenate %33, %34 in 0 : vector<31x128xbf16>, vector<1x128xbf16> -> vector<32x128xbf16>
    %c2 = arith.constant 2 : index
    %c0_13 = arith.constant 0 : index
    %c0_14 = arith.constant 0 : index
    %36 = vector.load %arg4[%c2, %c0_13, %c0_14] : memref<3x128x128xbf16, #tpu.memory_space<vmem>>, vector<1x128x128xbf16>
    %37 = vector.shape_cast %36 : vector<1x128x128xbf16> to vector<128x128xbf16>
    %cst_15 = arith.constant dense<0.000000e+00> : vector<32x128xf32>
    %38 = tpu.matmul %35, %37, %cst_15 {dimension_numbers = #tpu.dot_dimension_numbers<[1], [0], [0], [1], [0, 0, 1, 1], [], []>} : vector<32x128xbf16>, vector<128x128xbf16>, vector<32x128xf32> -> vector<32x128xf32>
    %39 = arith.addf %32, %38 : vector<32x128xf32>
    %c0_16 = arith.constant 0 : index
    %c0_17 = arith.constant 0 : index
    %40 = vector.load %arg5[%c0_16, %c0_17] : memref<2x128xf32, #tpu.memory_space<vmem>>, vector<2x128xf32>
    %41 = vector.extract_strided_slice %40 {offsets = [0, 0], sizes = [1, 128], strides = [1, 1]} : vector<2x128xf32> to vector<1x128xf32>
    %42 = vector.broadcast %41 : vector<1x128xf32> to vector<32x128xf32>
    %43 = arith.mulf %39, %42 : vector<32x128xf32>
    %44 = vector.extract_strided_slice %40 {offsets = [1, 0], sizes = [1, 128], strides = [1, 1]} : vector<2x128xf32> to vector<1x128xf32>
    %45 = vector.broadcast %44 : vector<1x128xf32> to vector<32x128xf32>
    %46 = arith.addf %43, %45 : vector<32x128xf32>
    %cst_18 = arith.constant 0.000000e+00 : f32
    %47 = vector.broadcast %cst_18 : f32 to vector<32x128xf32>
    %48 = arith.maximumf %46, %47 : vector<32x128xf32>
    %cst_19 = arith.constant 0.000000e+00 : f32
    %49 = vector.shape_cast %17 : vector<32x1xi1> to vector<32x1xi1>
    %50 = vector.broadcast %49 : vector<32x1xi1> to vector<32x128xi1>
    %51 = vector.broadcast %cst_19 : f32 to vector<32x128xf32>
    %52 = arith.select %50, %48, %51 : vector<32x128xi1>, vector<32x128xf32>
    %53 = arith.truncf %52 : vector<32x128xf32> to vector<32x128xbf16>
    %c1_20 = arith.constant 1 : index
    %c0_21 = arith.constant 0 : index
    %c0_22 = arith.constant 0 : index
    %54 = vector.load %arg6[%c1_20, %c0_21, %c0_22] : memref<3x128x128xbf16, #tpu.memory_space<vmem>>, vector<1x128x128xbf16>
    %55 = vector.shape_cast %54 : vector<1x128x128xbf16> to vector<128x128xbf16>
    %cst_23 = arith.constant dense<0.000000e+00> : vector<32x128xf32>
    %56 = tpu.matmul %53, %55, %cst_23 {dimension_numbers = #tpu.dot_dimension_numbers<[1], [0], [0], [1], [0, 0, 1, 1], [], []>} : vector<32x128xbf16>, vector<128x128xbf16>, vector<32x128xf32> -> vector<32x128xf32>
    %57 = vector.extract_strided_slice %53 {offsets = [31, 0], sizes = [1, 128], strides = [1, 1]} : vector<32x128xbf16> to vector<1x128xbf16>
    %58 = vector.extract_strided_slice %53 {offsets = [0, 0], sizes = [31, 128], strides = [1, 1]} : vector<32x128xbf16> to vector<31x128xbf16>
    %59 = tpu.concatenate %57, %58 in 0 : vector<1x128xbf16>, vector<31x128xbf16> -> vector<32x128xbf16>
    %c0_24 = arith.constant 0 : index
    %c0_25 = arith.constant 0 : index
    %c0_26 = arith.constant 0 : index
    %60 = vector.load %arg6[%c0_24, %c0_25, %c0_26] : memref<3x128x128xbf16, #tpu.memory_space<vmem>>, vector<1x128x128xbf16>
    %61 = vector.shape_cast %60 : vector<1x128x128xbf16> to vector<128x128xbf16>
    %cst_27 = arith.constant dense<0.000000e+00> : vector<32x128xf32>
    %62 = tpu.matmul %59, %61, %cst_27 {dimension_numbers = #tpu.dot_dimension_numbers<[1], [0], [0], [1], [0, 0, 1, 1], [], []>} : vector<32x128xbf16>, vector<128x128xbf16>, vector<32x128xf32> -> vector<32x128xf32>
    %63 = arith.addf %56, %62 : vector<32x128xf32>
    %64 = vector.extract_strided_slice %53 {offsets = [1, 0], sizes = [31, 128], strides = [1, 1]} : vector<32x128xbf16> to vector<31x128xbf16>
    %65 = vector.extract_strided_slice %53 {offsets = [0, 0], sizes = [1, 128], strides = [1, 1]} : vector<32x128xbf16> to vector<1x128xbf16>
    %66 = tpu.concatenate %64, %65 in 0 : vector<31x128xbf16>, vector<1x128xbf16> -> vector<32x128xbf16>
    %c2_28 = arith.constant 2 : index
    %c0_29 = arith.constant 0 : index
    %c0_30 = arith.constant 0 : index
    %67 = vector.load %arg6[%c2_28, %c0_29, %c0_30] : memref<3x128x128xbf16, #tpu.memory_space<vmem>>, vector<1x128x128xbf16>
    %68 = vector.shape_cast %67 : vector<1x128x128xbf16> to vector<128x128xbf16>
    %cst_31 = arith.constant dense<0.000000e+00> : vector<32x128xf32>
    %69 = tpu.matmul %66, %68, %cst_31 {dimension_numbers = #tpu.dot_dimension_numbers<[1], [0], [0], [1], [0, 0, 1, 1], [], []>} : vector<32x128xbf16>, vector<128x128xbf16>, vector<32x128xf32> -> vector<32x128xf32>
    %70 = arith.addf %63, %69 : vector<32x128xf32>
    %c0_32 = arith.constant 0 : index
    %c0_33 = arith.constant 0 : index
    %71 = vector.load %arg7[%c0_32, %c0_33] : memref<2x128xf32, #tpu.memory_space<vmem>>, vector<2x128xf32>
    %72 = vector.extract_strided_slice %71 {offsets = [0, 0], sizes = [1, 128], strides = [1, 1]} : vector<2x128xf32> to vector<1x128xf32>
    %73 = vector.broadcast %72 : vector<1x128xf32> to vector<32x128xf32>
    %74 = arith.mulf %70, %73 : vector<32x128xf32>
    %75 = vector.extract_strided_slice %71 {offsets = [1, 0], sizes = [1, 128], strides = [1, 1]} : vector<2x128xf32> to vector<1x128xf32>
    %76 = vector.broadcast %75 : vector<1x128xf32> to vector<32x128xf32>
    %77 = arith.addf %74, %76 : vector<32x128xf32>
    %cst_34 = arith.constant 0.000000e+00 : f32
    %78 = vector.broadcast %cst_34 : f32 to vector<32x128xf32>
    %79 = arith.maximumf %77, %78 : vector<32x128xf32>
    %cst_35 = arith.constant 0.000000e+00 : f32
    %80 = vector.shape_cast %17 : vector<32x1xi1> to vector<32x1xi1>
    %81 = vector.broadcast %80 : vector<32x1xi1> to vector<32x128xi1>
    %82 = vector.broadcast %cst_35 : f32 to vector<32x128xf32>
    %83 = arith.select %81, %79, %82 : vector<32x128xi1>, vector<32x128xf32>
    %84 = arith.truncf %83 : vector<32x128xf32> to vector<32x128xbf16>
    %c1_36 = arith.constant 1 : index
    %c0_37 = arith.constant 0 : index
    %c0_38 = arith.constant 0 : index
    %85 = vector.load %arg8[%c1_36, %c0_37, %c0_38] : memref<3x128x128xbf16, #tpu.memory_space<vmem>>, vector<1x128x128xbf16>
    %86 = vector.shape_cast %85 : vector<1x128x128xbf16> to vector<128x128xbf16>
    %cst_39 = arith.constant dense<0.000000e+00> : vector<32x128xf32>
    %87 = tpu.matmul %84, %86, %cst_39 {dimension_numbers = #tpu.dot_dimension_numbers<[1], [0], [0], [1], [0, 0, 1, 1], [], []>} : vector<32x128xbf16>, vector<128x128xbf16>, vector<32x128xf32> -> vector<32x128xf32>
    %88 = vector.extract_strided_slice %84 {offsets = [31, 0], sizes = [1, 128], strides = [1, 1]} : vector<32x128xbf16> to vector<1x128xbf16>
    %89 = vector.extract_strided_slice %84 {offsets = [0, 0], sizes = [31, 128], strides = [1, 1]} : vector<32x128xbf16> to vector<31x128xbf16>
    %90 = tpu.concatenate %88, %89 in 0 : vector<1x128xbf16>, vector<31x128xbf16> -> vector<32x128xbf16>
    %c0_40 = arith.constant 0 : index
    %c0_41 = arith.constant 0 : index
    %c0_42 = arith.constant 0 : index
    %91 = vector.load %arg8[%c0_40, %c0_41, %c0_42] : memref<3x128x128xbf16, #tpu.memory_space<vmem>>, vector<1x128x128xbf16>
    %92 = vector.shape_cast %91 : vector<1x128x128xbf16> to vector<128x128xbf16>
    %cst_43 = arith.constant dense<0.000000e+00> : vector<32x128xf32>
    %93 = tpu.matmul %90, %92, %cst_43 {dimension_numbers = #tpu.dot_dimension_numbers<[1], [0], [0], [1], [0, 0, 1, 1], [], []>} : vector<32x128xbf16>, vector<128x128xbf16>, vector<32x128xf32> -> vector<32x128xf32>
    %94 = arith.addf %87, %93 : vector<32x128xf32>
    %95 = vector.extract_strided_slice %84 {offsets = [1, 0], sizes = [31, 128], strides = [1, 1]} : vector<32x128xbf16> to vector<31x128xbf16>
    %96 = vector.extract_strided_slice %84 {offsets = [0, 0], sizes = [1, 128], strides = [1, 1]} : vector<32x128xbf16> to vector<1x128xbf16>
    %97 = tpu.concatenate %95, %96 in 0 : vector<31x128xbf16>, vector<1x128xbf16> -> vector<32x128xbf16>
    %c2_44 = arith.constant 2 : index
    %c0_45 = arith.constant 0 : index
    %c0_46 = arith.constant 0 : index
    %98 = vector.load %arg8[%c2_44, %c0_45, %c0_46] : memref<3x128x128xbf16, #tpu.memory_space<vmem>>, vector<1x128x128xbf16>
    %99 = vector.shape_cast %98 : vector<1x128x128xbf16> to vector<128x128xbf16>
    %cst_47 = arith.constant dense<0.000000e+00> : vector<32x128xf32>
    %100 = tpu.matmul %97, %99, %cst_47 {dimension_numbers = #tpu.dot_dimension_numbers<[1], [0], [0], [1], [0, 0, 1, 1], [], []>} : vector<32x128xbf16>, vector<128x128xbf16>, vector<32x128xf32> -> vector<32x128xf32>
    %101 = arith.addf %94, %100 : vector<32x128xf32>
    %c0_48 = arith.constant 0 : index
    %c0_49 = arith.constant 0 : index
    %102 = vector.load %arg9[%c0_48, %c0_49] : memref<2x128xf32, #tpu.memory_space<vmem>>, vector<2x128xf32>
    %103 = vector.extract_strided_slice %102 {offsets = [0, 0], sizes = [1, 128], strides = [1, 1]} : vector<2x128xf32> to vector<1x128xf32>
    %104 = vector.broadcast %103 : vector<1x128xf32> to vector<32x128xf32>
    %105 = arith.mulf %101, %104 : vector<32x128xf32>
    %106 = vector.extract_strided_slice %102 {offsets = [1, 0], sizes = [1, 128], strides = [1, 1]} : vector<2x128xf32> to vector<1x128xf32>
    %107 = vector.broadcast %106 : vector<1x128xf32> to vector<32x128xf32>
    %108 = arith.addf %105, %107 : vector<32x128xf32>
    %109 = vector.extract_strided_slice %108 {offsets = [8, 0], sizes = [16, 128], strides = [1, 1]} : vector<32x128xf32> to vector<16x128xf32>
    %c0_50 = arith.constant 0 : index
    %c0_51 = arith.constant 0 : index
    %110 = vector.load %arg10[%c0_50, %c0_51] : memref<2x128xf32, #tpu.memory_space<vmem>>, vector<2x128xf32>
    %111 = arith.extf %1 : vector<16x128xbf16> to vector<16x128xf32>
    %112 = vector.extract_strided_slice %110 {offsets = [0, 0], sizes = [1, 128], strides = [1, 1]} : vector<2x128xf32> to vector<1x128xf32>
    %113 = vector.broadcast %112 : vector<1x128xf32> to vector<16x128xf32>
    %114 = arith.mulf %111, %113 : vector<16x128xf32>
    %115 = vector.extract_strided_slice %110 {offsets = [1, 0], sizes = [1, 128], strides = [1, 1]} : vector<2x128xf32> to vector<1x128xf32>
    %116 = vector.broadcast %115 : vector<1x128xf32> to vector<16x128xf32>
    %117 = arith.addf %114, %116 : vector<16x128xf32>
    %118 = arith.addf %109, %117 : vector<16x128xf32>
    %cst_52 = arith.constant 0.000000e+00 : f32
    %119 = vector.broadcast %cst_52 : f32 to vector<16x128xf32>
    %120 = arith.maximumf %118, %119 : vector<16x128xf32>
    %c0_53 = arith.constant 0 : index
    %c0_54 = arith.constant 0 : index
    %121 = vector.load %arg12[%c0_53, %c0_54] : memref<2x128xf32, #tpu.memory_space<vmem>>, vector<2x128xf32>
    %122 = arith.truncf %120 : vector<16x128xf32> to vector<16x128xbf16>
    %c0_55 = arith.constant 0 : index
    %c0_56 = arith.constant 0 : index
    %c0_57 = arith.constant 0 : index
    %123 = vector.load %arg11[%c0_55, %c0_56, %c0_57] : memref<1x128x128xbf16, #tpu.memory_space<vmem>>, vector<1x128x128xbf16>
    %124 = vector.shape_cast %123 : vector<1x128x128xbf16> to vector<128x128xbf16>
    %cst_58 = arith.constant dense<0.000000e+00> : vector<16x128xf32>
    %125 = tpu.matmul %122, %124, %cst_58 {dimension_numbers = #tpu.dot_dimension_numbers<[1], [0], [0], [1], [0, 0, 1, 1], [], []>} : vector<16x128xbf16>, vector<128x128xbf16>, vector<16x128xf32> -> vector<16x128xf32>
    %126 = vector.extract_strided_slice %121 {offsets = [0, 0], sizes = [1, 128], strides = [1, 1]} : vector<2x128xf32> to vector<1x128xf32>
    %127 = vector.broadcast %126 : vector<1x128xf32> to vector<16x128xf32>
    %128 = arith.mulf %125, %127 : vector<16x128xf32>
    %129 = vector.extract_strided_slice %121 {offsets = [1, 0], sizes = [1, 128], strides = [1, 1]} : vector<2x128xf32> to vector<1x128xf32>
    %130 = vector.broadcast %129 : vector<1x128xf32> to vector<16x128xf32>
    %131 = arith.addf %128, %130 : vector<16x128xf32>
    %cst_59 = arith.constant 0.000000e+00 : f32
    %132 = vector.broadcast %cst_59 : f32 to vector<16x128xf32>
    %133 = arith.maximumf %131, %132 : vector<16x128xf32>
    %134 = arith.truncf %133 : vector<16x128xf32> to vector<16x128xbf16>
    %c0_60 = arith.constant 0 : index
    %c0_61 = arith.constant 0 : index
    %c0_62 = arith.constant 0 : index
    %135 = vector.load %arg13[%c0_60, %c0_61, %c0_62] : memref<1x16x128xbf16, #tpu.memory_space<vmem>>, vector<1x16x128xbf16>
    %136 = vector.shape_cast %135 : vector<1x16x128xbf16> to vector<16x128xbf16>
    %137 = vector.shape_cast %134 : vector<16x128xbf16> to vector<1x16x128xbf16>
    tpu.vector_store %arg13[%c0_60, %c0_61, %c0_62], %137 {strides = array<i32>} : memref<1x16x128xbf16, #tpu.memory_space<vmem>>, vector<1x16x128xbf16>,
    return
  }
  func.func @transform_0(%arg0: i32, %arg1: i32) -> (i32, i32, i32) {
    %c0_i32 = arith.constant 0 : i32
    %c0_i32_0 = arith.constant 0 : i32
    return %arg0, %arg1, %c0_i32 : i32, i32, i32
  }
  func.func @transform_1(%arg0: i32, %arg1: i32) -> (i32, i32, i32) {
    %c0_i32 = arith.constant 0 : i32
    %c0_i32_0 = arith.constant 0 : i32
    return %arg0, %arg1, %c0_i32 : i32, i32, i32
  }
  func.func @transform_2(%arg0: i32, %arg1: i32) -> (i32, i32, i32) {
    %c0_i32 = arith.constant 0 : i32
    %c0_i32_0 = arith.constant 0 : i32
    %c0_i32_1 = arith.constant 0 : i32
    %c0_i32_2 = arith.constant 0 : i32
    return %c0_i32, %c0_i32_0, %c0_i32_1 : i32, i32, i32
  }
  func.func @transform_3(%arg0: i32, %arg1: i32) -> (i32, i32) {
    %c0_i32 = arith.constant 0 : i32
    %c0_i32_0 = arith.constant 0 : i32
    %c0_i32_1 = arith.constant 0 : i32
    return %c0_i32, %c0_i32_0 : i32, i32
  }
  func.func @transform_4(%arg0: i32, %arg1: i32) -> (i32, i32, i32) {
    %c0_i32 = arith.constant 0 : i32
    %c0_i32_0 = arith.constant 0 : i32
    %c0_i32_1 = arith.constant 0 : i32
    %c0_i32_2 = arith.constant 0 : i32
    return %c0_i32, %c0_i32_0, %c0_i32_1 : i32, i32, i32
  }
  func.func @transform_5(%arg0: i32, %arg1: i32) -> (i32, i32) {
    %c0_i32 = arith.constant 0 : i32
    %c0_i32_0 = arith.constant 0 : i32
    %c0_i32_1 = arith.constant 0 : i32
    return %c0_i32, %c0_i32_0 : i32, i32
  }
  func.func @transform_6(%arg0: i32, %arg1: i32) -> (i32, i32, i32) {
    %c0_i32 = arith.constant 0 : i32
    %c0_i32_0 = arith.constant 0 : i32
    %c0_i32_1 = arith.constant 0 : i32
    %c0_i32_2 = arith.constant 0 : i32
    return %c0_i32, %c0_i32_0, %c0_i32_1 : i32, i32, i32
  }
  func.func @transform_7(%arg0: i32, %arg1: i32) -> (i32, i32) {
    %c0_i32 = arith.constant 0 : i32
    %c0_i32_0 = arith.constant 0 : i32
    %c0_i32_1 = arith.constant 0 : i32
    return %c0_i32, %c0_i32_0 : i32, i32
  }
  func.func @transform_8(%arg0: i32, %arg1: i32) -> (i32, i32) {
    %c0_i32 = arith.constant 0 : i32
    %c0_i32_0 = arith.constant 0 : i32
    %c0_i32_1 = arith.constant 0 : i32
    return %c0_i32, %c0_i32_0 : i32, i32
  }
  func.func @transform_9(%arg0: i32, %arg1: i32) -> (i32, i32, i32) {
    %c0_i32 = arith.constant 0 : i32
    %c0_i32_0 = arith.constant 0 : i32
    %c0_i32_1 = arith.constant 0 : i32
    %c0_i32_2 = arith.constant 0 : i32
    return %c0_i32, %c0_i32_0, %c0_i32_1 : i32, i32, i32
  }
  func.func @transform_10(%arg0: i32, %arg1: i32) -> (i32, i32) {
    %c0_i32 = arith.constant 0 : i32
    %c0_i32_0 = arith.constant 0 : i32
    %c0_i32_1 = arith.constant 0 : i32
    return %c0_i32, %c0_i32_0 : i32, i32
  }
  func.func @transform_11(%arg0: i32, %arg1: i32) -> (i32, i32, i32) {
    %c0_i32 = arith.constant 0 : i32
    %c0_i32_0 = arith.constant 0 : i32
    return %arg0, %arg1, %c0_i32 : i32, i32, i32
  }
}

module attributes {stable_mosaic.version = 11 : i64} {
  func.func @kernel(%arg0: i32, %arg1: i32, %arg2: memref<1x16x128xbf16, #tpu.memory_space<vmem>>, %arg3: memref<1x16x128xbf16, #tpu.memory_space<vmem>>, %arg4: memref<3x128x128xbf16, #tpu.memory_space<vmem>>, %arg5: memref<2x128xf32, #tpu.memory_space<vmem>>, %arg6: memref<3x128x128xbf16, #tpu.memory_space<vmem>>, %arg7: memref<2x128xf32, #tpu.memory_space<vmem>>, %arg8: memref<3x128x128xbf16, #tpu.memory_space<vmem>>, %arg9: memref<2x128xf32, #tpu.memory_space<vmem>>, %arg10: memref<1x128x128xbf16, #tpu.memory_space<vmem>>, %arg11: memref<2x128xf32, #tpu.memory_space<vmem>>, %arg12: memref<1x16x128xbf16, #tpu.memory_space<vmem>>) attributes {dimension_semantics = [#tpu.dimension_semantics<parallel>, #tpu.dimension_semantics<parallel>], iteration_bounds = array<i64: 2, 1>, scalar_prefetch = 0 : i64, scratch_operands = 0 : i64, tpu.core_type = #tpu.core_type<tc>, window_params = [{transform_indices = @transform_0, window_bounds = array<i64: 1, 16, 128>}, {transform_indices = @transform_1, window_bounds = array<i64: 1, 16, 128>}, {pipeline_mode = #tpu.pipeline_mode<synchronous>, transform_indices = @transform_2, window_bounds = array<i64: 3, 128, 128>}, {pipeline_mode = #tpu.pipeline_mode<synchronous>, transform_indices = @transform_3, window_bounds = array<i64: 2, 128>}, {pipeline_mode = #tpu.pipeline_mode<synchronous>, transform_indices = @transform_4, window_bounds = array<i64: 3, 128, 128>}, {pipeline_mode = #tpu.pipeline_mode<synchronous>, transform_indices = @transform_5, window_bounds = array<i64: 2, 128>}, {pipeline_mode = #tpu.pipeline_mode<synchronous>, transform_indices = @transform_6, window_bounds = array<i64: 3, 128, 128>}, {pipeline_mode = #tpu.pipeline_mode<synchronous>, transform_indices = @transform_7, window_bounds = array<i64: 2, 128>}, {pipeline_mode = #tpu.pipeline_mode<synchronous>, transform_indices = @transform_8, window_bounds = array<i64: 1, 128, 128>}, {pipeline_mode = #tpu.pipeline_mode<synchronous>, transform_indices = @transform_9, window_bounds = array<i64: 2, 128>}, {transform_indices = @transform_10, window_bounds = array<i64: 1, 16, 128>}]} {
    %c0 = arith.constant 0 : index
    %c0_0 = arith.constant 0 : index
    %c0_1 = arith.constant 0 : index
    %0 = vector.load %arg2[%c0, %c0_0, %c0_1] : memref<1x16x128xbf16, #tpu.memory_space<vmem>>, vector<1x16x128xbf16>
    %1 = vector.shape_cast %0 : vector<1x16x128xbf16> to vector<16x128xbf16>
    %c0_2 = arith.constant 0 : index
    %c0_3 = arith.constant 0 : index
    %c0_4 = arith.constant 0 : index
    %2 = vector.load %arg3[%c0_2, %c0_3, %c0_4] : memref<1x16x128xbf16, #tpu.memory_space<vmem>>, vector<1x16x128xbf16>
    %3 = vector.shape_cast %2 : vector<1x16x128xbf16> to vector<16x128xbf16>
    %4 = vector.extract_strided_slice %3 {offsets = [0, 0], sizes = [8, 128], strides = [1, 1]} : vector<16x128xbf16> to vector<8x128xbf16>
    %5 = vector.extract_strided_slice %3 {offsets = [8, 0], sizes = [8, 128], strides = [1, 1]} : vector<16x128xbf16> to vector<8x128xbf16>
    %6 = tpu.concatenate %4, %1, %5 in 0 : vector<8x128xbf16>, vector<16x128xbf16>, vector<8x128xbf16> -> vector<32x128xbf16>
    %c16_i32 = arith.constant 16 : i32
    %7 = arith.muli %arg1, %c16_i32 : i32
    %8 = tpu.iota {dimensions = array<i32: 0>} : vector<32x1xi32>
    %9 = vector.broadcast %7 : i32 to vector<32x1xi32>
    %10 = arith.addi %9, %8 : vector<32x1xi32>
    %c8_i32 = arith.constant 8 : i32
    %11 = vector.broadcast %c8_i32 : i32 to vector<32x1xi32>
    %12 = arith.subi %10, %11 : vector<32x1xi32>
    %c0_i32 = arith.constant 0 : i32
    %13 = vector.broadcast %c0_i32 : i32 to vector<32x1xi32>
    %14 = arith.cmpi sge, %12, %13 : vector<32x1xi32>
    %c16_i32_5 = arith.constant 16 : i32
    %15 = vector.broadcast %c16_i32_5 : i32 to vector<32x1xi32>
    %16 = arith.cmpi slt, %12, %15 : vector<32x1xi32>
    %17 = arith.andi %14, %16 : vector<32x1xi1>
    %c0_i32_6 = arith.constant 0 : i32
    %18 = arith.sitofp %c0_i32_6 : i32 to bf16
    %19 = vector.shape_cast %17 : vector<32x1xi1> to vector<32x1xi1>
    %20 = vector.broadcast %19 : vector<32x1xi1> to vector<32x128xi1>
    %21 = vector.broadcast %18 : bf16 to vector<32x128xbf16>
    %22 = arith.select %20, %6, %21 : vector<32x128xi1>, vector<32x128xbf16>
    %c1 = arith.constant 1 : index
    %c0_7 = arith.constant 0 : index
    %c0_8 = arith.constant 0 : index
    %23 = vector.load %arg4[%c1, %c0_7, %c0_8] : memref<3x128x128xbf16, #tpu.memory_space<vmem>>, vector<1x128x128xbf16>
    %24 = vector.shape_cast %23 : vector<1x128x128xbf16> to vector<128x128xbf16>
    %cst = arith.constant dense<0.000000e+00> : vector<32x128xf32>
    %25 = tpu.matmul %22, %24, %cst {dimension_numbers = #tpu.dot_dimension_numbers<[1], [0], [0], [1], [0, 0, 1, 1], [], []>} : vector<32x128xbf16>, vector<128x128xbf16>, vector<32x128xf32> -> vector<32x128xf32>
    %26 = vector.extract_strided_slice %22 {offsets = [31, 0], sizes = [1, 128], strides = [1, 1]} : vector<32x128xbf16> to vector<1x128xbf16>
    %27 = vector.extract_strided_slice %22 {offsets = [0, 0], sizes = [31, 128], strides = [1, 1]} : vector<32x128xbf16> to vector<31x128xbf16>
    %28 = tpu.concatenate %26, %27 in 0 : vector<1x128xbf16>, vector<31x128xbf16> -> vector<32x128xbf16>
    %c0_9 = arith.constant 0 : index
    %c0_10 = arith.constant 0 : index
    %c0_11 = arith.constant 0 : index
    %29 = vector.load %arg4[%c0_9, %c0_10, %c0_11] : memref<3x128x128xbf16, #tpu.memory_space<vmem>>, vector<1x128x128xbf16>
    %30 = vector.shape_cast %29 : vector<1x128x128xbf16> to vector<128x128xbf16>
    %cst_12 = arith.constant dense<0.000000e+00> : vector<32x128xf32>
    %31 = tpu.matmul %28, %30, %cst_12 {dimension_numbers = #tpu.dot_dimension_numbers<[1], [0], [0], [1], [0, 0, 1, 1], [], []>} : vector<32x128xbf16>, vector<128x128xbf16>, vector<32x128xf32> -> vector<32x128xf32>
    %32 = arith.addf %25, %31 : vector<32x128xf32>
    %33 = vector.extract_strided_slice %22 {offsets = [1, 0], sizes = [31, 128], strides = [1, 1]} : vector<32x128xbf16> to vector<31x128xbf16>
    %34 = vector.extract_strided_slice %22 {offsets = [0, 0], sizes = [1, 128], strides = [1, 1]} : vector<32x128xbf16> to vector<1x128xbf16>
    %35 = tpu.concatenate %33, %34 in 0 : vector<31x128xbf16>, vector<1x128xbf16> -> vector<32x128xbf16>
    %c2 = arith.constant 2 : index
    %c0_13 = arith.constant 0 : index
    %c0_14 = arith.constant 0 : index
    %36 = vector.load %arg4[%c2, %c0_13, %c0_14] : memref<3x128x128xbf16, #tpu.memory_space<vmem>>, vector<1x128x128xbf16>
    %37 = vector.shape_cast %36 : vector<1x128x128xbf16> to vector<128x128xbf16>
    %cst_15 = arith.constant dense<0.000000e+00> : vector<32x128xf32>
    %38 = tpu.matmul %35, %37, %cst_15 {dimension_numbers = #tpu.dot_dimension_numbers<[1], [0], [0], [1], [0, 0, 1, 1], [], []>} : vector<32x128xbf16>, vector<128x128xbf16>, vector<32x128xf32> -> vector<32x128xf32>
    %39 = arith.addf %32, %38 : vector<32x128xf32>
    %c0_16 = arith.constant 0 : index
    %c0_17 = arith.constant 0 : index
    %40 = vector.load %arg5[%c0_16, %c0_17] : memref<2x128xf32, #tpu.memory_space<vmem>>, vector<2x128xf32>
    %41 = vector.extract_strided_slice %40 {offsets = [0, 0], sizes = [1, 128], strides = [1, 1]} : vector<2x128xf32> to vector<1x128xf32>
    %42 = vector.broadcast %41 : vector<1x128xf32> to vector<32x128xf32>
    %43 = arith.mulf %39, %42 : vector<32x128xf32>
    %44 = vector.extract_strided_slice %40 {offsets = [1, 0], sizes = [1, 128], strides = [1, 1]} : vector<2x128xf32> to vector<1x128xf32>
    %45 = vector.broadcast %44 : vector<1x128xf32> to vector<32x128xf32>
    %46 = arith.addf %43, %45 : vector<32x128xf32>
    %cst_18 = arith.constant 0.000000e+00 : f32
    %47 = vector.broadcast %cst_18 : f32 to vector<32x128xf32>
    %48 = arith.maximumf %46, %47 : vector<32x128xf32>
    %cst_19 = arith.constant 0.000000e+00 : f32
    %49 = vector.shape_cast %17 : vector<32x1xi1> to vector<32x1xi1>
    %50 = vector.broadcast %49 : vector<32x1xi1> to vector<32x128xi1>
    %51 = vector.broadcast %cst_19 : f32 to vector<32x128xf32>
    %52 = arith.select %50, %48, %51 : vector<32x128xi1>, vector<32x128xf32>
    %53 = arith.truncf %52 : vector<32x128xf32> to vector<32x128xbf16>
    %c1_20 = arith.constant 1 : index
    %c0_21 = arith.constant 0 : index
    %c0_22 = arith.constant 0 : index
    %54 = vector.load %arg6[%c1_20, %c0_21, %c0_22] : memref<3x128x128xbf16, #tpu.memory_space<vmem>>, vector<1x128x128xbf16>
    %55 = vector.shape_cast %54 : vector<1x128x128xbf16> to vector<128x128xbf16>
    %cst_23 = arith.constant dense<0.000000e+00> : vector<32x128xf32>
    %56 = tpu.matmul %53, %55, %cst_23 {dimension_numbers = #tpu.dot_dimension_numbers<[1], [0], [0], [1], [0, 0, 1, 1], [], []>} : vector<32x128xbf16>, vector<128x128xbf16>, vector<32x128xf32> -> vector<32x128xf32>
    %57 = vector.extract_strided_slice %53 {offsets = [31, 0], sizes = [1, 128], strides = [1, 1]} : vector<32x128xbf16> to vector<1x128xbf16>
    %58 = vector.extract_strided_slice %53 {offsets = [0, 0], sizes = [31, 128], strides = [1, 1]} : vector<32x128xbf16> to vector<31x128xbf16>
    %59 = tpu.concatenate %57, %58 in 0 : vector<1x128xbf16>, vector<31x128xbf16> -> vector<32x128xbf16>
    %c0_24 = arith.constant 0 : index
    %c0_25 = arith.constant 0 : index
    %c0_26 = arith.constant 0 : index
    %60 = vector.load %arg6[%c0_24, %c0_25, %c0_26] : memref<3x128x128xbf16, #tpu.memory_space<vmem>>, vector<1x128x128xbf16>
    %61 = vector.shape_cast %60 : vector<1x128x128xbf16> to vector<128x128xbf16>
    %cst_27 = arith.constant dense<0.000000e+00> : vector<32x128xf32>
    %62 = tpu.matmul %59, %61, %cst_27 {dimension_numbers = #tpu.dot_dimension_numbers<[1], [0], [0], [1], [0, 0, 1, 1], [], []>} : vector<32x128xbf16>, vector<128x128xbf16>, vector<32x128xf32> -> vector<32x128xf32>
    %63 = arith.addf %56, %62 : vector<32x128xf32>
    %64 = vector.extract_strided_slice %53 {offsets = [1, 0], sizes = [31, 128], strides = [1, 1]} : vector<32x128xbf16> to vector<31x128xbf16>
    %65 = vector.extract_strided_slice %53 {offsets = [0, 0], sizes = [1, 128], strides = [1, 1]} : vector<32x128xbf16> to vector<1x128xbf16>
    %66 = tpu.concatenate %64, %65 in 0 : vector<31x128xbf16>, vector<1x128xbf16> -> vector<32x128xbf16>
    %c2_28 = arith.constant 2 : index
    %c0_29 = arith.constant 0 : index
    %c0_30 = arith.constant 0 : index
    %67 = vector.load %arg6[%c2_28, %c0_29, %c0_30] : memref<3x128x128xbf16, #tpu.memory_space<vmem>>, vector<1x128x128xbf16>
    %68 = vector.shape_cast %67 : vector<1x128x128xbf16> to vector<128x128xbf16>
    %cst_31 = arith.constant dense<0.000000e+00> : vector<32x128xf32>
    %69 = tpu.matmul %66, %68, %cst_31 {dimension_numbers = #tpu.dot_dimension_numbers<[1], [0], [0], [1], [0, 0, 1, 1], [], []>} : vector<32x128xbf16>, vector<128x128xbf16>, vector<32x128xf32> -> vector<32x128xf32>
    %70 = arith.addf %63, %69 : vector<32x128xf32>
    %c0_32 = arith.constant 0 : index
    %c0_33 = arith.constant 0 : index
    %71 = vector.load %arg7[%c0_32, %c0_33] : memref<2x128xf32, #tpu.memory_space<vmem>>, vector<2x128xf32>
    %72 = vector.extract_strided_slice %71 {offsets = [0, 0], sizes = [1, 128], strides = [1, 1]} : vector<2x128xf32> to vector<1x128xf32>
    %73 = vector.broadcast %72 : vector<1x128xf32> to vector<32x128xf32>
    %74 = arith.mulf %70, %73 : vector<32x128xf32>
    %75 = vector.extract_strided_slice %71 {offsets = [1, 0], sizes = [1, 128], strides = [1, 1]} : vector<2x128xf32> to vector<1x128xf32>
    %76 = vector.broadcast %75 : vector<1x128xf32> to vector<32x128xf32>
    %77 = arith.addf %74, %76 : vector<32x128xf32>
    %cst_34 = arith.constant 0.000000e+00 : f32
    %78 = vector.broadcast %cst_34 : f32 to vector<32x128xf32>
    %79 = arith.maximumf %77, %78 : vector<32x128xf32>
    %cst_35 = arith.constant 0.000000e+00 : f32
    %80 = vector.shape_cast %17 : vector<32x1xi1> to vector<32x1xi1>
    %81 = vector.broadcast %80 : vector<32x1xi1> to vector<32x128xi1>
    %82 = vector.broadcast %cst_35 : f32 to vector<32x128xf32>
    %83 = arith.select %81, %79, %82 : vector<32x128xi1>, vector<32x128xf32>
    %84 = arith.truncf %83 : vector<32x128xf32> to vector<32x128xbf16>
    %c1_36 = arith.constant 1 : index
    %c0_37 = arith.constant 0 : index
    %c0_38 = arith.constant 0 : index
    %85 = vector.load %arg8[%c1_36, %c0_37, %c0_38] : memref<3x128x128xbf16, #tpu.memory_space<vmem>>, vector<1x128x128xbf16>
    %86 = vector.shape_cast %85 : vector<1x128x128xbf16> to vector<128x128xbf16>
    %cst_39 = arith.constant dense<0.000000e+00> : vector<32x128xf32>
    %87 = tpu.matmul %84, %86, %cst_39 {dimension_numbers = #tpu.dot_dimension_numbers<[1], [0], [0], [1], [0, 0, 1, 1], [], []>} : vector<32x128xbf16>, vector<128x128xbf16>, vector<32x128xf32> -> vector<32x128xf32>
    %88 = vector.extract_strided_slice %84 {offsets = [31, 0], sizes = [1, 128], strides = [1, 1]} : vector<32x128xbf16> to vector<1x128xbf16>
    %89 = vector.extract_strided_slice %84 {offsets = [0, 0], sizes = [31, 128], strides = [1, 1]} : vector<32x128xbf16> to vector<31x128xbf16>
    %90 = tpu.concatenate %88, %89 in 0 : vector<1x128xbf16>, vector<31x128xbf16> -> vector<32x128xbf16>
    %c0_40 = arith.constant 0 : index
    %c0_41 = arith.constant 0 : index
    %c0_42 = arith.constant 0 : index
    %91 = vector.load %arg8[%c0_40, %c0_41, %c0_42] : memref<3x128x128xbf16, #tpu.memory_space<vmem>>, vector<1x128x128xbf16>
    %92 = vector.shape_cast %91 : vector<1x128x128xbf16> to vector<128x128xbf16>
    %cst_43 = arith.constant dense<0.000000e+00> : vector<32x128xf32>
    %93 = tpu.matmul %90, %92, %cst_43 {dimension_numbers = #tpu.dot_dimension_numbers<[1], [0], [0], [1], [0, 0, 1, 1], [], []>} : vector<32x128xbf16>, vector<128x128xbf16>, vector<32x128xf32> -> vector<32x128xf32>
    %94 = arith.addf %87, %93 : vector<32x128xf32>
    %95 = vector.extract_strided_slice %84 {offsets = [1, 0], sizes = [31, 128], strides = [1, 1]} : vector<32x128xbf16> to vector<31x128xbf16>
    %96 = vector.extract_strided_slice %84 {offsets = [0, 0], sizes = [1, 128], strides = [1, 1]} : vector<32x128xbf16> to vector<1x128xbf16>
    %97 = tpu.concatenate %95, %96 in 0 : vector<31x128xbf16>, vector<1x128xbf16> -> vector<32x128xbf16>
    %c2_44 = arith.constant 2 : index
    %c0_45 = arith.constant 0 : index
    %c0_46 = arith.constant 0 : index
    %98 = vector.load %arg8[%c2_44, %c0_45, %c0_46] : memref<3x128x128xbf16, #tpu.memory_space<vmem>>, vector<1x128x128xbf16>
    %99 = vector.shape_cast %98 : vector<1x128x128xbf16> to vector<128x128xbf16>
    %cst_47 = arith.constant dense<0.000000e+00> : vector<32x128xf32>
    %100 = tpu.matmul %97, %99, %cst_47 {dimension_numbers = #tpu.dot_dimension_numbers<[1], [0], [0], [1], [0, 0, 1, 1], [], []>} : vector<32x128xbf16>, vector<128x128xbf16>, vector<32x128xf32> -> vector<32x128xf32>
    %101 = arith.addf %94, %100 : vector<32x128xf32>
    %c0_48 = arith.constant 0 : index
    %c0_49 = arith.constant 0 : index
    %102 = vector.load %arg9[%c0_48, %c0_49] : memref<2x128xf32, #tpu.memory_space<vmem>>, vector<2x128xf32>
    %103 = vector.extract_strided_slice %102 {offsets = [0, 0], sizes = [1, 128], strides = [1, 1]} : vector<2x128xf32> to vector<1x128xf32>
    %104 = vector.broadcast %103 : vector<1x128xf32> to vector<32x128xf32>
    %105 = arith.mulf %101, %104 : vector<32x128xf32>
    %106 = vector.extract_strided_slice %102 {offsets = [1, 0], sizes = [1, 128], strides = [1, 1]} : vector<2x128xf32> to vector<1x128xf32>
    %107 = vector.broadcast %106 : vector<1x128xf32> to vector<32x128xf32>
    %108 = arith.addf %105, %107 : vector<32x128xf32>
    %109 = vector.extract_strided_slice %108 {offsets = [8, 0], sizes = [16, 128], strides = [1, 1]} : vector<32x128xf32> to vector<16x128xf32>
    %c0_50 = arith.constant 0 : index
    %c0_51 = arith.constant 0 : index
    %c0_52 = arith.constant 0 : index
    %110 = vector.load %arg10[%c0_50, %c0_51, %c0_52] : memref<1x128x128xbf16, #tpu.memory_space<vmem>>, vector<1x128x128xbf16>
    %111 = vector.shape_cast %110 : vector<1x128x128xbf16> to vector<128x128xbf16>
    %cst_53 = arith.constant dense<0.000000e+00> : vector<16x128xf32>
    %112 = tpu.matmul %1, %111, %cst_53 {dimension_numbers = #tpu.dot_dimension_numbers<[1], [0], [0], [1], [0, 0, 1, 1], [], []>} : vector<16x128xbf16>, vector<128x128xbf16>, vector<16x128xf32> -> vector<16x128xf32>
    %c0_54 = arith.constant 0 : index
    %c0_55 = arith.constant 0 : index
    %113 = vector.load %arg11[%c0_54, %c0_55] : memref<2x128xf32, #tpu.memory_space<vmem>>, vector<2x128xf32>
    %114 = vector.extract_strided_slice %113 {offsets = [0, 0], sizes = [1, 128], strides = [1, 1]} : vector<2x128xf32> to vector<1x128xf32>
    %115 = vector.broadcast %114 : vector<1x128xf32> to vector<16x128xf32>
    %116 = arith.mulf %112, %115 : vector<16x128xf32>
    %117 = vector.extract_strided_slice %113 {offsets = [1, 0], sizes = [1, 128], strides = [1, 1]} : vector<2x128xf32> to vector<1x128xf32>
    %118 = vector.broadcast %117 : vector<1x128xf32> to vector<16x128xf32>
    %119 = arith.addf %116, %118 : vector<16x128xf32>
    %120 = arith.addf %109, %119 : vector<16x128xf32>
    %cst_56 = arith.constant 0.000000e+00 : f32
    %121 = vector.broadcast %cst_56 : f32 to vector<16x128xf32>
    %122 = arith.maximumf %120, %121 : vector<16x128xf32>
    %123 = arith.truncf %122 : vector<16x128xf32> to vector<16x128xbf16>
    %c0_57 = arith.constant 0 : index
    %c0_58 = arith.constant 0 : index
    %c0_59 = arith.constant 0 : index
    %124 = vector.load %arg12[%c0_57, %c0_58, %c0_59] : memref<1x16x128xbf16, #tpu.memory_space<vmem>>, vector<1x16x128xbf16>
    %125 = vector.shape_cast %124 : vector<1x16x128xbf16> to vector<16x128xbf16>
    %126 = vector.shape_cast %123 : vector<16x128xbf16> to vector<1x16x128xbf16>
    tpu.vector_store %arg12[%c0_57, %c0_58, %c0_59], %126 {strides = array<i32>} : memref<1x16x128xbf16, #tpu.memory_space<vmem>>, vector<1x16x128xbf16>,
    return
  }
  func.func @transform_0(%arg0: i32, %arg1: i32) -> (i32, i32, i32) {
    %c0_i32 = arith.constant 0 : i32
    %c0_i32_0 = arith.constant 0 : i32
    return %arg0, %arg1, %c0_i32 : i32, i32, i32
  }
  func.func @transform_1(%arg0: i32, %arg1: i32) -> (i32, i32, i32) {
    %c0_i32 = arith.constant 0 : i32
    %c0_i32_0 = arith.constant 0 : i32
    return %arg0, %arg1, %c0_i32 : i32, i32, i32
  }
  func.func @transform_2(%arg0: i32, %arg1: i32) -> (i32, i32, i32) {
    %c0_i32 = arith.constant 0 : i32
    %c0_i32_0 = arith.constant 0 : i32
    %c0_i32_1 = arith.constant 0 : i32
    %c0_i32_2 = arith.constant 0 : i32
    return %c0_i32, %c0_i32_0, %c0_i32_1 : i32, i32, i32
  }
  func.func @transform_3(%arg0: i32, %arg1: i32) -> (i32, i32) {
    %c0_i32 = arith.constant 0 : i32
    %c0_i32_0 = arith.constant 0 : i32
    %c0_i32_1 = arith.constant 0 : i32
    return %c0_i32, %c0_i32_0 : i32, i32
  }
  func.func @transform_4(%arg0: i32, %arg1: i32) -> (i32, i32, i32) {
    %c0_i32 = arith.constant 0 : i32
    %c0_i32_0 = arith.constant 0 : i32
    %c0_i32_1 = arith.constant 0 : i32
    %c0_i32_2 = arith.constant 0 : i32
    return %c0_i32, %c0_i32_0, %c0_i32_1 : i32, i32, i32
  }
  func.func @transform_5(%arg0: i32, %arg1: i32) -> (i32, i32) {
    %c0_i32 = arith.constant 0 : i32
    %c0_i32_0 = arith.constant 0 : i32
    %c0_i32_1 = arith.constant 0 : i32
    return %c0_i32, %c0_i32_0 : i32, i32
  }
  func.func @transform_6(%arg0: i32, %arg1: i32) -> (i32, i32, i32) {
    %c0_i32 = arith.constant 0 : i32
    %c0_i32_0 = arith.constant 0 : i32
    %c0_i32_1 = arith.constant 0 : i32
    %c0_i32_2 = arith.constant 0 : i32
    return %c0_i32, %c0_i32_0, %c0_i32_1 : i32, i32, i32
  }
  func.func @transform_7(%arg0: i32, %arg1: i32) -> (i32, i32) {
    %c0_i32 = arith.constant 0 : i32
    %c0_i32_0 = arith.constant 0 : i32
    %c0_i32_1 = arith.constant 0 : i32
    return %c0_i32, %c0_i32_0 : i32, i32
  }
  func.func @transform_8(%arg0: i32, %arg1: i32) -> (i32, i32, i32) {
    %c0_i32 = arith.constant 0 : i32
    %c0_i32_0 = arith.constant 0 : i32
    %c0_i32_1 = arith.constant 0 : i32
    %c0_i32_2 = arith.constant 0 : i32
    return %c0_i32, %c0_i32_0, %c0_i32_1 : i32, i32, i32
  }
  func.func @transform_9(%arg0: i32, %arg1: i32) -> (i32, i32) {
    %c0_i32 = arith.constant 0 : i32
    %c0_i32_0 = arith.constant 0 : i32
    %c0_i32_1 = arith.constant 0 : i32
    return %c0_i32, %c0_i32_0 : i32, i32
  }
  func.func @transform_10(%arg0: i32, %arg1: i32) -> (i32, i32, i32) {
    %c0_i32 = arith.constant 0 : i32
    %c0_i32_0 = arith.constant 0 : i32
    return %arg0, %arg1, %c0_i32 : i32, i32, i32
  }
}

module attributes {stable_mosaic.version = 11 : i64} {
  func.func @kernel(%arg0: i32, %arg1: i32, %arg2: memref<1x16x128xbf16, #tpu.memory_space<vmem>>, %arg3: memref<1x16x128xbf16, #tpu.memory_space<vmem>>, %arg4: memref<3x128x128xbf16, #tpu.memory_space<vmem>>, %arg5: memref<2x128xf32, #tpu.memory_space<vmem>>, %arg6: memref<3x128x128xbf16, #tpu.memory_space<vmem>>, %arg7: memref<2x128xf32, #tpu.memory_space<vmem>>, %arg8: memref<3x128x128xbf16, #tpu.memory_space<vmem>>, %arg9: memref<2x128xf32, #tpu.memory_space<vmem>>, %arg10: memref<1x128x128xbf16, #tpu.memory_space<vmem>>, %arg11: memref<2x128xf32, #tpu.memory_space<vmem>>, %arg12: memref<1x16x128xbf16, #tpu.memory_space<vmem>>) attributes {dimension_semantics = [#tpu.dimension_semantics<parallel>, #tpu.dimension_semantics<parallel>], iteration_bounds = array<i64: 2, 1>, scalar_prefetch = 0 : i64, scratch_operands = 0 : i64, tpu.core_type = #tpu.core_type<tc>, window_params = [{transform_indices = @transform_0, window_bounds = array<i64: 1, 16, 128>}, {transform_indices = @transform_1, window_bounds = array<i64: 1, 16, 128>}, {pipeline_mode = #tpu.pipeline_mode<synchronous>, transform_indices = @transform_2, window_bounds = array<i64: 3, 128, 128>}, {pipeline_mode = #tpu.pipeline_mode<synchronous>, transform_indices = @transform_3, window_bounds = array<i64: 2, 128>}, {pipeline_mode = #tpu.pipeline_mode<synchronous>, transform_indices = @transform_4, window_bounds = array<i64: 3, 128, 128>}, {pipeline_mode = #tpu.pipeline_mode<synchronous>, transform_indices = @transform_5, window_bounds = array<i64: 2, 128>}, {pipeline_mode = #tpu.pipeline_mode<synchronous>, transform_indices = @transform_6, window_bounds = array<i64: 3, 128, 128>}, {pipeline_mode = #tpu.pipeline_mode<synchronous>, transform_indices = @transform_7, window_bounds = array<i64: 2, 128>}, {pipeline_mode = #tpu.pipeline_mode<synchronous>, transform_indices = @transform_8, window_bounds = array<i64: 1, 128, 128>}, {pipeline_mode = #tpu.pipeline_mode<synchronous>, transform_indices = @transform_9, window_bounds = array<i64: 2, 128>}, {transform_indices = @transform_10, window_bounds = array<i64: 1, 16, 128>}]} {
    %c0 = arith.constant 0 : index
    %c0_0 = arith.constant 0 : index
    %c0_1 = arith.constant 0 : index
    %0 = vector.load %arg2[%c0, %c0_0, %c0_1] : memref<1x16x128xbf16, #tpu.memory_space<vmem>>, vector<1x16x128xbf16>
    %1 = vector.shape_cast %0 : vector<1x16x128xbf16> to vector<16x128xbf16>
    %c0_2 = arith.constant 0 : index
    %c0_3 = arith.constant 0 : index
    %c0_4 = arith.constant 0 : index
    %2 = vector.load %arg3[%c0_2, %c0_3, %c0_4] : memref<1x16x128xbf16, #tpu.memory_space<vmem>>, vector<1x16x128xbf16>
    %3 = vector.shape_cast %2 : vector<1x16x128xbf16> to vector<16x128xbf16>
    %4 = vector.extract_strided_slice %3 {offsets = [0, 0], sizes = [8, 128], strides = [1, 1]} : vector<16x128xbf16> to vector<8x128xbf16>
    %5 = vector.extract_strided_slice %3 {offsets = [8, 0], sizes = [8, 128], strides = [1, 1]} : vector<16x128xbf16> to vector<8x128xbf16>
    %6 = tpu.concatenate %4, %1, %5 in 0 : vector<8x128xbf16>, vector<16x128xbf16>, vector<8x128xbf16> -> vector<32x128xbf16>
    %c16_i32 = arith.constant 16 : i32
    %7 = arith.muli %arg1, %c16_i32 : i32
    %8 = tpu.iota {dimensions = array<i32: 0>} : vector<32x1xi32>
    %9 = vector.broadcast %7 : i32 to vector<32x1xi32>
    %10 = arith.addi %9, %8 : vector<32x1xi32>
    %c8_i32 = arith.constant 8 : i32
    %11 = vector.broadcast %c8_i32 : i32 to vector<32x1xi32>
    %12 = arith.subi %10, %11 : vector<32x1xi32>
    %c0_i32 = arith.constant 0 : i32
    %13 = vector.broadcast %c0_i32 : i32 to vector<32x1xi32>
    %14 = arith.cmpi sge, %12, %13 : vector<32x1xi32>
    %c16_i32_5 = arith.constant 16 : i32
    %15 = vector.broadcast %c16_i32_5 : i32 to vector<32x1xi32>
    %16 = arith.cmpi slt, %12, %15 : vector<32x1xi32>
    %17 = arith.andi %14, %16 : vector<32x1xi1>
    %c0_i32_6 = arith.constant 0 : i32
    %18 = arith.sitofp %c0_i32_6 : i32 to bf16
    %19 = vector.shape_cast %17 : vector<32x1xi1> to vector<32x1xi1>
    %20 = vector.broadcast %19 : vector<32x1xi1> to vector<32x128xi1>
    %21 = vector.broadcast %18 : bf16 to vector<32x128xbf16>
    %22 = arith.select %20, %6, %21 : vector<32x128xi1>, vector<32x128xbf16>
    %c1 = arith.constant 1 : index
    %c0_7 = arith.constant 0 : index
    %c0_8 = arith.constant 0 : index
    %23 = vector.load %arg4[%c1, %c0_7, %c0_8] : memref<3x128x128xbf16, #tpu.memory_space<vmem>>, vector<1x128x128xbf16>
    %24 = vector.shape_cast %23 : vector<1x128x128xbf16> to vector<128x128xbf16>
    %cst = arith.constant dense<0.000000e+00> : vector<32x128xf32>
    %25 = tpu.matmul %22, %24, %cst {dimension_numbers = #tpu.dot_dimension_numbers<[1], [0], [0], [1], [0, 0, 1, 1], [], []>} : vector<32x128xbf16>, vector<128x128xbf16>, vector<32x128xf32> -> vector<32x128xf32>
    %26 = vector.extract_strided_slice %22 {offsets = [31, 0], sizes = [1, 128], strides = [1, 1]} : vector<32x128xbf16> to vector<1x128xbf16>
    %27 = vector.extract_strided_slice %22 {offsets = [0, 0], sizes = [31, 128], strides = [1, 1]} : vector<32x128xbf16> to vector<31x128xbf16>
    %28 = tpu.concatenate %26, %27 in 0 : vector<1x128xbf16>, vector<31x128xbf16> -> vector<32x128xbf16>
    %c0_9 = arith.constant 0 : index
    %c0_10 = arith.constant 0 : index
    %c0_11 = arith.constant 0 : index
    %29 = vector.load %arg4[%c0_9, %c0_10, %c0_11] : memref<3x128x128xbf16, #tpu.memory_space<vmem>>, vector<1x128x128xbf16>
    %30 = vector.shape_cast %29 : vector<1x128x128xbf16> to vector<128x128xbf16>
    %cst_12 = arith.constant dense<0.000000e+00> : vector<32x128xf32>
    %31 = tpu.matmul %28, %30, %cst_12 {dimension_numbers = #tpu.dot_dimension_numbers<[1], [0], [0], [1], [0, 0, 1, 1], [], []>} : vector<32x128xbf16>, vector<128x128xbf16>, vector<32x128xf32> -> vector<32x128xf32>
    %32 = arith.addf %25, %31 : vector<32x128xf32>
    %33 = vector.extract_strided_slice %22 {offsets = [1, 0], sizes = [31, 128], strides = [1, 1]} : vector<32x128xbf16> to vector<31x128xbf16>
    %34 = vector.extract_strided_slice %22 {offsets = [0, 0], sizes = [1, 128], strides = [1, 1]} : vector<32x128xbf16> to vector<1x128xbf16>
    %35 = tpu.concatenate %33, %34 in 0 : vector<31x128xbf16>, vector<1x128xbf16> -> vector<32x128xbf16>
    %c2 = arith.constant 2 : index
    %c0_13 = arith.constant 0 : index
    %c0_14 = arith.constant 0 : index
    %36 = vector.load %arg4[%c2, %c0_13, %c0_14] : memref<3x128x128xbf16, #tpu.memory_space<vmem>>, vector<1x128x128xbf16>
    %37 = vector.shape_cast %36 : vector<1x128x128xbf16> to vector<128x128xbf16>
    %cst_15 = arith.constant dense<0.000000e+00> : vector<32x128xf32>
    %38 = tpu.matmul %35, %37, %cst_15 {dimension_numbers = #tpu.dot_dimension_numbers<[1], [0], [0], [1], [0, 0, 1, 1], [], []>} : vector<32x128xbf16>, vector<128x128xbf16>, vector<32x128xf32> -> vector<32x128xf32>
    %39 = arith.addf %32, %38 : vector<32x128xf32>
    %c0_16 = arith.constant 0 : index
    %c0_17 = arith.constant 0 : index
    %40 = vector.load %arg5[%c0_16, %c0_17] : memref<2x128xf32, #tpu.memory_space<vmem>>, vector<2x128xf32>
    %41 = vector.extract_strided_slice %40 {offsets = [0, 0], sizes = [1, 128], strides = [1, 1]} : vector<2x128xf32> to vector<1x128xf32>
    %42 = vector.broadcast %41 : vector<1x128xf32> to vector<32x128xf32>
    %43 = arith.mulf %39, %42 : vector<32x128xf32>
    %44 = vector.extract_strided_slice %40 {offsets = [1, 0], sizes = [1, 128], strides = [1, 1]} : vector<2x128xf32> to vector<1x128xf32>
    %45 = vector.broadcast %44 : vector<1x128xf32> to vector<32x128xf32>
    %46 = arith.addf %43, %45 : vector<32x128xf32>
    %cst_18 = arith.constant 0.000000e+00 : f32
    %47 = vector.broadcast %cst_18 : f32 to vector<32x128xf32>
    %48 = arith.maximumf %46, %47 : vector<32x128xf32>
    %cst_19 = arith.constant 0.000000e+00 : f32
    %49 = vector.shape_cast %17 : vector<32x1xi1> to vector<32x1xi1>
    %50 = vector.broadcast %49 : vector<32x1xi1> to vector<32x128xi1>
    %51 = vector.broadcast %cst_19 : f32 to vector<32x128xf32>
    %52 = arith.select %50, %48, %51 : vector<32x128xi1>, vector<32x128xf32>
    %53 = arith.truncf %52 : vector<32x128xf32> to vector<32x128xbf16>
    %c1_20 = arith.constant 1 : index
    %c0_21 = arith.constant 0 : index
    %c0_22 = arith.constant 0 : index
    %54 = vector.load %arg6[%c1_20, %c0_21, %c0_22] : memref<3x128x128xbf16, #tpu.memory_space<vmem>>, vector<1x128x128xbf16>
    %55 = vector.shape_cast %54 : vector<1x128x128xbf16> to vector<128x128xbf16>
    %cst_23 = arith.constant dense<0.000000e+00> : vector<32x128xf32>
    %56 = tpu.matmul %53, %55, %cst_23 {dimension_numbers = #tpu.dot_dimension_numbers<[1], [0], [0], [1], [0, 0, 1, 1], [], []>} : vector<32x128xbf16>, vector<128x128xbf16>, vector<32x128xf32> -> vector<32x128xf32>
    %57 = vector.extract_strided_slice %53 {offsets = [31, 0], sizes = [1, 128], strides = [1, 1]} : vector<32x128xbf16> to vector<1x128xbf16>
    %58 = vector.extract_strided_slice %53 {offsets = [0, 0], sizes = [31, 128], strides = [1, 1]} : vector<32x128xbf16> to vector<31x128xbf16>
    %59 = tpu.concatenate %57, %58 in 0 : vector<1x128xbf16>, vector<31x128xbf16> -> vector<32x128xbf16>
    %c0_24 = arith.constant 0 : index
    %c0_25 = arith.constant 0 : index
    %c0_26 = arith.constant 0 : index
    %60 = vector.load %arg6[%c0_24, %c0_25, %c0_26] : memref<3x128x128xbf16, #tpu.memory_space<vmem>>, vector<1x128x128xbf16>
    %61 = vector.shape_cast %60 : vector<1x128x128xbf16> to vector<128x128xbf16>
    %cst_27 = arith.constant dense<0.000000e+00> : vector<32x128xf32>
    %62 = tpu.matmul %59, %61, %cst_27 {dimension_numbers = #tpu.dot_dimension_numbers<[1], [0], [0], [1], [0, 0, 1, 1], [], []>} : vector<32x128xbf16>, vector<128x128xbf16>, vector<32x128xf32> -> vector<32x128xf32>
    %63 = arith.addf %56, %62 : vector<32x128xf32>
    %64 = vector.extract_strided_slice %53 {offsets = [1, 0], sizes = [31, 128], strides = [1, 1]} : vector<32x128xbf16> to vector<31x128xbf16>
    %65 = vector.extract_strided_slice %53 {offsets = [0, 0], sizes = [1, 128], strides = [1, 1]} : vector<32x128xbf16> to vector<1x128xbf16>
    %66 = tpu.concatenate %64, %65 in 0 : vector<31x128xbf16>, vector<1x128xbf16> -> vector<32x128xbf16>
    %c2_28 = arith.constant 2 : index
    %c0_29 = arith.constant 0 : index
    %c0_30 = arith.constant 0 : index
    %67 = vector.load %arg6[%c2_28, %c0_29, %c0_30] : memref<3x128x128xbf16, #tpu.memory_space<vmem>>, vector<1x128x128xbf16>
    %68 = vector.shape_cast %67 : vector<1x128x128xbf16> to vector<128x128xbf16>
    %cst_31 = arith.constant dense<0.000000e+00> : vector<32x128xf32>
    %69 = tpu.matmul %66, %68, %cst_31 {dimension_numbers = #tpu.dot_dimension_numbers<[1], [0], [0], [1], [0, 0, 1, 1], [], []>} : vector<32x128xbf16>, vector<128x128xbf16>, vector<32x128xf32> -> vector<32x128xf32>
    %70 = arith.addf %63, %69 : vector<32x128xf32>
    %c0_32 = arith.constant 0 : index
    %c0_33 = arith.constant 0 : index
    %71 = vector.load %arg7[%c0_32, %c0_33] : memref<2x128xf32, #tpu.memory_space<vmem>>, vector<2x128xf32>
    %72 = vector.extract_strided_slice %71 {offsets = [0, 0], sizes = [1, 128], strides = [1, 1]} : vector<2x128xf32> to vector<1x128xf32>
    %73 = vector.broadcast %72 : vector<1x128xf32> to vector<32x128xf32>
    %74 = arith.mulf %70, %73 : vector<32x128xf32>
    %75 = vector.extract_strided_slice %71 {offsets = [1, 0], sizes = [1, 128], strides = [1, 1]} : vector<2x128xf32> to vector<1x128xf32>
    %76 = vector.broadcast %75 : vector<1x128xf32> to vector<32x128xf32>
    %77 = arith.addf %74, %76 : vector<32x128xf32>
    %cst_34 = arith.constant 0.000000e+00 : f32
    %78 = vector.broadcast %cst_34 : f32 to vector<32x128xf32>
    %79 = arith.maximumf %77, %78 : vector<32x128xf32>
    %cst_35 = arith.constant 0.000000e+00 : f32
    %80 = vector.shape_cast %17 : vector<32x1xi1> to vector<32x1xi1>
    %81 = vector.broadcast %80 : vector<32x1xi1> to vector<32x128xi1>
    %82 = vector.broadcast %cst_35 : f32 to vector<32x128xf32>
    %83 = arith.select %81, %79, %82 : vector<32x128xi1>, vector<32x128xf32>
    %84 = arith.truncf %83 : vector<32x128xf32> to vector<32x128xbf16>
    %c1_36 = arith.constant 1 : index
    %c0_37 = arith.constant 0 : index
    %c0_38 = arith.constant 0 : index
    %85 = vector.load %arg8[%c1_36, %c0_37, %c0_38] : memref<3x128x128xbf16, #tpu.memory_space<vmem>>, vector<1x128x128xbf16>
    %86 = vector.shape_cast %85 : vector<1x128x128xbf16> to vector<128x128xbf16>
    %cst_39 = arith.constant dense<0.000000e+00> : vector<32x128xf32>
    %87 = tpu.matmul %84, %86, %cst_39 {dimension_numbers = #tpu.dot_dimension_numbers<[1], [0], [0], [1], [0, 0, 1, 1], [], []>} : vector<32x128xbf16>, vector<128x128xbf16>, vector<32x128xf32> -> vector<32x128xf32>
    %88 = vector.extract_strided_slice %84 {offsets = [31, 0], sizes = [1, 128], strides = [1, 1]} : vector<32x128xbf16> to vector<1x128xbf16>
    %89 = vector.extract_strided_slice %84 {offsets = [0, 0], sizes = [31, 128], strides = [1, 1]} : vector<32x128xbf16> to vector<31x128xbf16>
    %90 = tpu.concatenate %88, %89 in 0 : vector<1x128xbf16>, vector<31x128xbf16> -> vector<32x128xbf16>
    %c0_40 = arith.constant 0 : index
    %c0_41 = arith.constant 0 : index
    %c0_42 = arith.constant 0 : index
    %91 = vector.load %arg8[%c0_40, %c0_41, %c0_42] : memref<3x128x128xbf16, #tpu.memory_space<vmem>>, vector<1x128x128xbf16>
    %92 = vector.shape_cast %91 : vector<1x128x128xbf16> to vector<128x128xbf16>
    %cst_43 = arith.constant dense<0.000000e+00> : vector<32x128xf32>
    %93 = tpu.matmul %90, %92, %cst_43 {dimension_numbers = #tpu.dot_dimension_numbers<[1], [0], [0], [1], [0, 0, 1, 1], [], []>} : vector<32x128xbf16>, vector<128x128xbf16>, vector<32x128xf32> -> vector<32x128xf32>
    %94 = arith.addf %87, %93 : vector<32x128xf32>
    %95 = vector.extract_strided_slice %84 {offsets = [1, 0], sizes = [31, 128], strides = [1, 1]} : vector<32x128xbf16> to vector<31x128xbf16>
    %96 = vector.extract_strided_slice %84 {offsets = [0, 0], sizes = [1, 128], strides = [1, 1]} : vector<32x128xbf16> to vector<1x128xbf16>
    %97 = tpu.concatenate %95, %96 in 0 : vector<31x128xbf16>, vector<1x128xbf16> -> vector<32x128xbf16>
    %c2_44 = arith.constant 2 : index
    %c0_45 = arith.constant 0 : index
    %c0_46 = arith.constant 0 : index
    %98 = vector.load %arg8[%c2_44, %c0_45, %c0_46] : memref<3x128x128xbf16, #tpu.memory_space<vmem>>, vector<1x128x128xbf16>
    %99 = vector.shape_cast %98 : vector<1x128x128xbf16> to vector<128x128xbf16>
    %cst_47 = arith.constant dense<0.000000e+00> : vector<32x128xf32>
    %100 = tpu.matmul %97, %99, %cst_47 {dimension_numbers = #tpu.dot_dimension_numbers<[1], [0], [0], [1], [0, 0, 1, 1], [], []>} : vector<32x128xbf16>, vector<128x128xbf16>, vector<32x128xf32> -> vector<32x128xf32>
    %101 = arith.addf %94, %100 : vector<32x128xf32>
    %c0_48 = arith.constant 0 : index
    %c0_49 = arith.constant 0 : index
    %102 = vector.load %arg9[%c0_48, %c0_49] : memref<2x128xf32, #tpu.memory_space<vmem>>, vector<2x128xf32>
    %103 = vector.extract_strided_slice %102 {offsets = [0, 0], sizes = [1, 128], strides = [1, 1]} : vector<2x128xf32> to vector<1x128xf32>
    %104 = vector.broadcast %103 : vector<1x128xf32> to vector<32x128xf32>
    %105 = arith.mulf %101, %104 : vector<32x128xf32>
    %106 = vector.extract_strided_slice %102 {offsets = [1, 0], sizes = [1, 128], strides = [1, 1]} : vector<2x128xf32> to vector<1x128xf32>
    %107 = vector.broadcast %106 : vector<1x128xf32> to vector<32x128xf32>
    %108 = arith.addf %105, %107 : vector<32x128xf32>
    %109 = vector.extract_strided_slice %108 {offsets = [8, 0], sizes = [16, 128], strides = [1, 1]} : vector<32x128xf32> to vector<16x128xf32>
    %c0_50 = arith.constant 0 : index
    %c0_51 = arith.constant 0 : index
    %c0_52 = arith.constant 0 : index
    %110 = vector.load %arg10[%c0_50, %c0_51, %c0_52] : memref<1x128x128xbf16, #tpu.memory_space<vmem>>, vector<1x128x128xbf16>
    %111 = vector.shape_cast %110 : vector<1x128x128xbf16> to vector<128x128xbf16>
    %cst_53 = arith.constant dense<0.000000e+00> : vector<16x128xf32>
    %112 = tpu.matmul %1, %111, %cst_53 {dimension_numbers = #tpu.dot_dimension_numbers<[1], [0], [0], [1], [0, 0, 1, 1], [], []>} : vector<16x128xbf16>, vector<128x128xbf16>, vector<16x128xf32> -> vector<16x128xf32>
    %c0_54 = arith.constant 0 : index
    %c0_55 = arith.constant 0 : index
    %113 = vector.load %arg11[%c0_54, %c0_55] : memref<2x128xf32, #tpu.memory_space<vmem>>, vector<2x128xf32>
    %114 = vector.extract_strided_slice %113 {offsets = [0, 0], sizes = [1, 128], strides = [1, 1]} : vector<2x128xf32> to vector<1x128xf32>
    %115 = vector.broadcast %114 : vector<1x128xf32> to vector<16x128xf32>
    %116 = arith.mulf %112, %115 : vector<16x128xf32>
    %117 = vector.extract_strided_slice %113 {offsets = [1, 0], sizes = [1, 128], strides = [1, 1]} : vector<2x128xf32> to vector<1x128xf32>
    %118 = vector.broadcast %117 : vector<1x128xf32> to vector<16x128xf32>
    %119 = arith.addf %116, %118 : vector<16x128xf32>
    %120 = arith.addf %109, %119 : vector<16x128xf32>
    %cst_56 = arith.constant 0.000000e+00 : f32
    %121 = vector.broadcast %cst_56 : f32 to vector<16x128xf32>
    %122 = arith.maximumf %120, %121 : vector<16x128xf32>
    %123 = arith.truncf %122 : vector<16x128xf32> to vector<16x128xbf16>
    %c0_57 = arith.constant 0 : index
    %c0_58 = arith.constant 0 : index
    %c0_59 = arith.constant 0 : index
    %124 = vector.load %arg12[%c0_57, %c0_58, %c0_59] : memref<1x16x128xbf16, #tpu.memory_space<vmem>>, vector<1x16x128xbf16>
    %125 = vector.shape_cast %124 : vector<1x16x128xbf16> to vector<16x128xbf16>
    %126 = vector.shape_cast %123 : vector<16x128xbf16> to vector<1x16x128xbf16>
    tpu.vector_store %arg12[%c0_57, %c0_58, %c0_59], %126 {strides = array<i32>} : memref<1x16x128xbf16, #tpu.memory_space<vmem>>, vector<1x16x128xbf16>,
    return
  }
  func.func @transform_0(%arg0: i32, %arg1: i32) -> (i32, i32, i32) {
    %c0_i32 = arith.constant 0 : i32
    %c0_i32_0 = arith.constant 0 : i32
    return %arg0, %arg1, %c0_i32 : i32, i32, i32
  }
  func.func @transform_1(%arg0: i32, %arg1: i32) -> (i32, i32, i32) {
    %c0_i32 = arith.constant 0 : i32
    %c0_i32_0 = arith.constant 0 : i32
    return %arg0, %arg1, %c0_i32 : i32, i32, i32
  }
  func.func @transform_2(%arg0: i32, %arg1: i32) -> (i32, i32, i32) {
    %c0_i32 = arith.constant 0 : i32
    %c0_i32_0 = arith.constant 0 : i32
    %c0_i32_1 = arith.constant 0 : i32
    %c0_i32_2 = arith.constant 0 : i32
    return %c0_i32, %c0_i32_0, %c0_i32_1 : i32, i32, i32
  }
  func.func @transform_3(%arg0: i32, %arg1: i32) -> (i32, i32) {
    %c0_i32 = arith.constant 0 : i32
    %c0_i32_0 = arith.constant 0 : i32
    %c0_i32_1 = arith.constant 0 : i32
    return %c0_i32, %c0_i32_0 : i32, i32
  }
  func.func @transform_4(%arg0: i32, %arg1: i32) -> (i32, i32, i32) {
    %c0_i32 = arith.constant 0 : i32
    %c0_i32_0 = arith.constant 0 : i32
    %c0_i32_1 = arith.constant 0 : i32
    %c0_i32_2 = arith.constant 0 : i32
    return %c0_i32, %c0_i32_0, %c0_i32_1 : i32, i32, i32
  }
  func.func @transform_5(%arg0: i32, %arg1: i32) -> (i32, i32) {
    %c0_i32 = arith.constant 0 : i32
    %c0_i32_0 = arith.constant 0 : i32
    %c0_i32_1 = arith.constant 0 : i32
    return %c0_i32, %c0_i32_0 : i32, i32
  }
  func.func @transform_6(%arg0: i32, %arg1: i32) -> (i32, i32, i32) {
    %c0_i32 = arith.constant 0 : i32
    %c0_i32_0 = arith.constant 0 : i32
    %c0_i32_1 = arith.constant 0 : i32
    %c0_i32_2 = arith.constant 0 : i32
    return %c0_i32, %c0_i32_0, %c0_i32_1 : i32, i32, i32
  }
  func.func @transform_7(%arg0: i32, %arg1: i32) -> (i32, i32) {
    %c0_i32 = arith.constant 0 : i32
    %c0_i32_0 = arith.constant 0 : i32
    %c0_i32_1 = arith.constant 0 : i32
    return %c0_i32, %c0_i32_0 : i32, i32
  }
  func.func @transform_8(%arg0: i32, %arg1: i32) -> (i32, i32, i32) {
    %c0_i32 = arith.constant 0 : i32
    %c0_i32_0 = arith.constant 0 : i32
    %c0_i32_1 = arith.constant 0 : i32
    %c0_i32_2 = arith.constant 0 : i32
    return %c0_i32, %c0_i32_0, %c0_i32_1 : i32, i32, i32
  }
  func.func @transform_9(%arg0: i32, %arg1: i32) -> (i32, i32) {
    %c0_i32 = arith.constant 0 : i32
    %c0_i32_0 = arith.constant 0 : i32
    %c0_i32_1 = arith.constant 0 : i32
    return %c0_i32, %c0_i32_0 : i32, i32
  }
  func.func @transform_10(%arg0: i32, %arg1: i32) -> (i32, i32, i32) {
    %c0_i32 = arith.constant 0 : i32
    %c0_i32_0 = arith.constant 0 : i32
    return %arg0, %arg1, %c0_i32 : i32, i32, i32
  }
}

</mosaic_0001>

<bundles_post_ra>
// kernel: _convblock_impl.5
= control target key start
LH: loop header
LB: loop body
LE: loop exit
PB: predicated region body
PF: predicated region fallthrough
CT: control target
= control target key end

     0   :  { %s2711_s17 = smov 0   ;;  %s2713_s18 = smov 0   ;;  %s3098_s0 = inlined_call_operand.vmem [shape: bf16[2,16,128], index: 0, kind: input, shape index: {}]   ;;  %s3099_s1 = inlined_call_operand.vmem [shape: bf16[2,16,128], index: 1, kind: input, shape index: {}]   ;;  %s3100_s2 = inlined_call_operand.vmem [shape: bf16[3,128,128], index: 2, kind: input, shape index: {}]   ;;  %s3101_s3 = inlined_call_operand.vmem [shape: f32[2,128], index: 3, kind: input, shape index: {}]   ;;  %s3102_s4 = inlined_call_operand.vmem [shape: bf16[3,128,128], index: 4, kind: input, shape index: {}]   ;;  %s3103_s5 = inlined_call_operand.vmem [shape: f32[2,128], index: 5, kind: input, shape index: {}]   ;;  %s3104_s6 = inlined_call_operand.vmem [shape: bf16[3,128,128], index: 6, kind: input, shape index: {}]   ;;  %s3105_s7 = inlined_call_operand.vmem [shape: f32[2,128], index: 7, kind: input, shape index: {}]   ;;  %s3106_s8 = inlined_call_operand.vmem [shape: f32[2,128], index: 8, kind: input, shape index: {}]   ;;  %s3107_s9 = inlined_call_operand.vmem [shape: bf16[1,128,128], index: 9, kind: input, shape index: {}]   ;;  %s3108_s10 = inlined_call_operand.vmem [shape: f32[2,128], index: 10, kind: input, shape index: {}]   ;;  %s3109_s11 = inlined_call_operand.vmem [shape: bf16[2,16,128], index: 11, kind: output, shape index: {}]  }
   0x1   :  { %s2715_s19 = smov 0  }
   0x2 LB: > { %s33_s20 = sadd.s32 1, %s2641_s18  ;;  %p1983_p0 = scmp.ge.s32.totalorder %s2645_s19, 1  ;;  %s2645_s19 = sphi %s2715_s19, %s21_s19   ;;  %s2641_s18 = sphi %s2713_s18, %s3117_s18   ;;  %s2637_s17 = sphi %s2711_s17, %s3116_s17  }
   0x3   : > { %p35_p1 = scmp.ge.s32.totalorder %s33_s20, 2  ;;  %p375_p2 = scmp.lt.s32.totalorder %s2645_s19, 3 }
   0x5   : > { %s3119_s20 = smov (%p35_p1, %s33_s20), 0  ;;  %p376_p3 = pnand %p1983_p0, %p375_p2 }
   0x6   : > { %v2540_v0 = vld [vmem:[%s3100_s2 + $0x40] sm:$0xff] (!%p376_p3)   ;;  %p433_p4 = scmp.lt.s32.totalorder (!%p376_p3), %s2637_s17, 1  ;;  %v2541_v1 = vld [vmem:[%s3100_s2 + $0x48] sm:$0xff] (!%p376_p3)   ;;  %v2542_v2 = vld [vmem:[%s3100_s2 + $0x50] sm:$0xff] (!%p376_p3)   ;;  %vm478_vm0 = vcmask (!%p376_p3), 1043456   ;;  %vm2647_vm1 = vmmov (!%p376_p3), 0  }
   0x7   : > { %379 = sbr.rel (%p376_p3) target bundleno = 1111 (0x457), region = 64  ;;  %2310 = vmatprep.subr.bf16.mxu0 (!%p376_p3), %v2540_v0  ;;  %v2543_v3 = vld [vmem:[%s3100_s2 + $0x58] sm:$0xff] (!%p376_p3)   ;;  %v2548_v4 = vld [vmem:[%s3100_s2] sm:$0xff] (!%p376_p3)   ;;  %vm522_vm2 = vmpackc.low (!%p376_p3), %vm2647_vm1, %vm2647_vm1  ;;  %vm2648_vm3 = vmmov (!%p376_p3), 1   ;;  %v2649_v10 = vmov (!%p376_p3), 0   ;;  %vm576_vm7 = vcmask (!%p376_p3), 1040384  }
   0x8   : > { %2311 = vmatpush3.bf16.msra.mxu0 (!%p376_p3), %v2540_v0  ;;  %2290 = vmatprep.subr.bf16.mxu1 (!%p376_p3), %v2548_v4  ;;  %vm523_vm4 = vmpackc.low (!%p376_p3), %vm2648_vm3, %vm2648_vm3  ;;  %v526_v11 = vsel (!%p376_p3), %vm522_vm2, 65537, %v2649_v10  ;;  %v2544_v13 = vld [vmem:[%s3100_s2 + $0x60] sm:$0xff] (!%p376_p3)   ;;  %v2552_v18 = vld [vmem:[%s3100_s2 + $0x8] sm:$0xff] (!%p376_p3)   ;;  %vm562_vm8 = vsmask.f32 (!%p376_p3), 256  ;;  %vm798_vm11 = vcmask (!%p376_p3), 1047552  }
   0x9   : > { %2312 = vmatprep.subr.bf16.mxu0 (!%p376_p3), %v2541_v1  ;;  %2291 = vmatpush3.bf16.msra.mxu1 (!%p376_p3), %v2548_v4  ;;  %v527_v14 = vsel (!%p376_p3), %vm523_vm4, 65537, %v2649_v10  ;;  %v2545_v19 = vld [vmem:[%s3100_s2 + $0x68] sm:$0xff] (!%p376_p3)   ;;  %v2555_v22 = vld [vmem:[%s3100_s2 + $0x10] sm:$0xff] (!%p376_p3)   ;;  %v2557_v26 = vld [vmem:[%s3100_s2 + $0x18] sm:$0xff] (!%p376_p3)   ;;  %vm789_vm10 = vsmask.f32 (!%p376_p3), 7424 }
   0xa   : > { %v1997_v16 = vcombine.low (!%p376_p3), %v526_v11, %v527_v14  ;;  %v1998_v17 = vcombine.low (!%p376_p3), %v527_v14, %v526_v11  ;;  %2292 = vmatprep.subr.bf16.mxu1 (!%p376_p3), %v2552_v18  ;;  %v2546_v27 = vld [vmem:[%s3100_s2 + $0x70] sm:$0xff] (!%p376_p3)   ;;  %v2547_v31 = vld [vmem:[%s3100_s2 + $0x78] sm:$0xff] (!%p376_p3)   ;;  %v2559_v32 = vld [vmem:[%s3100_s2 + $0x20] sm:$0xff] (!%p376_p3)  }
   0xb   : > { %v2561_v37 = vld [vmem:[%s3100_s2 + $0x28] sm:$0xff] (!%p376_p3)   ;;  %vm2808_vm9 = vmand (!%p376_p3), %vm576_vm7, %vm562_vm8  ;;  %v2551_v40 = vld [vmem:[%s3100_s2 + $0x80] sm:$0xff] (!%p376_p3)  }
   0xc   : > { %2313 = vmatpush3.bf16.msra.mxu0 (!%p376_p3), %v2541_v1  ;;  %vm536_vm5 = vcmp.ne.s16.totalorder (!%p376_p3), %v1997_v16, 0  ;;  %vm2775_vm6 = vcmp.ne.s16.totalorder (!%p376_p3), %v1998_v17, 0  ;;  %v2563_v41 = vld [vmem:[%s3100_s2 + $0x30] sm:$0xff] (!%p376_p3)   ;;  %v2554_v44 = vld [vmem:[%s3100_s2 + $0x88] sm:$0xff] (!%p376_p3)   ;;  %v2565_v45 = vld [vmem:[%s3100_s2 + $0x38] sm:$0xff] (!%p376_p3)  }
   0xd   : > { %2314 = vmatprep.subr.bf16.mxu0 (!%p376_p3), %v2542_v2  ;;  %2293 = vmatpush3.bf16.msra.mxu1 (!%p376_p3), %v2552_v18  ;;  %v2556_v47 = vld [vmem:[%s3100_s2 + $0x90] sm:$0xff] (!%p376_p3)   ;;  %v2567_v48 = vld [vmem:[%s3102_s4] sm:$0xff] (!%p376_p3)   ;;  %v2558_v50 = vld [vmem:[%s3100_s2 + $0x98] sm:$0xff] (!%p376_p3)  }
   0xe   : > { %s3121_s17 = smov (!%p433_p4, %s2637_s17), 1  ;;  %2294 = vmatprep.subr.bf16.mxu1 %v2555_v22  ;;  %v2568_v51 = vld [vmem:[%s3102_s4 + $0x8] sm:$0xff]   ;;  %v2560_v53 = vld [vmem:[%s3100_s2 + $0xa0] sm:$0xff]   ;;  %v2564_v55 = vld [vmem:[%s3100_s2 + $0xb0] sm:$0xff]  }
   0xf   : > { %s2738_s27 = sshll.u32 %s3121_s17, 3  ;;  %v2562_v54 = vld [vmem:[%s3100_s2 + $0xa8] sm:$0xff]   ;;  %vm2854_vm12 = vmand %vm798_vm11, %vm789_vm10  ;;  %v2566_v57 = vld [vmem:[%s3100_s2 + $0xb8] sm:$0xff]  }
  0x10   : > { %s440_s13 = scalar_lea.vmem %s3098_s0, %s2738_s27  ;;  %s450_s16 = scalar_lea.vmem %s3099_s1, %s2738_s27  ;;  %2315 = vmatpush3.bf16.msra.mxu0 %v2542_v2  ;;  %v2569_v60 = vld [vmem:[%s3102_s4 + $0x10] sm:$0xff]   ;;  %v2570_v61 = vld [vmem:[%s3102_s4 + $0x18] sm:$0xff]   ;;  %v2571_v62 = vld [vmem:[%s3102_s4 + $0x20] sm:$0xff]  }
  0x11   : > { %v2754_v5 = vld [vmem:[%s440_s13] sm:$0xf]  ;;  %v2756_v6 = vld [vmem:[%s440_s13 + $0x4] sm:$0xf]  ;;  %2316 = vmatprep.subr.bf16.mxu0 %v2543_v3  ;;  %2295 = vmatpush3.bf16.msra.mxu1 %v2555_v22  ;;  %v2572_v63 = vld [vmem:[%s3102_s4 + $0x28] sm:$0xff]  }
  0x12   : > { %v467_v7 = vld [vmem:[%s450_s16] sm:$0xf]  ;;  %v1990_v8 = vcombine.low %v2754_v5, %v2754_v5  ;;  %v2550_v9 = vld [vmem:[%s450_s16 + $0x4] ss:$0 sps:$4 sm:$0xff]   ;;  %v1991_v12 = vcombine.low %v2756_v6, %v2756_v6  ;;  %2296 = vmatprep.subr.bf16.mxu1 %v2557_v26  ;;  %v2573_v0 = vld [vmem:[%s3102_s4 + $0x30] sm:$0xff]   ;;  %s460_s16 = scalar_lea.vmem %s3109_s11, %s2738_s27 }
  0x13   : > { %v2574_v1 = vld [vmem:[%s3102_s4 + $0x38] sm:$0xff]   ;;  %v2575_v2 = vld [vmem:[%s3102_s4 + $0x40] sm:$0xff]   ;;  %v2592_v4 = vld [vmem:[%s3104_s6 + $0x8] sm:$0xff]  }
  0x14   : > { %v481_v15 = vsel %vm478_vm0, %v467_v7, %v1990_v8  ;;  %2317 = vmatpush3.bf16.msra.mxu0 %v2543_v3  ;;  %v485_v20 = vsel %vm478_vm0, %v1991_v12, %v2550_v9  ;;  %v2591_v3 = vld [vmem:[%s3104_s6] sm:$0xff]   ;;  %v2593_v7 = vld [vmem:[%s3104_s6 + $0x10] sm:$0xff]   ;;  %v2594_v8 = vld [vmem:[%s3104_s6 + $0x18] sm:$0xff]  }
  0x15   : > { %2318 = vmatprep.subr.bf16.mxu0 %v2544_v13  ;;  %v538_v23 = vsel %vm536_vm5, %v481_v15, 0  ;;  %2326 = vmatprep.mubr.msk.bf16.mxu0 %vm536_vm5, %v481_v15  ;;  %v2784_v24 = vsel %vm2775_vm6, %v485_v20, 0  ;;  %v919_v16 = vld [vmem:[%s3101_s3] sm:$0x3]  ;;  %v2602_v38 = vld [vmem:[%s3104_s6 + $0x58] sm:$0xff]  }
  0x16   : > { %v564_v25 = vshrl.u32 %v538_v23, 16  ;;  %v567_v29 = vshll.u32 %v538_v23, 16  ;;  %v558_v30 = vshrl.u32 %v2784_v24, 16  ;;  %v570_v33 = vshll.u32 %v2784_v24, 16  ;;  %2297 = vmatpush3.bf16.msra.mxu1 %v2557_v26  ;;  %v2603_v56 = vld [vmem:[%s3104_s6 + $0x60] sm:$0xff]  }
  0x17   : > { %2298 = vmatprep.subr.bf16.mxu1 %v2559_v32 }
  0x18   : > { %2319 = vmatpush3.bf16.msra.mxu0 %v2544_v13  ;;  %v566_v28 = vrot.slane %v564_v25, 7  ;;  %v2800_v34 = vrot.slane %v567_v29, 1  ;;  %v560_v35 = vrot.slane %v558_v30, 7  ;;  %v792_v43 = vrot.slane %v570_v33, 1 }
  0x19   : > { %2320 = vmatprep.subr.bf16.mxu0 %v2545_v19  ;;  %v920_v13 = vlaneseq }
  0x1a   : > { %v569_v36 = vor.u32 %v567_v29, %v566_v28  ;;  %v791_v39 = vor.u32 %v2800_v34, %v564_v25  ;;  %2299 = vmatpush3.bf16.msra.mxu1 %v2559_v32  ;;  %v572_v49 = vor.u32 %v570_v33, %v560_v35  ;;  %v794_v58 = vor.u32 %v792_v43, %v558_v30 }
  0x1b   : > { %2300 = vmatprep.subr.bf16.mxu1 %v2561_v37  ;;  %v921_v14 = vshrl.u32 %v920_v13, 7  ;;  %v2617_v13 = vld [vmem:[%s3107_s9 + $0x10] sm:$0xff]  }
  0x1c   : > { %2321 = vmatpush3.bf16.msra.mxu0 %v2545_v19  ;;  %v578_v42 = vsel %vm2808_vm9, %v560_v35, %v569_v36  ;;  %v793_v46 = vsel %vm789_vm10, %v791_v39, %v792_v43  ;;  %v573_v52 = vsel %vm562_vm8, %v566_v28, %v572_v49  ;;  %v800_v59 = vsel %vm2854_vm12, %v794_v58, %v2800_v34  ;;  %v2581_v58 = vld [vmem:[%s3102_s4 + $0x70] sm:$0xff]  }
  0x1d   : > { %2322 = vmatprep.subr.bf16.mxu0 %v2546_v27  ;;  %2306 = vmatprep.mubr.bf16.mxu1 %v578_v42  ;;  %v2899_v15 = vsub.s32 0, %v921_v14  ;;  %v2904_v17 = vsub.s32 1, %v921_v14  ;;  %v2618_v14 = vld [vmem:[%s3107_s9 + $0x18] sm:$0xff]  }
  0x1e   : > { %2301 = vmatpush3.bf16.msra.mxu1 %v2561_v37 }
  0x1f   : > { %2302 = vmatprep.subr.bf16.mxu1 %v2563_v41  ;;  %v923_v18 = vrot.slane %v919_v16, %v2899_v15  ;;  %v931_v21 = vrot.slane %v919_v16, %v2904_v17  ;;  %v2619_v16 = vld [vmem:[%s3107_s9 + $0x20] sm:$0xff]  }
  0x20   : > { %2323 = vmatpush3.bf16.msra.mxu0 %v2546_v27 }
  0x21   : > { %2324 = vmatprep.subr.bf16.mxu0 %v2547_v31 }
  0x22   : > { %2303 = vmatpush3.bf16.msra.mxu1 %v2563_v41 }
  0x23   : > { %2304 = vmatprep.subr.bf16.mxu1 %v2565_v45 }
  0x24   : > { %2325 = vmatpush3.bf16.msra.mxu0 %v2547_v31  ;;  %v2650_v31 = vmov 0.0  }
  0x25   : > { %2330 = vmatprep.subr.bf16.mxu0 %v2551_v40 }
  0x26   : > { %2305 = vmatpush3.bf16.msra.mxu1 %v2565_v45 }
  0x27   : > { %2327 = vmatmul.mubr.msk.bf16.vlgmr.msra.gmra.mrb[0].mxu0 %vm2775_vm6, %v485_v20  ;;  %2350 = vmatprep.subr.bf16.mxu1 %v2567_v48 }
  0x28   : > { %2331 = vmatpush3.bf16.msra.mxu0 %v2551_v40  ;;  %2346 = vmatprep.mubr.bf16.mxu0 %v793_v46 }
  0x29   : > { %2332 = vmatprep.subr.bf16.mxu0 %v2554_v44  ;;  %2307 = vmatmul.mubr.bf16.vlgmr.msra.gmra.mrb[0].mxu1 %v573_v52 }
  0x2a   : > { %2351 = vmatpush3.bf16.msra.mxu1 %v2567_v48 }
  0x2b   : > { %2352 = vmatprep.subr.bf16.mxu1 %v2568_v51 }
  0x2c   : > { %2333 = vmatpush3.bf16.msra.mxu0 %v2554_v44 }
  0x2d   : > { %2334 = vmatprep.subr.bf16.mxu0 %v2556_v47 }
  0x2e   : > { %2353 = vmatpush3.bf16.msra.mxu1 %v2568_v51  ;;  %v2576_v51 = vld [vmem:[%s3102_s4 + $0x48] sm:$0xff]  }
  0x2f   : > { %2354 = vmatprep.subr.bf16.mxu1 %v2569_v60 }
  0x30   : > { %2335 = vmatpush3.bf16.msra.mxu0 %v2556_v47 }
  0x31   : > { %2336 = vmatprep.subr.bf16.mxu0 %v2558_v50 }
  0x32   : > { %2355 = vmatpush3.bf16.msra.mxu1 %v2569_v60  ;;  %v2583_v60 = vld [vmem:[%s3102_s4 + $0x80] sm:$0xff]  }
  0x33   : > { %2356 = vmatprep.subr.bf16.mxu1 %v2570_v61 }
  0x34   : > { %2337 = vmatpush3.bf16.msra.mxu0 %v2558_v50 }
  0x35   : > { %2338 = vmatprep.subr.bf16.mxu0 %v2560_v53 }
  0x36   : > { %2357 = vmatpush3.bf16.msra.mxu1 %v2570_v61  ;;  %v2584_v61 = vld [vmem:[%s3102_s4 + $0x88] sm:$0xff]  }
  0x37   : > { %2358 = vmatprep.subr.bf16.mxu1 %v2571_v62 }
  0x38   : > { %2339 = vmatpush3.bf16.msra.mxu0 %v2560_v53  ;;  %v2577_v53 = vld [vmem:[%s3102_s4 + $0x50] sm:$0xff]  }
  0x39   : > { %2340 = vmatprep.subr.bf16.mxu0 %v2562_v54 }
  0x3a   : > { %2359 = vmatpush3.bf16.msra.mxu1 %v2571_v62  ;;  %v2585_v62 = vld [vmem:[%s3102_s4 + $0x90] sm:$0xff]  }
  0x3b   : > { %2360 = vmatprep.subr.bf16.mxu1 %v2572_v63 }
  0x3c   : > { %2341 = vmatpush3.bf16.msra.mxu0 %v2562_v54  ;;  %v2578_v54 = vld [vmem:[%s3102_s4 + $0x58] sm:$0xff]  }
  0x3d   : > { %2342 = vmatprep.subr.bf16.mxu0 %v2564_v55 }
  0x3e   : > { %2361 = vmatpush3.bf16.msra.mxu1 %v2572_v63  ;;  %v2586_v63 = vld [vmem:[%s3102_s4 + $0x98] sm:$0xff]  }
  0x3f   : > { %2362 = vmatprep.subr.bf16.mxu1 %v2573_v0 }
  0x40   : > { %2343 = vmatpush3.bf16.msra.mxu0 %v2564_v55  ;;  %v2579_v55 = vld [vmem:[%s3102_s4 + $0x60] sm:$0xff]  }
  0x41   : > { %2344 = vmatprep.subr.bf16.mxu0 %v2566_v57 }
  0x42   : > { %2363 = vmatpush3.bf16.msra.mxu1 %v2573_v0  ;;  %v2587_v0 = vld [vmem:[%s3102_s4 + $0xa0] sm:$0xff]  }
  0x43   : > { %2364 = vmatprep.subr.bf16.mxu1 %v2574_v1 }
  0x44   : > { %2345 = vmatpush3.bf16.msra.mxu0 %v2566_v57  ;;  %v2580_v57 = vld [vmem:[%s3102_s4 + $0x68] sm:$0xff]  }
  0x45   : > { %2410 = vmatprep.subr.bf16.mxu0 %v2591_v3 }
  0x46   : > { %2365 = vmatpush3.bf16.msra.mxu1 %v2574_v1  ;;  %v2588_v1 = vld [vmem:[%s3102_s4 + $0xa8] sm:$0xff]  }
  0x47   : > { %2347 = vmatmul.mubr.bf16.vlgmr.msra.gmra.mrb[0].mxu0 %v800_v59  ;;  %2370 = vmatprep.subr.bf16.mxu1 %v2575_v2  ;;  %v2582_v59 = vld [vmem:[%s3102_s4 + $0x78] sm:$0xff]  }
  0x48   : > { %2411 = vmatpush3.bf16.msra.mxu0 %v2591_v3  ;;  %v2590_v3 = vld [vmem:[%s3102_s4 + $0xb8] sm:$0xff]  }
  0x49   : > { %2412 = vmatprep.subr.bf16.mxu0 %v2592_v4 }
  0x4c   : > { %2413 = vmatpush3.bf16.msra.mxu0 %v2592_v4  ;;  %v2595_v4 = vld [vmem:[%s3104_s6 + $0x20] sm:$0xff]  }
  0x4d   : > { %2414 = vmatprep.subr.bf16.mxu0 %v2593_v7 }
  0x50   : > { %2415 = vmatpush3.bf16.msra.mxu0 %v2593_v7  ;;  %v2596_v7 = vld [vmem:[%s3104_s6 + $0x28] sm:$0xff]  }
  0x51   : > { %2416 = vmatprep.subr.bf16.mxu0 %v2594_v8 }
  0x54   : > { %2417 = vmatpush3.bf16.msra.mxu0 %v2594_v8  ;;  %v2597_v8 = vld [vmem:[%s3104_s6 + $0x30] sm:$0xff]  }
  0x55   : > { %2418 = vmatprep.subr.bf16.mxu0 %v2595_v4 }
  0x58   : > { %2419 = vmatpush3.bf16.msra.mxu0 %v2595_v4  ;;  %v1724_v4 = vld [vmem:[%s3106_s8] sm:$0x3] }
  0x59   : > { %2420 = vmatprep.subr.bf16.mxu0 %v2596_v7 }
  0x5c   : > { %2421 = vmatpush3.bf16.msra.mxu0 %v2596_v7  ;;  %v1726_v7 = vunpack.c.l.bf16 %v2756_v6 }
  0x5d   : > { %2422 = vmatprep.subr.bf16.mxu0 %v2597_v8 }
  0x60   : > { %2423 = vmatpush3.bf16.msra.mxu0 %v2597_v8  ;;  %v1730_v8 = vrot.slane %v1724_v4, %v2899_v15 }
  0xfc   : > { %v2308_v9 = vpop.f32.mrb[0].mxu1 }
  0xfd   : > { %v677_v10 = vpop.f32.mrb[1].mxu1 }
  0xfe   : > { %v2309_v11 = vpop.f32.mrb[2].mxu1  ;;  %v2599_v10 = vld [vmem:[%s3104_s6 + $0x40] sm:$0xff]  }
  0xff   : > { %v680_v12 = vpop.f32.mrb[3].mxu1  ;;  %v2615_v11 = vld [vmem:[%s3107_s9] sm:$0xff]  }
 0x11a   : > { %v2348_v19 = vpop.f32.mrb[0].mxu0 }
 0x11b   : > { %v2490_v20 = vadd.f32 %v2348_v19, %v2308_v9  ;;  %v900_v22 = vpop.f32.mrb[1].mxu0  ;;  %v2598_v9 = vld [vmem:[%s3104_s6 + $0x38] sm:$0xff]  }
 0x11c   : > { %v2349_v23 = vpop.f32.mrb[2].mxu0  ;;  %2424 = vmatprep.subr.bf16.mxu0 %v2598_v9 }
 0x11d   : > { %v926_v24 = vmul.f32 %v2490_v20, %v923_v18  ;;  %v903_v25 = vpop.f32.mrb[3].mxu0  ;;  %2425 = vmatpush3.bf16.msra.mxu0 %v2598_v9  ;;  %v1711_v9 = vld [vmem:[%s3105_s7] sm:$0x3] }
 0x11e   : > { %v2491_v26 = vadd.f32 %v903_v25, %v680_v12  ;;  %2430 = vmatprep.subr.bf16.mxu0 %v2599_v10  ;;  %v2616_v12 = vld [vmem:[%s3107_s9 + $0x8] sm:$0xff]  }
 0x11f   : > { %v934_v27 = vadd.f32 %v931_v21, %v926_v24 }
 0x120   : > { %v925_v28 = vmul.f32 %v2491_v26, %v923_v18  ;;  %v1319_v18 = vld [vmem:[%s3103_s5] sm:$0x3] }
 0x121   : > { %v938_v29 = vmax.f32 %v934_v27, 0.0  ;;  %v1323_v19 = vrot.slane %v1319_v18, %v2899_v15  ;;  %v1331_v20 = vrot.slane %v1319_v18, %v2904_v17 }
 0x122   : > { %v933_v30 = vadd.f32 %v931_v21, %v925_v28 }
 0x123   : > { %v945_v32 = vpack.c.bf16 %v2650_v31, %v938_v29 }
 0x124   : > { %v937_v33 = vmax.f32 %v933_v30, 0.0 }
 0x125   : > { %v964_v34 = vshrl.u32 %v945_v32, 16  ;;  %v975_v35 = vshll.u32 %v945_v32, 16 }
 0x126   : > { %v944_v36 = vpack.c.bf16 %v937_v33, %v2650_v31 }
 0x127   : > { %v966_v37 = vrot.slane %v964_v34, 7  ;;  %v1194_v39 = vrot.slane %v975_v35, 1 }
 0x128   : > { %v969_v40 = vshrl.u32 %v944_v36, 16  ;;  %v972_v41 = vshll.u32 %v944_v36, 16 }
 0x129   : > { %v977_v42 = vor.u32 %v975_v35, %v966_v37  ;;  %v1196_v43 = vor.u32 %v1194_v39, %v964_v34 }
 0x12a   : > { %v971_v44 = vrot.slane %v969_v40, 7  ;;  %v1192_v45 = vrot.slane %v972_v41, 1 }
 0x12c   : > { %v974_v46 = vor.u32 %v972_v41, %v971_v44  ;;  %v978_v47 = vsel %vm562_vm8, %v971_v44, %v977_v42  ;;  %v1193_v48 = vor.u32 %v1192_v45, %v969_v40  ;;  %v1200_v49 = vsel %vm2854_vm12, %v1196_v43, %v1192_v45 }
 0x12e   : > { %v981_v50 = vsel %vm2808_vm9, %v966_v37, %v974_v46  ;;  %v1195_v52 = vsel %vm789_vm10, %v1193_v48, %v1194_v39 }
 0x12f   : > { %2366 = vmatprep.mubr.bf16.mxu1 %v981_v50  ;;  %v2600_v50 = vld [vmem:[%s3104_s6 + $0x48] sm:$0xff]  }
 0x130   : > { %2367 = vmatmul.mubr.bf16.vlgmr.msra.gmra.mrb[4].mxu1 %v978_v47 }
 0x131   : > { %2371 = vmatpush3.bf16.msra.mxu1 %v2575_v2  ;;  %2386 = vmatprep.mubr.bf16.mxu1 %v944_v36  ;;  %v2589_v2 = vld [vmem:[%s3102_s4 + $0xb0] sm:$0xff]  }
 0x132   : > { %2372 = vmatprep.subr.bf16.mxu1 %v2576_v51 }
 0x135   : > { %2373 = vmatpush3.bf16.msra.mxu1 %v2576_v51 }
 0x136   : > { %2374 = vmatprep.subr.bf16.mxu1 %v2577_v53 }
 0x139   : > { %2375 = vmatpush3.bf16.msra.mxu1 %v2577_v53  ;;  %v2604_v53 = vld [vmem:[%s3104_s6 + $0x68] sm:$0xff]  }
 0x13a   : > { %2376 = vmatprep.subr.bf16.mxu1 %v2578_v54 }
 0x13d   : > { %2377 = vmatpush3.bf16.msra.mxu1 %v2578_v54  ;;  %v2605_v54 = vld [vmem:[%s3104_s6 + $0x70] sm:$0xff]  }
 0x13e   : > { %2378 = vmatprep.subr.bf16.mxu1 %v2579_v55 }
 0x141   : > { %2379 = vmatpush3.bf16.msra.mxu1 %v2579_v55  ;;  %v2606_v55 = vld [vmem:[%s3104_s6 + $0x78] sm:$0xff]  }
 0x142   : > { %2380 = vmatprep.subr.bf16.mxu1 %v2580_v57 }
 0x145   : > { %2381 = vmatpush3.bf16.msra.mxu1 %v2580_v57  ;;  %v2607_v57 = vld [vmem:[%s3104_s6 + $0x80] sm:$0xff]  }
 0x146   : > { %2382 = vmatprep.subr.bf16.mxu1 %v2581_v58 }
 0x149   : > { %2383 = vmatpush3.bf16.msra.mxu1 %v2581_v58  ;;  %v2608_v58 = vld [vmem:[%s3104_s6 + $0x88] sm:$0xff]  }
 0x14a   : > { %2384 = vmatprep.subr.bf16.mxu1 %v2582_v59 }
 0x14d   : > { %2385 = vmatpush3.bf16.msra.mxu1 %v2582_v59  ;;  %v2609_v59 = vld [vmem:[%s3104_s6 + $0x90] sm:$0xff]  }
 0x14e   : > { %2390 = vmatprep.subr.bf16.mxu1 %v2583_v60 }
 0x150   : > { %2387 = vmatmul.mubr.bf16.vlgmr.msra.gmra.mrb[4].mxu1 %v945_v32 }
 0x151   : > { %2391 = vmatpush3.bf16.msra.mxu1 %v2583_v60  ;;  %2406 = vmatprep.mubr.bf16.mxu1 %v1195_v52  ;;  %v2601_v52 = vld [vmem:[%s3104_s6 + $0x50] sm:$0xff]   ;;  %v2610_v60 = vld [vmem:[%s3104_s6 + $0x98] sm:$0xff]  }
 0x152   : > { %2392 = vmatprep.subr.bf16.mxu1 %v2584_v61 }
 0x155   : > { %2393 = vmatpush3.bf16.msra.mxu1 %v2584_v61  ;;  %v2611_v61 = vld [vmem:[%s3104_s6 + $0xa0] sm:$0xff]  }
 0x156   : > { %2394 = vmatprep.subr.bf16.mxu1 %v2585_v62 }
 0x159   : > { %2395 = vmatpush3.bf16.msra.mxu1 %v2585_v62  ;;  %v2612_v62 = vld [vmem:[%s3104_s6 + $0xa8] sm:$0xff]  }
 0x15a   : > { %2396 = vmatprep.subr.bf16.mxu1 %v2586_v63 }
 0x15d   : > { %2397 = vmatpush3.bf16.msra.mxu1 %v2586_v63  ;;  %v2613_v63 = vld [vmem:[%s3104_s6 + $0xb0] sm:$0xff]  }
 0x15e   : > { %2398 = vmatprep.subr.bf16.mxu1 %v2587_v0 }
 0x161   : > { %2399 = vmatpush3.bf16.msra.mxu1 %v2587_v0  ;;  %v2614_v0 = vld [vmem:[%s3104_s6 + $0xb8] sm:$0xff]  }
 0x162   : > { %2400 = vmatprep.subr.bf16.mxu1 %v2588_v1 }
 0x165   : > { %2401 = vmatpush3.bf16.msra.mxu1 %v2588_v1  ;;  %v2620_v1 = vld [vmem:[%s3107_s9 + $0x28] sm:$0xff]  }
 0x166   : > { %2402 = vmatprep.subr.bf16.mxu1 %v2589_v2 }
 0x169   : > { %2403 = vmatpush3.bf16.msra.mxu1 %v2589_v2  ;;  %v2621_v2 = vld [vmem:[%s3107_s9 + $0x30] sm:$0xff]  }
 0x16a   : > { %2404 = vmatprep.subr.bf16.mxu1 %v2590_v3 }
 0x16d   : > { %2405 = vmatpush3.bf16.msra.mxu1 %v2590_v3  ;;  %v2622_v3 = vld [vmem:[%s3107_s9 + $0x38] sm:$0xff]  }
 0x16e   : > { %2470 = vmatprep.subr.bf16.mxu1 %v2650_v31 }
 0x170   : > { %2407 = vmatmul.mubr.bf16.vlgmr.msra.gmra.mrb[4].mxu1 %v1200_v49 }
 0x171   : > { %2486 = vmatprep.mubr.msk.bf16.mxu1 %vm2647_vm1, %v2650_v31  ;;  %2471 = vmatpush3.bf16.msra.mxu1 %v2615_v11  ;;  %v1732_v11 = vmul.f32 %v1730_v8, %v1726_v7 }
 0x172   : > { %2472 = vmatprep.subr.bf16.mxu1 %v2650_v31 }
 0x175   : > { %2473 = vmatpush3.bf16.msra.mxu1 %v2616_v12  ;;  %v1736_v12 = vrot.slane %v1724_v4, %v2904_v17 }
 0x176   : > { %2474 = vmatprep.subr.bf16.mxu1 %v2650_v31 }
 0x179   : > { %2475 = vmatpush3.bf16.msra.mxu1 %v2617_v13  ;;  %v1721_v13 = vrot.slane %v1711_v9, %v2904_v17 }
 0x17a   : > { %2476 = vmatprep.subr.bf16.mxu1 %v2650_v31 }
 0x17d   : > { %2477 = vmatpush3.bf16.msra.mxu1 %v2618_v14 }
 0x17e   : > { %2478 = vmatprep.subr.bf16.mxu1 %v2650_v31 }
 0x181   : > { %2479 = vmatpush3.bf16.msra.mxu1 %v2619_v16 }
 0x182   : > { %2480 = vmatprep.subr.bf16.mxu1 %v2650_v31 }
 0x185   : > { %2481 = vmatpush3.bf16.msra.mxu1 %v2620_v1 }
 0x186   : > { %2482 = vmatprep.subr.bf16.mxu1 %v2650_v31 }
 0x189   : > { %2483 = vmatpush3.bf16.msra.mxu1 %v2621_v2 }
 0x18a   : > { %2484 = vmatprep.subr.bf16.mxu1 %v2650_v31 }
 0x18d   : > { %2485 = vmatpush3.bf16.msra.mxu1 %v2622_v3 }
 0x243   : > { %v2408_v21 = vpop.f32.mrb[4].mxu1 }
 0x244   : > { %v1326_v22 = vmul.f32 %v2408_v21, %v1323_v19  ;;  %v1300_v23 = vpop.f32.mrb[5].mxu1 }
 0x245   : > { %v2409_v24 = vpop.f32.mrb[6].mxu1 }
 0x246   : > { %v1334_v25 = vadd.f32 %v1331_v20, %v1326_v22  ;;  %v1303_v26 = vpop.f32.mrb[7].mxu1 }
 0x247   : > { %v1325_v27 = vmul.f32 %v1323_v19, %v1303_v26  ;;  %v1738_v19 = vadd.f32 %v1736_v12, %v1732_v11 }
 0x248   : > { %v1338_v28 = vmax.f32 %v1334_v25, 0.0 }
 0x249   : > { %v1333_v29 = vadd.f32 %v1331_v20, %v1325_v27 }
 0x24a   : > { %v1345_v30 = vpack.c.bf16 %v2650_v31, %v1338_v28 }
 0x24b   : > { %v1337_v32 = vmax.f32 %v1333_v29, 0.0 }
 0x24c   : > { %v1375_v33 = vshll.u32 %v1345_v30, 16  ;;  %v1364_v34 = vshrl.u32 %v1345_v30, 16 }
 0x24d   : > { %v1344_v35 = vpack.c.bf16 %v1337_v32, %v2650_v31  ;;  %v1715_v31 = vrot.slane %v1711_v9, %v2899_v15 }
 0x24e   : > { %v1366_v36 = vrot.slane %v1364_v34, 7  ;;  %v1590_v37 = vrot.slane %v1375_v33, 1 }
 0x24f   : > { %v1369_v39 = vshrl.u32 %v1344_v35, 16  ;;  %v1372_v40 = vshll.u32 %v1344_v35, 16 }
 0x250   : > { %v1377_v41 = vor.u32 %v1375_v33, %v1366_v36  ;;  %v1592_v42 = vor.u32 %v1590_v37, %v1364_v34 }
 0x251   : > { %v1371_v43 = vrot.slane %v1369_v39, 7  ;;  %v1588_v44 = vrot.slane %v1372_v40, 1 }
 0x253   : > { %v1374_v45 = vor.u32 %v1372_v40, %v1371_v43  ;;  %v1378_v46 = vsel %vm562_vm8, %v1371_v43, %v1377_v41  ;;  %v1589_v47 = vor.u32 %v1588_v44, %v1369_v39  ;;  %v1596_v48 = vsel %vm2854_vm12, %v1592_v42, %v1588_v44 }
 0x255   : > { %v1381_v49 = vsel %vm2808_vm9, %v1366_v36, %v1374_v45  ;;  %v1591_v51 = vsel %vm789_vm10, %v1589_v47, %v1590_v37 }
 0x256   : > { %2426 = vmatprep.mubr.bf16.mxu0 %v1381_v49 }
 0x257   : > { %2427 = vmatmul.mubr.bf16.vlgmr.msra.gmra.mrb[4].mxu0 %v1378_v46 }
 0x258   : > { %2431 = vmatpush3.bf16.msra.mxu0 %v2599_v10  ;;  %2446 = vmatprep.mubr.bf16.mxu0 %v1344_v35  ;;  %v1725_v10 = vunpack.c.l.bf16 %v2754_v5 }
 0x259   : > { %2432 = vmatprep.subr.bf16.mxu0 %v2600_v50 }
 0x25a   : > { %v1731_v16 = vmul.f32 %v1730_v8, %v1725_v10 }
 0x25c   : > { %2433 = vmatpush3.bf16.msra.mxu0 %v2600_v50  ;;  %v1737_v24 = vadd.f32 %v1736_v12, %v1731_v16 }
 0x25d   : > { %2434 = vmatprep.subr.bf16.mxu0 %v2601_v52 }
 0x260   : > { %2435 = vmatpush3.bf16.msra.mxu0 %v2601_v52 }
 0x261   : > { %2436 = vmatprep.subr.bf16.mxu0 %v2602_v38 }
 0x264   : > { %2437 = vmatpush3.bf16.msra.mxu0 %v2602_v38 }
 0x265   : > { %2438 = vmatprep.subr.bf16.mxu0 %v2603_v56 }
 0x268   : > { %2439 = vmatpush3.bf16.msra.mxu0 %v2603_v56 }
 0x269   : > { %2440 = vmatprep.subr.bf16.mxu0 %v2604_v53 }
 0x26c   : > { %2441 = vmatpush3.bf16.msra.mxu0 %v2604_v53 }
 0x26d   : > { %2442 = vmatprep.subr.bf16.mxu0 %v2605_v54 }
 0x270   : > { %2443 = vmatpush3.bf16.msra.mxu0 %v2605_v54 }
 0x271   : > { %2444 = vmatprep.subr.bf16.mxu0 %v2606_v55 }
 0x274   : > { %2445 = vmatpush3.bf16.msra.mxu0 %v2606_v55 }
 0x275   : > { %2450 = vmatprep.subr.bf16.mxu0 %v2607_v57 }
 0x277   : > { %2447 = vmatmul.mubr.bf16.vlgmr.msra.gmra.mrb[4].mxu0 %v1345_v30  ;;  %v1743_v30 = vld [vmem:[%s3108_s10] sm:$0x3] }
 0x278   : > { %2451 = vmatpush3.bf16.msra.mxu0 %v2607_v57  ;;  %2466 = vmatprep.mubr.bf16.mxu0 %v1591_v51  ;;  %v1853_v32 = vrot.slane %v1743_v30, %v2899_v15  ;;  %v1859_v33 = vrot.slane %v1743_v30, %v2904_v17 }
 0x279   : > { %2452 = vmatprep.subr.bf16.mxu0 %v2608_v58 }
 0x27c   : > { %2453 = vmatpush3.bf16.msra.mxu0 %v2608_v58 }
 0x27d   : > { %2454 = vmatprep.subr.bf16.mxu0 %v2609_v59 }
 0x280   : > { %2455 = vmatpush3.bf16.msra.mxu0 %v2609_v59 }
 0x281   : > { %2456 = vmatprep.subr.bf16.mxu0 %v2610_v60 }
 0x284   : > { %2457 = vmatpush3.bf16.msra.mxu0 %v2610_v60 }
 0x285   : > { %2458 = vmatprep.subr.bf16.mxu0 %v2611_v61 }
 0x288   : > { %2459 = vmatpush3.bf16.msra.mxu0 %v2611_v61 }
 0x289   : > { %2460 = vmatprep.subr.bf16.mxu0 %v2612_v62 }
 0x28c   : > { %2461 = vmatpush3.bf16.msra.mxu0 %v2612_v62 }
 0x28d   : > { %2462 = vmatprep.subr.bf16.mxu0 %v2613_v63 }
 0x290   : > { %2463 = vmatpush3.bf16.msra.mxu0 %v2613_v63 }
 0x291   : > { %2464 = vmatprep.subr.bf16.mxu0 %v2614_v0 }
 0x294   : > { %2465 = vmatpush3.bf16.msra.mxu0 %v2614_v0 }
 0x297   : > { %2467 = vmatmul.mubr.bf16.vlgmr.msra.gmra.mrb[4].mxu0 %v1596_v48 }
 0x36a   : > { %v2468_v14 = vpop.f32.mrb[4].mxu0 }
 0x36b   : > { %v1717_v18 = vmul.f32 %v2468_v14, %v1715_v31  ;;  %v1696_v6 = vpop.f32.mrb[5].mxu0 }
 0x36c   : > { %v2469_v20 = vpop.f32.mrb[6].mxu0 }
 0x36d   : > { %v1723_v21 = vadd.f32 %v1721_v13, %v1717_v18  ;;  %v1698_v22 = vpop.f32.mrb[7].mxu0 }
 0x36e   : > { %v1716_v23 = vmul.f32 %v1715_v31, %v1698_v22 }
 0x36f   : > { %v1740_v25 = vadd.f32 %v1738_v19, %v1723_v21 }
 0x370   : > { %v1722_v26 = vadd.f32 %v1721_v13, %v1716_v23 }
 0x371   : > { %v1742_v27 = vmax.f32 %v1740_v25, 0.0 }
 0x372   : > { %v1739_v5 = vadd.f32 %v1737_v24, %v1722_v26 }
 0x374   : > { %v1741_v28 = vmax.f32 %v1739_v5, 0.0 }
 0x376   : > { %v1744_v29 = vpack.c.bf16 %v1742_v27, %v1741_v28 }
 0x378   : > { %2487 = vmatmul.mubr.bf16.vlgmr.msra.gmra.mrb[8].mxu1 %v1744_v29 }
 0x44b   : > { %v1843_v34 = vpop.f32.mrb[8].mxu1 }
 0x44c   : > { %v1854_v35 = vmul.f32 %v1853_v32, %v1843_v34  ;;  %v2488_v36 = vpop.f32.mrb[9].mxu1 }
 0x44d   : > { %v1846_v37 = vpop.f32.mrb[10].mxu1 }
 0x44e   : > { %v1860_v39 = vadd.f32 %v1859_v33, %v1854_v35  ;;  %v1855_v40 = vmul.f32 %v1853_v32, %v1846_v37  ;;  %v2489_v41 = vpop.f32.mrb[11].mxu1 }
 0x450   : > { %v1861_v42 = vadd.f32 %v1859_v33, %v1855_v40  ;;  %v1862_v43 = vmax.f32 %v1860_v39, 0.0 }
 0x452   : > { %v1863_v44 = vmax.f32 %v1861_v42, 0.0 }
 0x454   : > { %v2189_v45 = vpack.c.bf16 %v1863_v44, %v1862_v43 }
 0x456   : > { %2190 = vst [vmem:[%s460_s16] sm:$0xff] %v2189_v45  }
 0x457 PF: > { %s21_s19 = sadd.s32 1, %s2645_s19   ;;  %s3116_s17 = smov %s2641_s18 }
 0x458   : > { %p18_p5 = scmp.ge.s32.totalorder %s21_s19, 4   ;;  %s3117_s18 = smov %s3119_s20 }
 0x45a   :  { %20 = sbr.rel (!%p18_p5) target bundleno = 2 (0x2), region = 103 }

// kernel: _convblock_impl.4
= control target key start
LH: loop header
LB: loop body
LE: loop exit
PB: predicated region body
PF: predicated region fallthrough
CT: control target
= control target key end

     0   :  { %s2665_s13 = smov 0   ;;  %s2667_s14 = smov 0   ;;  %s3046_s0 = inlined_call_operand.vmem [shape: bf16[2,16,128], index: 0, kind: input, shape index: {}]   ;;  %s3047_s1 = inlined_call_operand.vmem [shape: bf16[2,16,128], index: 1, kind: input, shape index: {}]   ;;  %s3048_s2 = inlined_call_operand.vmem [shape: bf16[3,128,128], index: 2, kind: input, shape index: {}]   ;;  %s3049_s3 = inlined_call_operand.vmem [shape: f32[2,128], index: 3, kind: input, shape index: {}]   ;;  %s3050_s4 = inlined_call_operand.vmem [shape: bf16[3,128,128], index: 4, kind: input, shape index: {}]   ;;  %s3051_s5 = inlined_call_operand.vmem [shape: f32[2,128], index: 5, kind: input, shape index: {}]   ;;  %s3052_s6 = inlined_call_operand.vmem [shape: bf16[3,128,128], index: 6, kind: input, shape index: {}]   ;;  %s3053_s7 = inlined_call_operand.vmem [shape: f32[2,128], index: 7, kind: input, shape index: {}]   ;;  %s3054_s8 = inlined_call_operand.vmem [shape: bf16[1,128,128], index: 8, kind: input, shape index: {}]   ;;  %s3055_s9 = inlined_call_operand.vmem [shape: f32[2,128], index: 9, kind: input, shape index: {}]   ;;  %s3056_s10 = inlined_call_operand.vmem [shape: bf16[2,16,128], index: 10, kind: output, shape index: {}]  }
   0x1   :  { %s2669_s15 = smov 0  }
   0x2 LB: > { %s32_s16 = sadd.s32 1, %s2600_s14  ;;  %p1940_p0 = scmp.ge.s32.totalorder %s2604_s15, 1  ;;  %s2604_s15 = sphi %s2669_s15, %s20_s15   ;;  %s2600_s14 = sphi %s2667_s14, %s3064_s14   ;;  %s2596_s13 = sphi %s2665_s13, %s3063_s13  }
   0x3   : > { %p34_p1 = scmp.ge.s32.totalorder %s32_s16, 2  ;;  %p350_p2 = scmp.lt.s32.totalorder %s2604_s15, 3 }
   0x5   : > { %s3066_s16 = smov (%p34_p1, %s32_s16), 0  ;;  %p351_p3 = pnand %p1940_p0, %p350_p2 }
   0x6   : > { %v2498_v0 = vld [vmem:[%s3048_s2 + $0x40] sm:$0xff] (!%p351_p3)   ;;  %p406_p4 = scmp.lt.s32.totalorder (!%p351_p3), %s2596_s13, 1  ;;  %v2499_v1 = vld [vmem:[%s3048_s2 + $0x48] sm:$0xff] (!%p351_p3)   ;;  %v2500_v2 = vld [vmem:[%s3048_s2 + $0x50] sm:$0xff] (!%p351_p3)   ;;  %vm451_vm0 = vcmask (!%p351_p3), 1043456   ;;  %vm2606_vm1 = vmmov (!%p351_p3), 0  }
   0x7   : > { %354 = sbr.rel (%p351_p3) target bundleno = 889 (0x379), region = 60  ;;  %2268 = vmatprep.subr.bf16.mxu0 (!%p351_p3), %v2498_v0  ;;  %v2501_v3 = vld [vmem:[%s3048_s2 + $0x58] sm:$0xff] (!%p351_p3)   ;;  %v2506_v4 = vld [vmem:[%s3048_s2] sm:$0xff] (!%p351_p3)   ;;  %vm495_vm2 = vmpackc.low (!%p351_p3), %vm2606_vm1, %vm2606_vm1  ;;  %vm2607_vm3 = vmmov (!%p351_p3), 1   ;;  %v2608_v11 = vmov (!%p351_p3), 0   ;;  %vm549_vm8 = vcmask (!%p351_p3), 1040384  }
   0x8   : > { %2269 = vmatpush3.bf16.msra.mxu0 (!%p351_p3), %v2498_v0  ;;  %2248 = vmatprep.subr.bf16.mxu1 (!%p351_p3), %v2506_v4  ;;  %vm496_vm4 = vmpackc.low (!%p351_p3), %vm2607_vm3, %vm2607_vm3  ;;  %v499_v12 = vsel (!%p351_p3), %vm495_vm2, 65537, %v2608_v11  ;;  %v2502_v14 = vld [vmem:[%s3048_s2 + $0x60] sm:$0xff] (!%p351_p3)   ;;  %v2511_v19 = vld [vmem:[%s3048_s2 + $0x8] sm:$0xff] (!%p351_p3)   ;;  %vm535_vm5 = vsmask.f32 (!%p351_p3), 256  ;;  %vm771_vm11 = vcmask (!%p351_p3), 1047552  }
   0x9   : > { %2270 = vmatprep.subr.bf16.mxu0 (!%p351_p3), %v2499_v1  ;;  %2249 = vmatpush3.bf16.msra.mxu1 (!%p351_p3), %v2506_v4  ;;  %v500_v15 = vsel (!%p351_p3), %vm496_vm4, 65537, %v2608_v11  ;;  %v2503_v20 = vld [vmem:[%s3048_s2 + $0x68] sm:$0xff] (!%p351_p3)   ;;  %v2514_v23 = vld [vmem:[%s3048_s2 + $0x10] sm:$0xff] (!%p351_p3)   ;;  %v2516_v29 = vld [vmem:[%s3048_s2 + $0x18] sm:$0xff] (!%p351_p3)   ;;  %vm762_vm10 = vsmask.f32 (!%p351_p3), 7424 }
   0xa   : > { %v1954_v17 = vcombine.low (!%p351_p3), %v499_v12, %v500_v15  ;;  %v1955_v18 = vcombine.low (!%p351_p3), %v500_v15, %v499_v12  ;;  %2250 = vmatprep.subr.bf16.mxu1 (!%p351_p3), %v2511_v19  ;;  %v2504_v30 = vld [vmem:[%s3048_s2 + $0x70] sm:$0xff] (!%p351_p3)   ;;  %vm2750_vm9 = vmand (!%p351_p3), %vm549_vm8, %vm535_vm5  ;;  %v2518_v35 = vld [vmem:[%s3048_s2 + $0x20] sm:$0xff] (!%p351_p3)   ;;  %v893_v15 = vlaneseq (!%p351_p3) }
   0xb   : > { %v2505_v36 = vld [vmem:[%s3048_s2 + $0x78] sm:$0xff] (!%p351_p3)   ;;  %v2520_v40 = vld [vmem:[%s3048_s2 + $0x28] sm:$0xff] (!%p351_p3)   ;;  %v2510_v41 = vld [vmem:[%s3048_s2 + $0x80] sm:$0xff] (!%p351_p3)  }
   0xc   : > { %2271 = vmatpush3.bf16.msra.mxu0 (!%p351_p3), %v2499_v1  ;;  %vm509_vm6 = vcmp.ne.s16.totalorder (!%p351_p3), %v1954_v17, 0  ;;  %vm2731_vm7 = vcmp.ne.s16.totalorder (!%p351_p3), %v1955_v18, 0  ;;  %v2522_v43 = vld [vmem:[%s3048_s2 + $0x30] sm:$0xff] (!%p351_p3)   ;;  %v2513_v45 = vld [vmem:[%s3048_s2 + $0x88] sm:$0xff] (!%p351_p3)   ;;  %v2524_v46 = vld [vmem:[%s3048_s2 + $0x38] sm:$0xff] (!%p351_p3)  }
   0xd   : > { %2272 = vmatprep.subr.bf16.mxu0 (!%p351_p3), %v2500_v2  ;;  %2251 = vmatpush3.bf16.msra.mxu1 (!%p351_p3), %v2511_v19  ;;  %v2515_v48 = vld [vmem:[%s3048_s2 + $0x90] sm:$0xff] (!%p351_p3)   ;;  %v2526_v49 = vld [vmem:[%s3050_s4] sm:$0xff] (!%p351_p3)   ;;  %v2517_v51 = vld [vmem:[%s3048_s2 + $0x98] sm:$0xff] (!%p351_p3)  }
   0xe   : > { %s3068_s13 = smov (!%p406_p4, %s2596_s13), 1  ;;  %2252 = vmatprep.subr.bf16.mxu1 %v2514_v23  ;;  %v2527_v52 = vld [vmem:[%s3050_s4 + $0x8] sm:$0xff]   ;;  %v2519_v54 = vld [vmem:[%s3048_s2 + $0xa0] sm:$0xff]   ;;  %v2523_v56 = vld [vmem:[%s3048_s2 + $0xb0] sm:$0xff]  }
   0xf   : > { %s2692_s23 = sshll.u32 %s3068_s13, 3  ;;  %v2521_v55 = vld [vmem:[%s3048_s2 + $0xa8] sm:$0xff]   ;;  %vm2807_vm12 = vmand %vm771_vm11, %vm762_vm10  ;;  %v2525_v58 = vld [vmem:[%s3048_s2 + $0xb8] sm:$0xff]  }
  0x10   : > { %s413_s28 = scalar_lea.vmem %s3046_s0, %s2692_s23  ;;  %s423_s11 = scalar_lea.vmem %s3047_s1, %s2692_s23  ;;  %2273 = vmatpush3.bf16.msra.mxu0 %v2500_v2  ;;  %v2528_v61 = vld [vmem:[%s3050_s4 + $0x10] sm:$0xff]   ;;  %v2529_v62 = vld [vmem:[%s3050_s4 + $0x18] sm:$0xff]   ;;  %v2530_v63 = vld [vmem:[%s3050_s4 + $0x20] sm:$0xff]  }
  0x11   : > { %v2708_v5 = vld [vmem:[%s413_s28] sm:$0xf]  ;;  %v2710_v6 = vld [vmem:[%s413_s28 + $0x4] sm:$0xf]  ;;  %2274 = vmatprep.subr.bf16.mxu0 %v2501_v3  ;;  %2253 = vmatpush3.bf16.msra.mxu1 %v2514_v23  ;;  %v2531_v0 = vld [vmem:[%s3050_s4 + $0x28] sm:$0xff]   ;;  %s433_s13 = scalar_lea.vmem %s3056_s10, %s2692_s23 }
  0x12   : > { %v440_v7 = vld [vmem:[%s423_s11] sm:$0xf]  ;;  %v1947_v8 = vcombine.low %v2708_v5, %v2708_v5  ;;  %v2508_v9 = vld [vmem:[%s423_s11 + $0x4] ss:$0 sps:$4 sm:$0xff]   ;;  %v2126_v10 = vcombine.low %v2708_v5, %v2710_v6  ;;  %v1948_v13 = vcombine.low %v2710_v6, %v2710_v6  ;;  %2254 = vmatprep.subr.bf16.mxu1 %v2516_v29  ;;  %v2532_v1 = vld [vmem:[%s3050_s4 + $0x30] sm:$0xff]  }
  0x13   : > { %v2533_v2 = vld [vmem:[%s3050_s4 + $0x38] sm:$0xff]   ;;  %v2550_v4 = vld [vmem:[%s3052_s6] sm:$0xff]  }
  0x14   : > { %v454_v16 = vsel %vm451_vm0, %v440_v7, %v1947_v8  ;;  %2275 = vmatpush3.bf16.msra.mxu0 %v2501_v3  ;;  %v458_v21 = vsel %vm451_vm0, %v1948_v13, %v2508_v9  ;;  %v2534_v3 = vld [vmem:[%s3050_s4 + $0x40] sm:$0xff]   ;;  %v2551_v7 = vld [vmem:[%s3052_s6 + $0x8] sm:$0xff]   ;;  %v2552_v8 = vld [vmem:[%s3052_s6 + $0x10] sm:$0xff]  }
  0x15   : > { %2276 = vmatprep.subr.bf16.mxu0 %v2502_v14  ;;  %v511_v24 = vsel %vm509_vm6, %v454_v16, 0  ;;  %2284 = vmatprep.mubr.msk.bf16.mxu0 %vm509_vm6, %v454_v16  ;;  %v2740_v25 = vsel %vm2731_vm7, %v458_v21, 0  ;;  %v2553_v9 = vld [vmem:[%s3052_s6 + $0x18] sm:$0xff]   ;;  %v894_v16 = vshrl.u32 %v893_v15, 7  ;;  %v892_v18 = vld [vmem:[%s3049_s3] sm:$0x3] }
  0x16   : > { %v537_v26 = vshrl.u32 %v511_v24, 16  ;;  %v540_v27 = vshll.u32 %v511_v24, 16  ;;  %v531_v28 = vshrl.u32 %v2740_v25, 16  ;;  %v543_v39 = vshll.u32 %v2740_v25, 16  ;;  %2255 = vmatpush3.bf16.msra.mxu1 %v2516_v29  ;;  %v2568_v15 = vld [vmem:[%s3054_s8 + $0x8] sm:$0xff]   ;;  %v2561_v32 = vld [vmem:[%s3052_s6 + $0x58] sm:$0xff]  }
  0x17   : > { %2256 = vmatprep.subr.bf16.mxu1 %v2518_v35  ;;  %v2851_v17 = vsub.s32 0, %v894_v16  ;;  %v2856_v19 = vsub.s32 1, %v894_v16  ;;  %v2570_v16 = vld [vmem:[%s3054_s8 + $0x10] sm:$0xff]   ;;  %v2562_v57 = vld [vmem:[%s3052_s6 + $0x60] sm:$0xff]  }
  0x18   : > { %2277 = vmatpush3.bf16.msra.mxu0 %v2502_v14  ;;  %v539_v31 = vrot.slane %v537_v26, 7  ;;  %v533_v33 = vrot.slane %v531_v28, 7  ;;  %v763_v38 = vrot.slane %v540_v27, 1  ;;  %v765_v44 = vrot.slane %v543_v39, 1 }
  0x19   : > { %2278 = vmatprep.subr.bf16.mxu0 %v2503_v20  ;;  %v904_v23 = vrot.slane %v892_v18, %v2856_v19 }
  0x1a   : > { %v542_v34 = vor.u32 %v540_v27, %v539_v31  ;;  %v764_v42 = vor.u32 %v763_v38, %v537_v26  ;;  %2257 = vmatpush3.bf16.msra.mxu1 %v2518_v35  ;;  %v545_v50 = vor.u32 %v543_v39, %v533_v33  ;;  %v767_v59 = vor.u32 %v765_v44, %v531_v28 }
  0x1b   : > { %2258 = vmatprep.subr.bf16.mxu1 %v2520_v40 }
  0x1c   : > { %2279 = vmatpush3.bf16.msra.mxu0 %v2503_v20  ;;  %v551_v37 = vsel %vm2750_vm9, %v533_v33, %v542_v34  ;;  %v766_v47 = vsel %vm762_vm10, %v764_v42, %v765_v44  ;;  %v546_v53 = vsel %vm535_vm5, %v539_v31, %v545_v50  ;;  %v773_v60 = vsel %vm2807_vm12, %v767_v59, %v763_v38  ;;  %v2539_v59 = vld [vmem:[%s3050_s4 + $0x68] sm:$0xff]  }
  0x1d   : > { %2280 = vmatprep.subr.bf16.mxu0 %v2504_v30  ;;  %2264 = vmatprep.mubr.bf16.mxu1 %v551_v37  ;;  %v896_v20 = vrot.slane %v892_v18, %v2851_v17  ;;  %v2609_v34 = vmov 0.0   ;;  %v2572_v18 = vld [vmem:[%s3054_s8 + $0x18] sm:$0xff]  }
  0x1e   : > { %2259 = vmatpush3.bf16.msra.mxu1 %v2520_v40 }
  0x1f   : > { %2260 = vmatprep.subr.bf16.mxu1 %v2522_v43 }
  0x20   : > { %2281 = vmatpush3.bf16.msra.mxu0 %v2504_v30 }
  0x21   : > { %2282 = vmatprep.subr.bf16.mxu0 %v2505_v36 }
  0x22   : > { %2261 = vmatpush3.bf16.msra.mxu1 %v2522_v43 }
  0x23   : > { %2262 = vmatprep.subr.bf16.mxu1 %v2524_v46 }
  0x24   : > { %2283 = vmatpush3.bf16.msra.mxu0 %v2505_v36 }
  0x25   : > { %2288 = vmatprep.subr.bf16.mxu0 %v2510_v41 }
  0x26   : > { %2263 = vmatpush3.bf16.msra.mxu1 %v2524_v46 }
  0x27   : > { %2285 = vmatmul.mubr.msk.bf16.vlgmr.msra.gmra.mrb[0].mxu0 %vm2731_vm7, %v458_v21  ;;  %2308 = vmatprep.subr.bf16.mxu1 %v2526_v49 }
  0x28   : > { %2289 = vmatpush3.bf16.msra.mxu0 %v2510_v41  ;;  %2304 = vmatprep.mubr.bf16.mxu0 %v766_v47 }
  0x29   : > { %2290 = vmatprep.subr.bf16.mxu0 %v2513_v45  ;;  %2265 = vmatmul.mubr.bf16.vlgmr.msra.gmra.mrb[0].mxu1 %v546_v53  ;;  %v2535_v53 = vld [vmem:[%s3050_s4 + $0x48] sm:$0xff]  }
  0x2a   : > { %2309 = vmatpush3.bf16.msra.mxu1 %v2526_v49 }
  0x2b   : > { %2310 = vmatprep.subr.bf16.mxu1 %v2527_v52 }
  0x2c   : > { %2291 = vmatpush3.bf16.msra.mxu0 %v2513_v45 }
  0x2d   : > { %2292 = vmatprep.subr.bf16.mxu0 %v2515_v48 }
  0x2e   : > { %2311 = vmatpush3.bf16.msra.mxu1 %v2527_v52 }
  0x2f   : > { %2312 = vmatprep.subr.bf16.mxu1 %v2528_v61 }
  0x30   : > { %2293 = vmatpush3.bf16.msra.mxu0 %v2515_v48 }
  0x31   : > { %2294 = vmatprep.subr.bf16.mxu0 %v2517_v51 }
  0x32   : > { %2313 = vmatpush3.bf16.msra.mxu1 %v2528_v61  ;;  %v2541_v61 = vld [vmem:[%s3050_s4 + $0x78] sm:$0xff]  }
  0x33   : > { %2314 = vmatprep.subr.bf16.mxu1 %v2529_v62 }
  0x34   : > { %2295 = vmatpush3.bf16.msra.mxu0 %v2517_v51 }
  0x35   : > { %2296 = vmatprep.subr.bf16.mxu0 %v2519_v54 }
  0x36   : > { %2315 = vmatpush3.bf16.msra.mxu1 %v2529_v62  ;;  %v2542_v62 = vld [vmem:[%s3050_s4 + $0x80] sm:$0xff]  }
  0x37   : > { %2316 = vmatprep.subr.bf16.mxu1 %v2530_v63 }
  0x38   : > { %2297 = vmatpush3.bf16.msra.mxu0 %v2519_v54 }
  0x39   : > { %2298 = vmatprep.subr.bf16.mxu0 %v2521_v55 }
  0x3a   : > { %2317 = vmatpush3.bf16.msra.mxu1 %v2530_v63  ;;  %v2543_v63 = vld [vmem:[%s3050_s4 + $0x88] sm:$0xff]  }
  0x3b   : > { %2318 = vmatprep.subr.bf16.mxu1 %v2531_v0 }
  0x3c   : > { %2299 = vmatpush3.bf16.msra.mxu0 %v2521_v55  ;;  %v2536_v55 = vld [vmem:[%s3050_s4 + $0x50] sm:$0xff]  }
  0x3d   : > { %2300 = vmatprep.subr.bf16.mxu0 %v2523_v56 }
  0x3e   : > { %2319 = vmatpush3.bf16.msra.mxu1 %v2531_v0  ;;  %v2544_v0 = vld [vmem:[%s3050_s4 + $0x90] sm:$0xff]  }
  0x3f   : > { %2320 = vmatprep.subr.bf16.mxu1 %v2532_v1 }
  0x40   : > { %2301 = vmatpush3.bf16.msra.mxu0 %v2523_v56  ;;  %v2537_v56 = vld [vmem:[%s3050_s4 + $0x58] sm:$0xff]  }
  0x41   : > { %2302 = vmatprep.subr.bf16.mxu0 %v2525_v58 }
  0x42   : > { %2321 = vmatpush3.bf16.msra.mxu1 %v2532_v1  ;;  %v2545_v1 = vld [vmem:[%s3050_s4 + $0x98] sm:$0xff]  }
  0x43   : > { %2322 = vmatprep.subr.bf16.mxu1 %v2533_v2 }
  0x44   : > { %2303 = vmatpush3.bf16.msra.mxu0 %v2525_v58  ;;  %v2538_v58 = vld [vmem:[%s3050_s4 + $0x60] sm:$0xff]  }
  0x45   : > { %2368 = vmatprep.subr.bf16.mxu0 %v2550_v4 }
  0x46   : > { %2323 = vmatpush3.bf16.msra.mxu1 %v2533_v2  ;;  %v2546_v2 = vld [vmem:[%s3050_s4 + $0xa0] sm:$0xff]  }
  0x47   : > { %2305 = vmatmul.mubr.bf16.vlgmr.msra.gmra.mrb[0].mxu0 %v773_v60  ;;  %2328 = vmatprep.subr.bf16.mxu1 %v2534_v3  ;;  %v2540_v60 = vld [vmem:[%s3050_s4 + $0x70] sm:$0xff]  }
  0x48   : > { %2369 = vmatpush3.bf16.msra.mxu0 %v2550_v4  ;;  %v2548_v4 = vld [vmem:[%s3050_s4 + $0xb0] sm:$0xff]  }
  0x49   : > { %2370 = vmatprep.subr.bf16.mxu0 %v2551_v7 }
  0x4c   : > { %2371 = vmatpush3.bf16.msra.mxu0 %v2551_v7  ;;  %v2549_v7 = vld [vmem:[%s3050_s4 + $0xb8] sm:$0xff]  }
  0x4d   : > { %2372 = vmatprep.subr.bf16.mxu0 %v2552_v8 }
  0x50   : > { %2373 = vmatpush3.bf16.msra.mxu0 %v2552_v8  ;;  %v2554_v8 = vld [vmem:[%s3052_s6 + $0x20] sm:$0xff]  }
  0x51   : > { %2374 = vmatprep.subr.bf16.mxu0 %v2553_v9 }
  0x54   : > { %2375 = vmatpush3.bf16.msra.mxu0 %v2553_v9  ;;  %v2555_v9 = vld [vmem:[%s3052_s6 + $0x28] sm:$0xff]  }
  0x55   : > { %2376 = vmatprep.subr.bf16.mxu0 %v2554_v8 }
  0x58   : > { %2377 = vmatpush3.bf16.msra.mxu0 %v2554_v8 }
  0x59   : > { %2378 = vmatprep.subr.bf16.mxu0 %v2555_v9 }
  0x5c   : > { %2379 = vmatpush3.bf16.msra.mxu0 %v2555_v9  ;;  %v1804_v9 = vld [vmem:[%s3055_s9] sm:$0x3] }
  0xfc   : > { %v2266_v11 = vpop.f32.mrb[0].mxu1 }
  0xfd   : > { %v650_v12 = vpop.f32.mrb[1].mxu1 }
  0xfe   : > { %v2267_v13 = vpop.f32.mrb[2].mxu1  ;;  %v2557_v12 = vld [vmem:[%s3052_s6 + $0x38] sm:$0xff]  }
  0xff   : > { %v653_v14 = vpop.f32.mrb[3].mxu1  ;;  %v2558_v13 = vld [vmem:[%s3052_s6 + $0x40] sm:$0xff]  }
 0x11a   : > { %v2306_v21 = vpop.f32.mrb[0].mxu0 }
 0x11b   : > { %v2448_v22 = vadd.f32 %v2306_v21, %v2266_v11  ;;  %v873_v24 = vpop.f32.mrb[1].mxu0  ;;  %v2556_v11 = vld [vmem:[%s3052_s6 + $0x30] sm:$0xff]   ;;  %v2576_v21 = vld [vmem:[%s3054_s8 + $0x28] sm:$0xff]  }
 0x11c   : > { %v2307_v25 = vpop.f32.mrb[2].mxu0  ;;  %2380 = vmatprep.subr.bf16.mxu0 %v2556_v11  ;;  %v1292_v24 = vld [vmem:[%s3051_s5] sm:$0x3] }
 0x11d   : > { %v899_v26 = vmul.f32 %v2448_v22, %v896_v20  ;;  %v876_v27 = vpop.f32.mrb[3].mxu0  ;;  %2381 = vmatpush3.bf16.msra.mxu0 %v2556_v11  ;;  %v2578_v22 = vld [vmem:[%s3054_s8 + $0x30] sm:$0xff]   ;;  %v1296_v25 = vrot.slane %v1292_v24, %v2851_v17  ;;  %v1808_v11 = vrot.slane %v1804_v9, %v2851_v17 }
 0x11e   : > { %v2449_v28 = vadd.f32 %v876_v27, %v653_v14  ;;  %2382 = vmatprep.subr.bf16.mxu0 %v2557_v12  ;;  %v2566_v14 = vld [vmem:[%s3054_s8] sm:$0xff]  }
 0x11f   : > { %v907_v29 = vadd.f32 %v904_v23, %v899_v26  ;;  %v1304_v26 = vrot.slane %v1292_v24, %v2856_v19 }
 0x120   : > { %v898_v30 = vmul.f32 %v2449_v28, %v896_v20  ;;  %v2574_v20 = vld [vmem:[%s3054_s8 + $0x20] sm:$0xff]  }
 0x121   : > { %v911_v31 = vmax.f32 %v907_v29, 0.0  ;;  %2383 = vmatpush3.bf16.msra.mxu0 %v2557_v12  ;;  %v1684_v12 = vld [vmem:[%s3053_s7] sm:$0x3] }
 0x122   : > { %v906_v33 = vadd.f32 %v904_v23, %v898_v30  ;;  %2388 = vmatprep.subr.bf16.mxu0 %v2558_v13  ;;  %v2580_v23 = vld [vmem:[%s3054_s8 + $0x38] sm:$0xff]  }
 0x123   : > { %v918_v35 = vpack.c.bf16 %v2609_v34, %v911_v31 }
 0x124   : > { %v910_v36 = vmax.f32 %v906_v33, 0.0 }
 0x125   : > { %v937_v37 = vshrl.u32 %v918_v35, 16  ;;  %v948_v38 = vshll.u32 %v918_v35, 16 }
 0x126   : > { %v917_v39 = vpack.c.bf16 %v910_v36, %v2609_v34 }
 0x127   : > { %v939_v40 = vrot.slane %v937_v37, 7  ;;  %v1167_v41 = vrot.slane %v948_v38, 1 }
 0x128   : > { %v942_v42 = vshrl.u32 %v917_v39, 16  ;;  %v945_v43 = vshll.u32 %v917_v39, 16 }
 0x129   : > { %v950_v44 = vor.u32 %v948_v38, %v939_v40  ;;  %v1169_v45 = vor.u32 %v1167_v41, %v937_v37 }
 0x12a   : > { %v944_v46 = vrot.slane %v942_v42, 7  ;;  %v1165_v47 = vrot.slane %v945_v43, 1 }
 0x12c   : > { %v947_v48 = vor.u32 %v945_v43, %v944_v46  ;;  %v951_v49 = vsel %vm535_vm5, %v944_v46, %v950_v44  ;;  %v1166_v50 = vor.u32 %v1165_v47, %v942_v42  ;;  %v1173_v51 = vsel %vm2807_vm12, %v1169_v45, %v1165_v47 }
 0x12e   : > { %v954_v52 = vsel %vm2750_vm9, %v939_v40, %v947_v48  ;;  %v1168_v54 = vsel %vm762_vm10, %v1166_v50, %v1167_v41 }
 0x12f   : > { %2324 = vmatprep.mubr.bf16.mxu1 %v954_v52 }
 0x130   : > { %2325 = vmatmul.mubr.bf16.vlgmr.msra.gmra.mrb[4].mxu1 %v951_v49 }
 0x131   : > { %2329 = vmatpush3.bf16.msra.mxu1 %v2534_v3  ;;  %2344 = vmatprep.mubr.bf16.mxu1 %v917_v39  ;;  %v2547_v3 = vld [vmem:[%s3050_s4 + $0xa8] sm:$0xff]  }
 0x132   : > { %2330 = vmatprep.subr.bf16.mxu1 %v2535_v53 }
 0x135   : > { %2331 = vmatpush3.bf16.msra.mxu1 %v2535_v53 }
 0x136   : > { %2332 = vmatprep.subr.bf16.mxu1 %v2536_v55 }
 0x139   : > { %2333 = vmatpush3.bf16.msra.mxu1 %v2536_v55  ;;  %v2563_v55 = vld [vmem:[%s3052_s6 + $0x68] sm:$0xff]  }
 0x13a   : > { %2334 = vmatprep.subr.bf16.mxu1 %v2537_v56 }
 0x13d   : > { %2335 = vmatpush3.bf16.msra.mxu1 %v2537_v56  ;;  %v2564_v56 = vld [vmem:[%s3052_s6 + $0x70] sm:$0xff]  }
 0x13e   : > { %2336 = vmatprep.subr.bf16.mxu1 %v2538_v58 }
 0x141   : > { %2337 = vmatpush3.bf16.msra.mxu1 %v2538_v58  ;;  %v2565_v58 = vld [vmem:[%s3052_s6 + $0x78] sm:$0xff]  }
 0x142   : > { %2338 = vmatprep.subr.bf16.mxu1 %v2539_v59 }
 0x145   : > { %2339 = vmatpush3.bf16.msra.mxu1 %v2539_v59  ;;  %v2567_v59 = vld [vmem:[%s3052_s6 + $0x80] sm:$0xff]  }
 0x146   : > { %2340 = vmatprep.subr.bf16.mxu1 %v2540_v60 }
 0x149   : > { %2341 = vmatpush3.bf16.msra.mxu1 %v2540_v60  ;;  %v2569_v60 = vld [vmem:[%s3052_s6 + $0x88] sm:$0xff]  }
 0x14a   : > { %2342 = vmatprep.subr.bf16.mxu1 %v2541_v61 }
 0x14d   : > { %2343 = vmatpush3.bf16.msra.mxu1 %v2541_v61  ;;  %v2571_v61 = vld [vmem:[%s3052_s6 + $0x90] sm:$0xff]  }
 0x14e   : > { %2348 = vmatprep.subr.bf16.mxu1 %v2542_v62 }
 0x150   : > { %2345 = vmatmul.mubr.bf16.vlgmr.msra.gmra.mrb[4].mxu1 %v918_v35 }
 0x151   : > { %2349 = vmatpush3.bf16.msra.mxu1 %v2542_v62  ;;  %2364 = vmatprep.mubr.bf16.mxu1 %v1168_v54  ;;  %v2560_v54 = vld [vmem:[%s3052_s6 + $0x50] sm:$0xff]   ;;  %v2573_v62 = vld [vmem:[%s3052_s6 + $0x98] sm:$0xff]  }
 0x152   : > { %2350 = vmatprep.subr.bf16.mxu1 %v2543_v63 }
 0x155   : > { %2351 = vmatpush3.bf16.msra.mxu1 %v2543_v63  ;;  %v2575_v63 = vld [vmem:[%s3052_s6 + $0xa0] sm:$0xff]  }
 0x156   : > { %2352 = vmatprep.subr.bf16.mxu1 %v2544_v0 }
 0x159   : > { %2353 = vmatpush3.bf16.msra.mxu1 %v2544_v0  ;;  %v2577_v0 = vld [vmem:[%s3052_s6 + $0xa8] sm:$0xff]  }
 0x15a   : > { %2354 = vmatprep.subr.bf16.mxu1 %v2545_v1 }
 0x15d   : > { %2355 = vmatpush3.bf16.msra.mxu1 %v2545_v1  ;;  %v2579_v1 = vld [vmem:[%s3052_s6 + $0xb0] sm:$0xff]  }
 0x15e   : > { %2356 = vmatprep.subr.bf16.mxu1 %v2546_v2 }
 0x161   : > { %2357 = vmatpush3.bf16.msra.mxu1 %v2546_v2  ;;  %v2581_v2 = vld [vmem:[%s3052_s6 + $0xb8] sm:$0xff]  }
 0x162   : > { %2358 = vmatprep.subr.bf16.mxu1 %v2547_v3 }
 0x165   : > { %2359 = vmatpush3.bf16.msra.mxu1 %v2547_v3 }
 0x166   : > { %2360 = vmatprep.subr.bf16.mxu1 %v2548_v4 }
 0x169   : > { %2361 = vmatpush3.bf16.msra.mxu1 %v2548_v4 }
 0x16a   : > { %2362 = vmatprep.subr.bf16.mxu1 %v2549_v7 }
 0x16d   : > { %2363 = vmatpush3.bf16.msra.mxu1 %v2549_v7 }
 0x16e   : > { %2428 = vmatprep.subr.bf16.mxu1 %v2609_v34 }
 0x170   : > { %2365 = vmatmul.mubr.bf16.vlgmr.msra.gmra.mrb[4].mxu1 %v1173_v51 }
 0x171   : > { %2444 = vmatprep.mubr.msk.bf16.mxu1 %vm2606_vm1, %v2609_v34  ;;  %2429 = vmatpush3.bf16.msra.mxu1 %v2566_v14  ;;  %v1688_v14 = vrot.slane %v1684_v12, %v2851_v17 }
 0x172   : > { %2430 = vmatprep.subr.bf16.mxu1 %v2609_v34 }
 0x175   : > { %2431 = vmatpush3.bf16.msra.mxu1 %v2568_v15 }
 0x176   : > { %2432 = vmatprep.subr.bf16.mxu1 %v2609_v34 }
 0x179   : > { %2433 = vmatpush3.bf16.msra.mxu1 %v2570_v16  ;;  %v1694_v16 = vrot.slane %v1684_v12, %v2856_v19 }
 0x17a   : > { %2434 = vmatprep.subr.bf16.mxu1 %v2609_v34 }
 0x17d   : > { %2435 = vmatpush3.bf16.msra.mxu1 %v2572_v18 }
 0x17e   : > { %2436 = vmatprep.subr.bf16.mxu1 %v2609_v34 }
 0x181   : > { %2437 = vmatpush3.bf16.msra.mxu1 %v2574_v20 }
 0x182   : > { %2438 = vmatprep.subr.bf16.mxu1 %v2609_v34 }
 0x185   : > { %2439 = vmatpush3.bf16.msra.mxu1 %v2576_v21 }
 0x186   : > { %2440 = vmatprep.subr.bf16.mxu1 %v2609_v34 }
 0x189   : > { %2441 = vmatpush3.bf16.msra.mxu1 %v2578_v22 }
 0x18a   : > { %2442 = vmatprep.subr.bf16.mxu1 %v2609_v34 }
 0x18d   : > { %2443 = vmatpush3.bf16.msra.mxu1 %v2580_v23 }
 0x190   : > { %2445 = vmatmul.mubr.bf16.vlgmr.msra.gmra.mrb[8].mxu1 %v2126_v10 }
 0x243   : > { %v2366_v27 = vpop.f32.mrb[4].mxu1 }
 0x244   : > { %v1299_v28 = vmul.f32 %v2366_v27, %v1296_v25  ;;  %v1273_v29 = vpop.f32.mrb[5].mxu1 }
 0x245   : > { %v2367_v30 = vpop.f32.mrb[6].mxu1 }
 0x246   : > { %v1307_v31 = vadd.f32 %v1304_v26, %v1299_v28  ;;  %v1276_v33 = vpop.f32.mrb[7].mxu1 }
 0x247   : > { %v1298_v35 = vmul.f32 %v1296_v25, %v1276_v33 }
 0x248   : > { %v1311_v36 = vmax.f32 %v1307_v31, 0.0 }
 0x249   : > { %v1306_v37 = vadd.f32 %v1304_v26, %v1298_v35 }
 0x24a   : > { %v1318_v5 = vpack.c.bf16 %v2609_v34, %v1311_v36 }
 0x24b   : > { %v1310_v6 = vmax.f32 %v1306_v37, 0.0 }
 0x24c   : > { %v1348_v10 = vshll.u32 %v1318_v5, 16  ;;  %v1337_v38 = vshrl.u32 %v1318_v5, 16 }
 0x24d   : > { %v1317_v39 = vpack.c.bf16 %v1310_v6, %v2609_v34  ;;  %v2559_v34 = vld [vmem:[%s3052_s6 + $0x48] sm:$0xff]  }
 0x24e   : > { %v1339_v40 = vrot.slane %v1337_v38, 7  ;;  %v1563_v41 = vrot.slane %v1348_v10, 1 }
 0x24f   : > { %v1342_v42 = vshrl.u32 %v1317_v39, 16  ;;  %v1345_v43 = vshll.u32 %v1317_v39, 16 }
 0x250   : > { %v1350_v44 = vor.u32 %v1348_v10, %v1339_v40  ;;  %v1565_v45 = vor.u32 %v1563_v41, %v1337_v38 }
 0x251   : > { %v1344_v46 = vrot.slane %v1342_v42, 7  ;;  %v1561_v47 = vrot.slane %v1345_v43, 1 }
 0x253   : > { %v1347_v48 = vor.u32 %v1345_v43, %v1344_v46  ;;  %v1351_v49 = vsel %vm535_vm5, %v1344_v46, %v1350_v44  ;;  %v1562_v50 = vor.u32 %v1561_v47, %v1342_v42  ;;  %v1569_v51 = vsel %vm2807_vm12, %v1565_v45, %v1561_v47 }
 0x255   : > { %v1354_v52 = vsel %vm2750_vm9, %v1339_v40, %v1347_v48  ;;  %v1564_v53 = vsel %vm762_vm10, %v1562_v50, %v1563_v41 }
 0x256   : > { %2384 = vmatprep.mubr.bf16.mxu0 %v1354_v52 }
 0x257   : > { %2385 = vmatmul.mubr.bf16.vlgmr.msra.gmra.mrb[4].mxu0 %v1351_v49 }
 0x258   : > { %2389 = vmatpush3.bf16.msra.mxu0 %v2558_v13  ;;  %2404 = vmatprep.mubr.bf16.mxu0 %v1317_v39  ;;  %v1814_v13 = vrot.slane %v1804_v9, %v2856_v19 }
 0x259   : > { %2390 = vmatprep.subr.bf16.mxu0 %v2559_v34 }
 0x25c   : > { %2391 = vmatpush3.bf16.msra.mxu0 %v2559_v34 }
 0x25d   : > { %2392 = vmatprep.subr.bf16.mxu0 %v2560_v54 }
 0x260   : > { %2393 = vmatpush3.bf16.msra.mxu0 %v2560_v54 }
 0x261   : > { %2394 = vmatprep.subr.bf16.mxu0 %v2561_v32 }
 0x263   : > { %v1797_v3 = vpop.f32.mrb[8].mxu1 }
 0x264   : > { %2395 = vmatpush3.bf16.msra.mxu0 %v2561_v32  ;;  %v2446_v4 = vpop.f32.mrb[9].mxu1  ;;  %v1809_v23 = vmul.f32 %v1808_v11, %v1797_v3 }
 0x265   : > { %2396 = vmatprep.subr.bf16.mxu0 %v2562_v57  ;;  %v1800_v7 = vpop.f32.mrb[10].mxu1 }
 0x266   : > { %v2447_v8 = vpop.f32.mrb[11].mxu1  ;;  %v1810_v15 = vmul.f32 %v1808_v11, %v1800_v7  ;;  %v1815_v29 = vadd.f32 %v1814_v13, %v1809_v23 }
 0x268   : > { %2397 = vmatpush3.bf16.msra.mxu0 %v2562_v57  ;;  %v1816_v21 = vadd.f32 %v1814_v13, %v1810_v15 }
 0x269   : > { %2398 = vmatprep.subr.bf16.mxu0 %v2563_v55 }
 0x26c   : > { %2399 = vmatpush3.bf16.msra.mxu0 %v2563_v55 }
 0x26d   : > { %2400 = vmatprep.subr.bf16.mxu0 %v2564_v56 }
 0x270   : > { %2401 = vmatpush3.bf16.msra.mxu0 %v2564_v56 }
 0x271   : > { %2402 = vmatprep.subr.bf16.mxu0 %v2565_v58 }
 0x274   : > { %2403 = vmatpush3.bf16.msra.mxu0 %v2565_v58 }
 0x275   : > { %2408 = vmatprep.subr.bf16.mxu0 %v2567_v59 }
 0x277   : > { %2405 = vmatmul.mubr.bf16.vlgmr.msra.gmra.mrb[4].mxu0 %v1318_v5 }
 0x278   : > { %2409 = vmatpush3.bf16.msra.mxu0 %v2567_v59  ;;  %2424 = vmatprep.mubr.bf16.mxu0 %v1564_v53 }
 0x279   : > { %2410 = vmatprep.subr.bf16.mxu0 %v2569_v60 }
 0x27c   : > { %2411 = vmatpush3.bf16.msra.mxu0 %v2569_v60 }
 0x27d   : > { %2412 = vmatprep.subr.bf16.mxu0 %v2571_v61 }
 0x280   : > { %2413 = vmatpush3.bf16.msra.mxu0 %v2571_v61 }
 0x281   : > { %2414 = vmatprep.subr.bf16.mxu0 %v2573_v62 }
 0x284   : > { %2415 = vmatpush3.bf16.msra.mxu0 %v2573_v62 }
 0x285   : > { %2416 = vmatprep.subr.bf16.mxu0 %v2575_v63 }
 0x288   : > { %2417 = vmatpush3.bf16.msra.mxu0 %v2575_v63 }
 0x289   : > { %2418 = vmatprep.subr.bf16.mxu0 %v2577_v0 }
 0x28c   : > { %2419 = vmatpush3.bf16.msra.mxu0 %v2577_v0 }
 0x28d   : > { %2420 = vmatprep.subr.bf16.mxu0 %v2579_v1 }
 0x290   : > { %2421 = vmatpush3.bf16.msra.mxu0 %v2579_v1 }
 0x291   : > { %2422 = vmatprep.subr.bf16.mxu0 %v2581_v2 }
 0x294   : > { %2423 = vmatpush3.bf16.msra.mxu0 %v2581_v2 }
 0x297   : > { %2425 = vmatmul.mubr.bf16.vlgmr.msra.gmra.mrb[4].mxu0 %v1569_v51 }
 0x36a   : > { %v2426_v18 = vpop.f32.mrb[4].mxu0 }
 0x36b   : > { %v1690_v20 = vmul.f32 %v2426_v18, %v1688_v14  ;;  %v1669_v22 = vpop.f32.mrb[5].mxu0 }
 0x36c   : > { %v2427_v24 = vpop.f32.mrb[6].mxu0 }
 0x36d   : > { %v1696_v25 = vadd.f32 %v1694_v16, %v1690_v20  ;;  %v1671_v26 = vpop.f32.mrb[7].mxu0 }
 0x36e   : > { %v1689_v27 = vmul.f32 %v1688_v14, %v1671_v26 }
 0x36f   : > { %v1818_v28 = vadd.f32 %v1816_v21, %v1696_v25 }
 0x370   : > { %v1695_v30 = vadd.f32 %v1694_v16, %v1689_v27 }
 0x371   : > { %v1820_v33 = vmax.f32 %v1818_v28, 0.0 }
 0x372   : > { %v1817_v31 = vadd.f32 %v1815_v29, %v1695_v30 }
 0x374   : > { %v1819_v35 = vmax.f32 %v1817_v31, 0.0 }
 0x376   : > { %v2147_v17 = vpack.c.bf16 %v1820_v33, %v1819_v35 }
 0x378   : > { %2148 = vst [vmem:[%s433_s13] sm:$0xff] %v2147_v17  }
 0x379 PF: > { %s20_s15 = sadd.s32 1, %s2604_s15   ;;  %s3063_s13 = smov %s2600_s14 }
 0x37a   : > { %p17_p5 = scmp.ge.s32.totalorder %s20_s15, 4   ;;  %s3064_s14 = smov %s3066_s16 }
 0x37c   :  { %19 = sbr.rel (!%p17_p5) target bundleno = 2 (0x2), region = 99 }

// kernel: _convblock_impl.3
= control target key start
LH: loop header
LB: loop body
LE: loop exit
PB: predicated region body
PF: predicated region fallthrough
CT: control target
= control target key end

     0   :  { %15 = vsyncpa [#allocation3], 0  ;;  %s3065_s0 = inlined_call_operand.vmem [shape: bf16[2,16,128], index: 0, kind: input, shape index: {}]   ;;  %s3066_s1 = inlined_call_operand.vmem [shape: bf16[2,16,128], index: 1, kind: input, shape index: {}]   ;;  %s3067_s2 = inlined_call_operand.hbm [shape: bf16[3,128,128], index: 2, kind: input, shape index: {}]   ;;  %s3068_s3 = inlined_call_operand.vmem [shape: f32[2,128], index: 3, kind: input, shape index: {}]   ;;  %s3069_s4 = inlined_call_operand.hbm [shape: bf16[3,128,128], index: 4, kind: input, shape index: {}]   ;;  %s3070_s5 = inlined_call_operand.vmem [shape: f32[2,128], index: 5, kind: input, shape index: {}]   ;;  %s3071_s6 = inlined_call_operand.hbm [shape: bf16[3,128,128], index: 6, kind: input, shape index: {}]   ;;  %s3072_s7 = inlined_call_operand.vmem [shape: f32[2,128], index: 7, kind: input, shape index: {}]   ;;  %s3073_s8 = inlined_call_operand.vmem [shape: bf16[1,128,128], index: 8, kind: input, shape index: {}]   ;;  %s3074_s9 = inlined_call_operand.vmem [shape: f32[2,128], index: 9, kind: input, shape index: {}]   ;;  %s3075_s10 = inlined_call_operand.vmem [shape: bf16[2,16,128], index: 10, kind: output, shape index: {}]  }
   0x1   :  { %16 = vsyncpa [#allocation5], 0  ;;  %s2780_s13 = smov 0   ;;  %s2782_s14 = smov 0  }
   0x2   :  { %s2784_s15 = smov 0  }
   0x3 LB: > { %3081 = sst [smem:[#allocation9_spill]] %s2710_s14  ;;  %s2011_s16 = sadd.s32 4294967295, %s2714_s15   ;;  %s2714_s15 = sphi %s2784_s15, %s22_s15   ;;  %s2710_s14 = sphi %s2782_s14, %s3100_s14   ;;  %s2706_s13 = sphi %s2780_s13, %s3099_s13  }
   0x4   : > { %3082 = sst [smem:[#allocation10_spill]] %s2714_s15  ;;  %p2013_p0 = scmp.ge.s32.totalorder %s2714_s15, 1 }
   0x5   : > { %p291_p1 = scmp.lt.s32.totalorder %s2714_s15, 3  ;;  %p2798_p2 = scmp.eq.s32.totalorder %s2011_s16, 0 }
   0x6   : > { %s2716_s19 = smov [#allocation4]   ;;  %s34_s22 = sadd.s32 1, %s2710_s14 }
   0x7   : > { %s3083_s17 = scalar_select %p2798_p2, 1, 0 }
   0x8   : > { %p2802_p3 = pnand %p2013_p0, %p291_p1  ;;  %s319_s20 = sshll.u32 %s2716_s19, 4  ;;  %s2806_s20 = int_to_ptr.vmem [resolvable:$true] %s319_s20 }
   0x9   : > { %p2817_p6 = scmp.ge.s32.totalorder %s34_s22, 2  ;;  %s2717_s24 = smov [#allocation2]  }
   0xa   : > { %s3084_s18 = scalar_select %p2802_p3, 1, 0 }
   0xb   : > { %p2467_p4 = pneg %p2802_p3  ;;  %s303_s25 = sshll.u32 %s2717_s24, 4  ;;  %s304_s25 = int_to_ptr.vmem [resolvable:$true] %s303_s25 }
   0xc   : > { %s2600_s28 = scalar_lea.hbm %s3069_s4, 3072 }
   0xd   : > { %p2812_p5 = pnand %p2798_p2, %p2467_p4  ;;  %p2601_p7 = scmp.ne.s32.totalorder %s3069_s4, %s2600_s28 }
   0xe   : > { %p2607_p11 = scmp.lt.u32.totalorder %s2600_s28, %s3069_s4 }
   0xf   : > { %p2829_p8 = pneg %p2812_p5 }
  0x11   : > { %p2603_p9 = pnand %p2829_p8, %p2601_p7 }
  0x13   : > { %p2604_p10 = pneg %p2603_p9 }
  0x15   : > { %p2609_p12 = pnand %p2607_p11, %p2604_p10 }
  0x17   : > { %2612 = shalt.err (!%p2609_p12)
}
  0x18   : > { %s2613_s19 = scalar_lea.vmem %s2806_s20, 3072  ;;  %p2621_p4 = scmp.lt.s32.totalorder %s2806_s20, %s2806_s20 }
  0x19   : > { %p2614_p13 = scmp.ne.s32.totalorder %s2806_s20, %s2613_s19  ;;  %p2622_p2 = scmp.lt.s32.totalorder %s2613_s19, %s2613_s19 }
  0x1b   : > { %p2616_p0 = pnand %p2614_p13, %p2829_p8  ;;  %p2623_p7 = por %p2622_p2, %p2621_p4 }
  0x1d   : > { %p2617_p1 = pneg %p2616_p0 }
  0x1f   : > { %p2624_p9 = pnand %p2623_p7, %p2617_p1 }
  0x21   : > { %2627 = shalt.err (!%p2624_p9)
}
  0x22   : > { %s2718_s24 = smov 64   ;;  %s2719_s26 = smov 4  }
  0x23   : > { %2473 = dma.hbm_to_vmem [thread:$0]  (!%p2812_p5), %s3069_s4, 3072, %s2806_s20, [#allocation5], %s2718_s24, %s2718_s24, %s2719_s26  }
  0x24   : > { %s3102_s22 = smov (%p2817_p6, %s34_s22), 0  ;;  %s2628_s12 = scalar_lea.hbm %s3067_s2, 3072 }
  0x25   : > { %p2629_p2 = scmp.ne.s32.totalorder %s3067_s2, %s2628_s12  ;;  %p2635_p12 = scmp.lt.u32.totalorder %s2628_s12, %s3067_s2 }
  0x27   : > { %p2631_p10 = pnand %p2629_p2, %p2829_p8 }
  0x29   : > { %p2632_p11 = pneg %p2631_p10 }
  0x2b   : > { %p2637_p13 = pnand %p2635_p12, %p2632_p11 }
  0x2d   : > { %2640 = shalt.err (!%p2637_p13)
}
  0x2e   : > { %s2641_s20 = scalar_lea.vmem %s304_s25, 3072  ;;  %p2649_p4 = scmp.lt.s32.totalorder %s304_s25, %s304_s25 }
  0x2f   : > { %p2642_p6 = scmp.ne.s32.totalorder %s304_s25, %s2641_s20  ;;  %p2650_p7 = scmp.lt.s32.totalorder %s2641_s20, %s2641_s20 }
  0x31   : > { %p2644_p0 = pnand %p2642_p6, %p2829_p8  ;;  %p2651_p9 = por %p2650_p7, %p2649_p4 }
  0x33   : > { %p2645_p1 = pneg %p2644_p0 }
  0x35   : > { %p2652_p3 = pnand %p2651_p9, %p2645_p1 }
  0x37   : > { %2655 = shalt.err (!%p2652_p3)
}
  0x38   : > { %2470 = dma.hbm_to_vmem [thread:$0]  (!%p2812_p5), %s3067_s2, 3072, %s304_s25, [#allocation3], %s2718_s24, %s2718_s24, %s2719_s26  }
  0x39   : > { %s2720_s23 = smov [#allocation6]   ;;  %s2656_s30 = scalar_lea.hbm %s3071_s6, 3072 }
  0x3a   : > { %s335_s27 = sshll.u32 %s2720_s23, 4  ;;  %p2657_p3 = scmp.ne.s32.totalorder %s3071_s6, %s2656_s30  ;;  %s336_s27 = int_to_ptr.vmem [resolvable:$true] %s335_s27 }
  0x3b   : > { %p2663_p11 = scmp.lt.u32.totalorder %s2656_s30, %s3071_s6 }
  0x3c   : > { %p2659_p2 = pnand %p2657_p3, %p2829_p8 }
  0x3e   : > { %p2660_p10 = pneg %p2659_p2 }
  0x40   : > { %p2665_p12 = pnand %p2663_p11, %p2660_p10 }
  0x42   : > { %2668 = shalt.err (!%p2665_p12)
}
  0x43   : > { %s2669_s25 = scalar_lea.vmem %s336_s27, 3072  ;;  %p2677_p1 = scmp.lt.s32.totalorder %s336_s27, %s336_s27 }
  0x44   : > { %p2670_p13 = scmp.ne.s32.totalorder %s336_s27, %s2669_s25  ;;  %p2678_p4 = scmp.lt.s32.totalorder %s2669_s25, %s2669_s25 }
  0x46   : > { %p2672_p6 = pnand %p2670_p13, %p2829_p8  ;;  %p2679_p7 = por %p2678_p4, %p2677_p1 }
  0x48   : > { %p2673_p0 = pneg %p2672_p6 }
  0x4a   : > { %p2680_p9 = pnand %p2679_p7, %p2673_p0 }
  0x4c   : > { %2683 = shalt.err (!%p2680_p9)
}
  0x4d   : > { %2476 = dma.hbm_to_vmem [thread:$0]  (!%p2812_p5), %s3071_s6, 3072, %s336_s27, [#allocation5], %s2718_s24, %s2718_s24, %s2719_s26  }
  0x4e   : > { %p3088_p3 = scmp.ne.s32.totalorder %s3084_s18, 0 }
  0x4f   : > { %p3089_p8 = scmp.ne.s32.totalorder (!%p3088_p3), %s3083_s17, 0 }
  0x50   : > { %386 = sbr.rel (%p3088_p3) target bundleno = 973 (0x3cd), region = 60 }
  0x57   : > { %2697 = dma.done.wait (%p3089_p8), [#allocation3], 3072  }
  0x58   : > { %2699 = vsyncadd (%p3089_p8), [#allocation3], 4294964224 }
  0x59   : > { %2701 = dma.done.wait (%p3089_p8), [#allocation5], 6144  }
  0x5a   : > { %2703 = vsyncadd (%p3089_p8), [#allocation5], 4294961152  ;;  %p450_p2 = scmp.lt.s32.totalorder %s2706_s13, 1  ;;  %vm2721_vm0 = vmmov 0   ;;  %vm2722_vm2 = vmmov 1   ;;  %v2516_v0 = vld [vmem:[#allocation2 + $0x40] sm:$0xff]  }
  0x5b   : > { %vm539_vm1 = vmpackc.low %vm2721_vm0, %vm2721_vm0  ;;  %v2723_v1 = vmov 0   ;;  %v2517_v3 = vld [vmem:[#allocation2 + $0x48] sm:$0xff]   ;;  %2253 = vmatprep.subr.bf16.mxu0 %v2516_v0  ;;  %v2518_v5 = vld [vmem:[#allocation2 + $0x50] sm:$0xff]   ;;  %vm579_vm4 = vsmask.f32 256  ;;  %vm495_vm5 = vcmask 1043456  }
  0x5c   : > { %vm540_vm3 = vmpackc.low %vm2722_vm2, %vm2722_vm2  ;;  %s3104_s13 = smov (!%p450_p2, %s2706_s13), 1  ;;  %v543_v2 = vsel %vm539_vm1, 65537, %v2723_v1  ;;  %2254 = vmatpush3.bf16.msra.mxu0 %v2516_v0  ;;  %v2519_v7 = vld [vmem:[#allocation2 + $0x58] sm:$0xff]   ;;  %v2524_v8 = vld [vmem:[#allocation2] sm:$0xff]   ;;  %vm593_vm7 = vcmask 1040384   ;;  %vm815_vm11 = vcmask 1047552  }
  0x5d   : > { %v544_v4 = vsel %vm540_vm3, 65537, %v2723_v1  ;;  %s2913_s18 = sshll.u32 %s3104_s13, 3  ;;  %2255 = vmatprep.subr.bf16.mxu0 %v2517_v3  ;;  %2233 = vmatprep.subr.bf16.mxu1 %v2524_v8  ;;  %v2520_v18 = vld [vmem:[#allocation2 + $0x60] sm:$0xff]   ;;  %v2529_v20 = vld [vmem:[#allocation2 + $0x8] sm:$0xff]   ;;  %v2532_v25 = vld [vmem:[#allocation2 + $0x10] sm:$0xff]  }
  0x5e   : > { %v2035_v6 = vcombine.low %v543_v2, %v544_v4  ;;  %s457_s11 = scalar_lea.vmem %s3065_s0, %s2913_s18  ;;  %s467_s23 = scalar_lea.vmem %s3066_s1, %s2913_s18  ;;  %v2036_v9 = vcombine.low %v544_v4, %v543_v2  ;;  %2234 = vmatpush3.bf16.msra.mxu1 %v2524_v8  ;;  %vm2953_vm9 = vmand %vm593_vm7, %vm579_vm4  ;;  %v2521_v30 = vld [vmem:[#allocation2 + $0x68] sm:$0xff]   ;;  %v2534_v32 = vld [vmem:[#allocation2 + $0x18] sm:$0xff]   ;;  %vm806_vm10 = vsmask.f32 7424 }
  0x5f   : > { %v2927_v11 = vld [vmem:[%s457_s11] sm:$0xf]  ;;  %v2929_v12 = vld [vmem:[%s457_s11 + $0x4] sm:$0xf]  ;;  %2235 = vmatprep.subr.bf16.mxu1 %v2529_v20  ;;  %v2522_v35 = vld [vmem:[#allocation2 + $0x70] sm:$0xff]   ;;  %s477_s20 = scalar_lea.vmem %s3075_s10, %s2913_s18 }
  0x60   : > { %2256 = vmatpush3.bf16.msra.mxu0 %v2517_v3  ;;  %vm2923_vm6 = vcmp.ne.s16.totalorder %v2035_v6, 0  ;;  %v484_v13 = vld [vmem:[%s467_s23] sm:$0xf]  ;;  %v2028_v14 = vcombine.low %v2927_v11, %v2927_v11  ;;  %v2526_v15 = vld [vmem:[%s467_s23 + $0x4] ss:$0 sps:$4 sm:$0xff]   ;;  %v2111_v16 = vcombine.low %v2927_v11, %v2929_v12  ;;  %v2029_v17 = vcombine.low %v2929_v12, %v2929_v12  ;;  %v2523_v38 = vld [vmem:[#allocation2 + $0x78] sm:$0xff]  }
  0x61   : > { %2257 = vmatprep.subr.bf16.mxu0 %v2518_v5  ;;  %vm2939_vm8 = vcmp.ne.s16.totalorder %v2036_v9, 0  ;;  %v2536_v36 = vld [vmem:[#allocation2 + $0x20] sm:$0xff]   ;;  %v2538_v40 = vld [vmem:[#allocation2 + $0x28] sm:$0xff]   ;;  %v2540_v43 = vld [vmem:[#allocation2 + $0x30] sm:$0xff]  }
  0x62   : > { %v498_v19 = vsel %vm495_vm5, %v484_v13, %v2028_v14  ;;  %v502_v21 = vsel %vm495_vm5, %v2029_v17, %v2526_v15  ;;  %2236 = vmatpush3.bf16.msra.mxu1 %v2529_v20  ;;  %v2528_v42 = vld [vmem:[#allocation2 + $0x80] sm:$0xff]   ;;  %v2531_v46 = vld [vmem:[#allocation2 + $0x88] sm:$0xff]   ;;  %v2542_v47 = vld [vmem:[#allocation2 + $0x38] sm:$0xff]   ;;  %v937_v15 = vlaneseq }
  0x63   : > { %v555_v23 = vsel %vm2923_vm6, %v498_v19, 0  ;;  %2269 = vmatprep.mubr.msk.bf16.mxu0 %vm2923_vm6, %v498_v19  ;;  %v2949_v24 = vsel %vm2939_vm8, %v502_v21, 0  ;;  %2237 = vmatprep.subr.bf16.mxu1 %v2532_v25  ;;  %v2533_v48 = vld [vmem:[#allocation2 + $0x90] sm:$0xff]   ;;  %v2544_v50 = vld [vmem:[#allocation4] sm:$0xff]   ;;  %v2535_v52 = vld [vmem:[#allocation2 + $0x98] sm:$0xff]  }
  0x64   : > { %2258 = vmatpush3.bf16.msra.mxu0 %v2518_v5  ;;  %v581_v26 = vshrl.u32 %v555_v23, 16  ;;  %v584_v27 = vshll.u32 %v555_v23, 16  ;;  %v575_v28 = vshrl.u32 %v2949_v24, 16  ;;  %v587_v39 = vshll.u32 %v2949_v24, 16  ;;  %v2545_v53 = vld [vmem:[#allocation4 + $0x8] sm:$0xff]   ;;  %v2537_v55 = vld [vmem:[#allocation2 + $0xa0] sm:$0xff]   ;;  %vm2967_vm12 = vmand %vm815_vm11, %vm806_vm10 }
  0x65   : > { %2259 = vmatprep.subr.bf16.mxu0 %v2519_v7  ;;  %v2539_v56 = vld [vmem:[#allocation2 + $0xa8] sm:$0xff]   ;;  %v2541_v57 = vld [vmem:[#allocation2 + $0xb0] sm:$0xff]   ;;  %v2543_v59 = vld [vmem:[#allocation2 + $0xb8] sm:$0xff]   ;;  %v938_v17 = vshrl.u32 %v937_v15, 7 }
  0x66   : > { %v583_v31 = vrot.slane %v581_v26, 7  ;;  %v577_v33 = vrot.slane %v575_v28, 7  ;;  %2238 = vmatpush3.bf16.msra.mxu1 %v2532_v25  ;;  %v807_v41 = vrot.slane %v584_v27, 1  ;;  %v809_v44 = vrot.slane %v587_v39, 1  ;;  %v2546_v62 = vld [vmem:[#allocation4 + $0x10] sm:$0xff]   ;;  %v2547_v63 = vld [vmem:[#allocation4 + $0x18] sm:$0xff]  }
  0x67   : > { %2239 = vmatprep.subr.bf16.mxu1 %v2534_v32  ;;  %v2548_v0 = vld [vmem:[#allocation4 + $0x20] sm:$0xff]   ;;  %v2549_v1 = vld [vmem:[#allocation4 + $0x28] sm:$0xff]   ;;  %v2550_v2 = vld [vmem:[#allocation4 + $0x30] sm:$0xff]   ;;  %v2980_v20 = vsub.s32 1, %v938_v17 }
  0x68   : > { %2260 = vmatpush3.bf16.msra.mxu0 %v2519_v7  ;;  %v586_v34 = vor.u32 %v584_v27, %v583_v31  ;;  %v808_v45 = vor.u32 %v807_v41, %v581_v26  ;;  %v589_v51 = vor.u32 %v587_v39, %v577_v33  ;;  %v811_v60 = vor.u32 %v809_v44, %v575_v28  ;;  %v2551_v3 = vld [vmem:[#allocation4 + $0x38] sm:$0xff]   ;;  %v2552_v4 = vld [vmem:[#allocation4 + $0x40] sm:$0xff]   ;;  %v2569_v6 = vld [vmem:[#allocation6 + $0x8] sm:$0xff]  }
  0x69   : > { %2261 = vmatprep.subr.bf16.mxu0 %v2520_v18  ;;  %v2568_v5 = vld [vmem:[#allocation6] sm:$0xff]   ;;  %v2570_v7 = vld [vmem:[#allocation6 + $0x10] sm:$0xff]   ;;  %v2571_v8 = vld [vmem:[#allocation6 + $0x18] sm:$0xff]  }
  0x6a   : > { %v595_v37 = vsel %vm2953_vm9, %v577_v33, %v586_v34  ;;  %2240 = vmatpush3.bf16.msra.mxu1 %v2534_v32  ;;  %v810_v49 = vsel %vm806_vm10, %v808_v45, %v809_v44  ;;  %v590_v54 = vsel %vm579_vm4, %v583_v31, %v589_v51  ;;  %v817_v61 = vsel %vm2967_vm12, %v811_v60, %v807_v41  ;;  %v936_v19 = vld [vmem:[%s3068_s3] sm:$0x3]  ;;  %v2557_v60 = vld [vmem:[#allocation4 + $0x68] sm:$0xff]   ;;  %v2582_v29 = vld [vmem:[#allocation6 + $0x70] sm:$0xff]  }
  0x6b   : > { %2249 = vmatprep.mubr.bf16.mxu1 %v595_v37  ;;  %2241 = vmatprep.subr.bf16.mxu1 %v2536_v36  ;;  %v948_v24 = vrot.slane %v936_v19, %v2980_v20  ;;  %v2586_v15 = vld [vmem:[%s3073_s8 + $0x8] sm:$0xff]  }
  0x6c   : > { %2262 = vmatpush3.bf16.msra.mxu0 %v2520_v18  ;;  %v2975_v18 = vsub.s32 0, %v938_v17  ;;  %v2588_v17 = vld [vmem:[%s3073_s8 + $0x10] sm:$0xff]   ;;  %v2581_v58 = vld [vmem:[#allocation6 + $0x68] sm:$0xff]  }
  0x6d   : > { %2263 = vmatprep.subr.bf16.mxu0 %v2521_v30 }
  0x6e   : > { %2242 = vmatpush3.bf16.msra.mxu1 %v2536_v36 }
  0x6f   : > { %2243 = vmatprep.subr.bf16.mxu1 %v2538_v40 }
  0x70   : > { %2264 = vmatpush3.bf16.msra.mxu0 %v2521_v30 }
  0x71   : > { %2265 = vmatprep.subr.bf16.mxu0 %v2522_v35 }
  0x72   : > { %2244 = vmatpush3.bf16.msra.mxu1 %v2538_v40 }
  0x73   : > { %2245 = vmatprep.subr.bf16.mxu1 %v2540_v43 }
  0x74   : > { %2266 = vmatpush3.bf16.msra.mxu0 %v2522_v35  ;;  %v2724_v35 = vmov 0.0  }
  0x75   : > { %2267 = vmatprep.subr.bf16.mxu0 %v2523_v38 }
  0x76   : > { %2246 = vmatpush3.bf16.msra.mxu1 %v2540_v43 }
  0x77   : > { %2247 = vmatprep.subr.bf16.mxu1 %v2542_v47 }
  0x78   : > { %2268 = vmatpush3.bf16.msra.mxu0 %v2523_v38 }
  0x79   : > { %2273 = vmatprep.subr.bf16.mxu0 %v2528_v42 }
  0x7a   : > { %2248 = vmatpush3.bf16.msra.mxu1 %v2542_v47 }
  0x7b   : > { %2270 = vmatmul.mubr.msk.bf16.vlgmr.msra.gmra.mrb[0].mxu0 %vm2939_vm8, %v502_v21  ;;  %2293 = vmatprep.subr.bf16.mxu1 %v2544_v50  ;;  %v940_v21 = vrot.slane %v936_v19, %v2975_v18  ;;  %v2590_v19 = vld [vmem:[%s3073_s8 + $0x18] sm:$0xff]  }
  0x7c   : > { %2274 = vmatpush3.bf16.msra.mxu0 %v2528_v42  ;;  %2289 = vmatprep.mubr.bf16.mxu0 %v810_v49 }
  0x7d   : > { %2275 = vmatprep.subr.bf16.mxu0 %v2531_v46  ;;  %2250 = vmatmul.mubr.bf16.vlgmr.msra.gmra.mrb[0].mxu1 %v590_v54  ;;  %v2553_v54 = vld [vmem:[#allocation4 + $0x48] sm:$0xff]  }
  0x7e   : > { %2294 = vmatpush3.bf16.msra.mxu1 %v2544_v50 }
  0x7f   : > { %2295 = vmatprep.subr.bf16.mxu1 %v2545_v53 }
  0x80   : > { %2276 = vmatpush3.bf16.msra.mxu0 %v2531_v46 }
  0x81   : > { %2277 = vmatprep.subr.bf16.mxu0 %v2533_v48 }
  0x82   : > { %2296 = vmatpush3.bf16.msra.mxu1 %v2545_v53 }
  0x83   : > { %2297 = vmatprep.subr.bf16.mxu1 %v2546_v62 }
  0x84   : > { %2278 = vmatpush3.bf16.msra.mxu0 %v2533_v48 }
  0x85   : > { %2279 = vmatprep.subr.bf16.mxu0 %v2535_v52 }
  0x86   : > { %2298 = vmatpush3.bf16.msra.mxu1 %v2546_v62  ;;  %v2559_v62 = vld [vmem:[#allocation4 + $0x78] sm:$0xff]  }
  0x87   : > { %2299 = vmatprep.subr.bf16.mxu1 %v2547_v63 }
  0x88   : > { %2280 = vmatpush3.bf16.msra.mxu0 %v2535_v52 }
  0x89   : > { %2281 = vmatprep.subr.bf16.mxu0 %v2537_v55 }
  0x8a   : > { %2300 = vmatpush3.bf16.msra.mxu1 %v2547_v63  ;;  %v2560_v63 = vld [vmem:[#allocation4 + $0x80] sm:$0xff]  }
  0x8b   : > { %2301 = vmatprep.subr.bf16.mxu1 %v2548_v0 }
  0x8c   : > { %2282 = vmatpush3.bf16.msra.mxu0 %v2537_v55 }
  0x8d   : > { %2283 = vmatprep.subr.bf16.mxu0 %v2539_v56 }
  0x8e   : > { %2302 = vmatpush3.bf16.msra.mxu1 %v2548_v0  ;;  %v2561_v0 = vld [vmem:[#allocation4 + $0x88] sm:$0xff]  }
  0x8f   : > { %2303 = vmatprep.subr.bf16.mxu1 %v2549_v1 }
  0x90   : > { %2284 = vmatpush3.bf16.msra.mxu0 %v2539_v56  ;;  %v2554_v56 = vld [vmem:[#allocation4 + $0x50] sm:$0xff]  }
  0x91   : > { %2285 = vmatprep.subr.bf16.mxu0 %v2541_v57 }
  0x92   : > { %2304 = vmatpush3.bf16.msra.mxu1 %v2549_v1  ;;  %v2562_v1 = vld [vmem:[#allocation4 + $0x90] sm:$0xff]  }
  0x93   : > { %2305 = vmatprep.subr.bf16.mxu1 %v2550_v2 }
  0x94   : > { %2286 = vmatpush3.bf16.msra.mxu0 %v2541_v57  ;;  %v2555_v57 = vld [vmem:[#allocation4 + $0x58] sm:$0xff]  }
  0x95   : > { %2287 = vmatprep.subr.bf16.mxu0 %v2543_v59 }
  0x96   : > { %2306 = vmatpush3.bf16.msra.mxu1 %v2550_v2  ;;  %v2563_v2 = vld [vmem:[#allocation4 + $0x98] sm:$0xff]  }
  0x97   : > { %2307 = vmatprep.subr.bf16.mxu1 %v2551_v3 }
  0x98   : > { %2288 = vmatpush3.bf16.msra.mxu0 %v2543_v59  ;;  %v2556_v59 = vld [vmem:[#allocation4 + $0x60] sm:$0xff]  }
  0x99   : > { %2353 = vmatprep.subr.bf16.mxu0 %v2568_v5 }
  0x9a   : > { %2308 = vmatpush3.bf16.msra.mxu1 %v2551_v3  ;;  %v2564_v3 = vld [vmem:[#allocation4 + $0xa0] sm:$0xff]  }
  0x9b   : > { %2290 = vmatmul.mubr.bf16.vlgmr.msra.gmra.mrb[0].mxu0 %v817_v61  ;;  %2313 = vmatprep.subr.bf16.mxu1 %v2552_v4  ;;  %v2558_v61 = vld [vmem:[#allocation4 + $0x70] sm:$0xff]  }
  0x9c   : > { %2354 = vmatpush3.bf16.msra.mxu0 %v2568_v5  ;;  %v2566_v5 = vld [vmem:[#allocation4 + $0xb0] sm:$0xff]  }
  0x9d   : > { %2355 = vmatprep.subr.bf16.mxu0 %v2569_v6 }
  0xa0   : > { %2356 = vmatpush3.bf16.msra.mxu0 %v2569_v6  ;;  %v2567_v6 = vld [vmem:[#allocation4 + $0xb8] sm:$0xff]  }
  0xa1   : > { %2357 = vmatprep.subr.bf16.mxu0 %v2570_v7 }
  0xa4   : > { %2358 = vmatpush3.bf16.msra.mxu0 %v2570_v7  ;;  %v2572_v7 = vld [vmem:[#allocation6 + $0x20] sm:$0xff]  }
  0xa5   : > { %2359 = vmatprep.subr.bf16.mxu0 %v2571_v8 }
  0xa8   : > { %2360 = vmatpush3.bf16.msra.mxu0 %v2571_v8  ;;  %v2573_v8 = vld [vmem:[#allocation6 + $0x28] sm:$0xff]  }
  0xa9   : > { %2361 = vmatprep.subr.bf16.mxu0 %v2572_v7 }
  0xac   : > { %2362 = vmatpush3.bf16.msra.mxu0 %v2572_v7 }
  0xad   : > { %2363 = vmatprep.subr.bf16.mxu0 %v2573_v8 }
  0xb0   : > { %2364 = vmatpush3.bf16.msra.mxu0 %v2573_v8  ;;  %v1848_v8 = vld [vmem:[%s3074_s9] sm:$0x3] }
 0x150   : > { %v2251_v9 = vpop.f32.mrb[0].mxu1 }
 0x151   : > { %v694_v10 = vpop.f32.mrb[1].mxu1 }
 0x152   : > { %v2252_v13 = vpop.f32.mrb[2].mxu1  ;;  %v2575_v10 = vld [vmem:[#allocation6 + $0x38] sm:$0xff]  }
 0x153   : > { %v697_v14 = vpop.f32.mrb[3].mxu1  ;;  %v2576_v13 = vld [vmem:[#allocation6 + $0x40] sm:$0xff]  }
 0x16e   : > { %v2291_v22 = vpop.f32.mrb[0].mxu0 }
 0x16f   : > { %v2433_v23 = vadd.f32 %v2291_v22, %v2251_v9  ;;  %v917_v25 = vpop.f32.mrb[1].mxu0  ;;  %v2574_v9 = vld [vmem:[#allocation6 + $0x30] sm:$0xff]   ;;  %v2594_v22 = vld [vmem:[%s3073_s8 + $0x28] sm:$0xff]  }
 0x170   : > { %v2292_v26 = vpop.f32.mrb[2].mxu0  ;;  %2365 = vmatprep.subr.bf16.mxu0 %v2574_v9  ;;  %v1336_v25 = vld [vmem:[%s3070_s5] sm:$0x3] }
 0x171   : > { %v943_v27 = vmul.f32 %v2433_v23, %v940_v21  ;;  %v920_v28 = vpop.f32.mrb[3].mxu0  ;;  %2366 = vmatpush3.bf16.msra.mxu0 %v2574_v9  ;;  %v2596_v23 = vld [vmem:[%s3073_s8 + $0x30] sm:$0xff]   ;;  %v1340_v26 = vrot.slane %v1336_v25, %v2975_v18  ;;  %v1852_v9 = vrot.slane %v1848_v8, %v2975_v18 }
 0x172   : > { %v2434_v30 = vadd.f32 %v920_v28, %v697_v14  ;;  %2367 = vmatprep.subr.bf16.mxu0 %v2575_v10  ;;  %v2584_v14 = vld [vmem:[%s3073_s8] sm:$0xff]  }
 0x173   : > { %v951_v31 = vadd.f32 %v948_v24, %v943_v27  ;;  %v1348_v27 = vrot.slane %v1336_v25, %v2980_v20 }
 0x174   : > { %v942_v32 = vmul.f32 %v2434_v30, %v940_v21  ;;  %v2592_v21 = vld [vmem:[%s3073_s8 + $0x20] sm:$0xff]  }
 0x175   : > { %v955_v33 = vmax.f32 %v951_v31, 0.0  ;;  %2368 = vmatpush3.bf16.msra.mxu0 %v2575_v10  ;;  %v1728_v10 = vld [vmem:[%s3072_s7] sm:$0x3] }
 0x176   : > { %v950_v34 = vadd.f32 %v948_v24, %v942_v32  ;;  %2373 = vmatprep.subr.bf16.mxu0 %v2576_v13  ;;  %v2598_v24 = vld [vmem:[%s3073_s8 + $0x38] sm:$0xff]  }
 0x177   : > { %v962_v36 = vpack.c.bf16 %v2724_v35, %v955_v33 }
 0x178   : > { %v954_v37 = vmax.f32 %v950_v34, 0.0 }
 0x179   : > { %v981_v38 = vshrl.u32 %v962_v36, 16  ;;  %v992_v39 = vshll.u32 %v962_v36, 16 }
 0x17a   : > { %v961_v40 = vpack.c.bf16 %v954_v37, %v2724_v35 }
 0x17b   : > { %v983_v41 = vrot.slane %v981_v38, 7  ;;  %v1211_v42 = vrot.slane %v992_v39, 1 }
 0x17c   : > { %v986_v43 = vshrl.u32 %v961_v40, 16  ;;  %v989_v44 = vshll.u32 %v961_v40, 16 }
 0x17d   : > { %v994_v45 = vor.u32 %v992_v39, %v983_v41  ;;  %v1213_v46 = vor.u32 %v1211_v42, %v981_v38 }
 0x17e   : > { %v988_v47 = vrot.slane %v986_v43, 7  ;;  %v1209_v48 = vrot.slane %v989_v44, 1 }
 0x180   : > { %v991_v49 = vor.u32 %v989_v44, %v988_v47  ;;  %v995_v50 = vsel %vm579_vm4, %v988_v47, %v994_v45  ;;  %v1210_v51 = vor.u32 %v1209_v48, %v986_v43  ;;  %v1217_v52 = vsel %vm2967_vm12, %v1213_v46, %v1209_v48 }
 0x182   : > { %v998_v53 = vsel %vm2953_vm9, %v983_v41, %v991_v49  ;;  %v1212_v55 = vsel %vm806_vm10, %v1210_v51, %v1211_v42 }
 0x183   : > { %2309 = vmatprep.mubr.bf16.mxu1 %v998_v53 }
 0x184   : > { %2310 = vmatmul.mubr.bf16.vlgmr.msra.gmra.mrb[4].mxu1 %v995_v50 }
 0x185   : > { %2314 = vmatpush3.bf16.msra.mxu1 %v2552_v4  ;;  %2329 = vmatprep.mubr.bf16.mxu1 %v961_v40  ;;  %v2565_v4 = vld [vmem:[#allocation4 + $0xa8] sm:$0xff]  }
 0x186   : > { %2315 = vmatprep.subr.bf16.mxu1 %v2553_v54 }
 0x189   : > { %2316 = vmatpush3.bf16.msra.mxu1 %v2553_v54  ;;  %v2577_v54 = vld [vmem:[#allocation6 + $0x48] sm:$0xff]  }
 0x18a   : > { %2317 = vmatprep.subr.bf16.mxu1 %v2554_v56 }
 0x18d   : > { %2318 = vmatpush3.bf16.msra.mxu1 %v2554_v56  ;;  %v2579_v56 = vld [vmem:[#allocation6 + $0x58] sm:$0xff]  }
 0x18e   : > { %2319 = vmatprep.subr.bf16.mxu1 %v2555_v57 }
 0x191   : > { %2320 = vmatpush3.bf16.msra.mxu1 %v2555_v57  ;;  %v2580_v57 = vld [vmem:[#allocation6 + $0x60] sm:$0xff]  }
 0x192   : > { %2321 = vmatprep.subr.bf16.mxu1 %v2556_v59 }
 0x195   : > { %2322 = vmatpush3.bf16.msra.mxu1 %v2556_v59  ;;  %v2583_v59 = vld [vmem:[#allocation6 + $0x78] sm:$0xff]  }
 0x196   : > { %2323 = vmatprep.subr.bf16.mxu1 %v2557_v60 }
 0x199   : > { %2324 = vmatpush3.bf16.msra.mxu1 %v2557_v60  ;;  %v2585_v60 = vld [vmem:[#allocation6 + $0x80] sm:$0xff]  }
 0x19a   : > { %2325 = vmatprep.subr.bf16.mxu1 %v2558_v61 }
 0x19d   : > { %2326 = vmatpush3.bf16.msra.mxu1 %v2558_v61  ;;  %v2587_v61 = vld [vmem:[#allocation6 + $0x88] sm:$0xff]  }
 0x19e   : > { %2327 = vmatprep.subr.bf16.mxu1 %v2559_v62 }
 0x1a1   : > { %2328 = vmatpush3.bf16.msra.mxu1 %v2559_v62  ;;  %v2589_v62 = vld [vmem:[#allocation6 + $0x90] sm:$0xff]  }
 0x1a2   : > { %2333 = vmatprep.subr.bf16.mxu1 %v2560_v63 }
 0x1a4   : > { %2330 = vmatmul.mubr.bf16.vlgmr.msra.gmra.mrb[4].mxu1 %v962_v36 }
 0x1a5   : > { %2334 = vmatpush3.bf16.msra.mxu1 %v2560_v63  ;;  %2349 = vmatprep.mubr.bf16.mxu1 %v1212_v55  ;;  %v2578_v55 = vld [vmem:[#allocation6 + $0x50] sm:$0xff]   ;;  %v2591_v63 = vld [vmem:[#allocation6 + $0x98] sm:$0xff]  }
 0x1a6   : > { %2335 = vmatprep.subr.bf16.mxu1 %v2561_v0 }
 0x1a9   : > { %2336 = vmatpush3.bf16.msra.mxu1 %v2561_v0  ;;  %v2593_v0 = vld [vmem:[#allocation6 + $0xa0] sm:$0xff]  }
 0x1aa   : > { %2337 = vmatprep.subr.bf16.mxu1 %v2562_v1 }
 0x1ad   : > { %2338 = vmatpush3.bf16.msra.mxu1 %v2562_v1  ;;  %v2595_v1 = vld [vmem:[#allocation6 + $0xa8] sm:$0xff]  }
 0x1ae   : > { %2339 = vmatprep.subr.bf16.mxu1 %v2563_v2 }
 0x1b1   : > { %2340 = vmatpush3.bf16.msra.mxu1 %v2563_v2  ;;  %v2597_v2 = vld [vmem:[#allocation6 + $0xb0] sm:$0xff]  }
 0x1b2   : > { %2341 = vmatprep.subr.bf16.mxu1 %v2564_v3 }
 0x1b5   : > { %2342 = vmatpush3.bf16.msra.mxu1 %v2564_v3  ;;  %v2599_v3 = vld [vmem:[#allocation6 + $0xb8] sm:$0xff]  }
 0x1b6   : > { %2343 = vmatprep.subr.bf16.mxu1 %v2565_v4 }
 0x1b9   : > { %2344 = vmatpush3.bf16.msra.mxu1 %v2565_v4 }
 0x1ba   : > { %2345 = vmatprep.subr.bf16.mxu1 %v2566_v5 }
 0x1bd   : > { %2346 = vmatpush3.bf16.msra.mxu1 %v2566_v5 }
 0x1be   : > { %2347 = vmatprep.subr.bf16.mxu1 %v2567_v6 }
 0x1c1   : > { %2348 = vmatpush3.bf16.msra.mxu1 %v2567_v6 }
 0x1c2   : > { %2413 = vmatprep.subr.bf16.mxu1 %v2724_v35 }
 0x1c4   : > { %2350 = vmatmul.mubr.bf16.vlgmr.msra.gmra.mrb[4].mxu1 %v1217_v52 }
 0x1c5   : > { %2429 = vmatprep.mubr.msk.bf16.mxu1 %vm2721_vm0, %v2724_v35  ;;  %2414 = vmatpush3.bf16.msra.mxu1 %v2584_v14  ;;  %v1732_v14 = vrot.slane %v1728_v10, %v2975_v18 }
 0x1c6   : > { %2415 = vmatprep.subr.bf16.mxu1 %v2724_v35 }
 0x1c9   : > { %2416 = vmatpush3.bf16.msra.mxu1 %v2586_v15 }
 0x1ca   : > { %2417 = vmatprep.subr.bf16.mxu1 %v2724_v35 }
 0x1cd   : > { %2418 = vmatpush3.bf16.msra.mxu1 %v2588_v17  ;;  %v1738_v17 = vrot.slane %v1728_v10, %v2980_v20 }
 0x1ce   : > { %2419 = vmatprep.subr.bf16.mxu1 %v2724_v35 }
 0x1d1   : > { %2420 = vmatpush3.bf16.msra.mxu1 %v2590_v19 }
 0x1d2   : > { %2421 = vmatprep.subr.bf16.mxu1 %v2724_v35 }
 0x1d5   : > { %2422 = vmatpush3.bf16.msra.mxu1 %v2592_v21 }
 0x1d6   : > { %2423 = vmatprep.subr.bf16.mxu1 %v2724_v35 }
 0x1d9   : > { %2424 = vmatpush3.bf16.msra.mxu1 %v2594_v22 }
 0x1da   : > { %2425 = vmatprep.subr.bf16.mxu1 %v2724_v35 }
 0x1dd   : > { %2426 = vmatpush3.bf16.msra.mxu1 %v2596_v23 }
 0x1de   : > { %2427 = vmatprep.subr.bf16.mxu1 %v2724_v35 }
 0x1e1   : > { %2428 = vmatpush3.bf16.msra.mxu1 %v2598_v24 }
 0x1e4   : > { %2430 = vmatmul.mubr.bf16.vlgmr.msra.gmra.mrb[8].mxu1 %v2111_v16 }
 0x297   : > { %v2351_v28 = vpop.f32.mrb[4].mxu1 }
 0x298   : > { %v1343_v30 = vmul.f32 %v2351_v28, %v1340_v26  ;;  %v1317_v31 = vpop.f32.mrb[5].mxu1 }
 0x299   : > { %v2352_v32 = vpop.f32.mrb[6].mxu1 }
 0x29a   : > { %v1351_v33 = vadd.f32 %v1348_v27, %v1343_v30  ;;  %v1320_v34 = vpop.f32.mrb[7].mxu1 }
 0x29b   : > { %v1342_v36 = vmul.f32 %v1340_v26, %v1320_v34 }
 0x29c   : > { %v1355_v37 = vmax.f32 %v1351_v33, 0.0 }
 0x29d   : > { %v1350_v38 = vadd.f32 %v1348_v27, %v1342_v36 }
 0x29e   : > { %v1362_v11 = vpack.c.bf16 %v2724_v35, %v1355_v37 }
 0x29f   : > { %v1354_v12 = vmax.f32 %v1350_v38, 0.0 }
 0x2a0   : > { %v1392_v16 = vshll.u32 %v1362_v11, 16  ;;  %v1381_v39 = vshrl.u32 %v1362_v11, 16 }
 0x2a1   : > { %v1361_v40 = vpack.c.bf16 %v1354_v12, %v2724_v35 }
 0x2a2   : > { %v1383_v41 = vrot.slane %v1381_v39, 7  ;;  %v1607_v42 = vrot.slane %v1392_v16, 1 }
 0x2a3   : > { %v1386_v43 = vshrl.u32 %v1361_v40, 16  ;;  %v1389_v44 = vshll.u32 %v1361_v40, 16 }
 0x2a4   : > { %v1394_v45 = vor.u32 %v1392_v16, %v1383_v41  ;;  %v1609_v46 = vor.u32 %v1607_v42, %v1381_v39 }
 0x2a5   : > { %v1388_v47 = vrot.slane %v1386_v43, 7  ;;  %v1605_v48 = vrot.slane %v1389_v44, 1 }
 0x2a7   : > { %v1391_v49 = vor.u32 %v1389_v44, %v1388_v47  ;;  %v1395_v50 = vsel %vm579_vm4, %v1388_v47, %v1394_v45  ;;  %v1606_v51 = vor.u32 %v1605_v48, %v1386_v43  ;;  %v1613_v52 = vsel %vm2967_vm12, %v1609_v46, %v1605_v48 }
 0x2a9   : > { %v1398_v53 = vsel %vm2953_vm9, %v1383_v41, %v1391_v49  ;;  %v1608_v35 = vsel %vm806_vm10, %v1606_v51, %v1607_v42 }
 0x2aa   : > { %2369 = vmatprep.mubr.bf16.mxu0 %v1398_v53 }
 0x2ab   : > { %2370 = vmatmul.mubr.bf16.vlgmr.msra.gmra.mrb[4].mxu0 %v1395_v50 }
 0x2ac   : > { %2374 = vmatpush3.bf16.msra.mxu0 %v2576_v13  ;;  %2389 = vmatprep.mubr.bf16.mxu0 %v1361_v40  ;;  %v1858_v13 = vrot.slane %v1848_v8, %v2980_v20 }
 0x2ad   : > { %2375 = vmatprep.subr.bf16.mxu0 %v2577_v54 }
 0x2b0   : > { %2376 = vmatpush3.bf16.msra.mxu0 %v2577_v54 }
 0x2b1   : > { %2377 = vmatprep.subr.bf16.mxu0 %v2578_v55 }
 0x2b4   : > { %2378 = vmatpush3.bf16.msra.mxu0 %v2578_v55 }
 0x2b5   : > { %2379 = vmatprep.subr.bf16.mxu0 %v2579_v56 }
 0x2b7   : > { %v1841_v4 = vpop.f32.mrb[8].mxu1 }
 0x2b8   : > { %2380 = vmatpush3.bf16.msra.mxu0 %v2579_v56  ;;  %v2431_v5 = vpop.f32.mrb[9].mxu1  ;;  %v1853_v24 = vmul.f32 %v1852_v9, %v1841_v4 }
 0x2b9   : > { %2381 = vmatprep.subr.bf16.mxu0 %v2580_v57  ;;  %v1844_v6 = vpop.f32.mrb[10].mxu1 }
 0x2ba   : > { %v2432_v7 = vpop.f32.mrb[11].mxu1  ;;  %v1854_v15 = vmul.f32 %v1852_v9, %v1844_v6  ;;  %v1859_v31 = vadd.f32 %v1858_v13, %v1853_v24 }
 0x2bc   : > { %2382 = vmatpush3.bf16.msra.mxu0 %v2580_v57  ;;  %v1860_v22 = vadd.f32 %v1858_v13, %v1854_v15 }
 0x2bd   : > { %2383 = vmatprep.subr.bf16.mxu0 %v2581_v58 }
 0x2c0   : > { %2384 = vmatpush3.bf16.msra.mxu0 %v2581_v58 }
 0x2c1   : > { %2385 = vmatprep.subr.bf16.mxu0 %v2582_v29 }
 0x2c4   : > { %2386 = vmatpush3.bf16.msra.mxu0 %v2582_v29 }
 0x2c5   : > { %2387 = vmatprep.subr.bf16.mxu0 %v2583_v59 }
 0x2c8   : > { %2388 = vmatpush3.bf16.msra.mxu0 %v2583_v59 }
 0x2c9   : > { %2393 = vmatprep.subr.bf16.mxu0 %v2585_v60 }
 0x2cb   : > { %2390 = vmatmul.mubr.bf16.vlgmr.msra.gmra.mrb[4].mxu0 %v1362_v11 }
 0x2cc   : > { %2394 = vmatpush3.bf16.msra.mxu0 %v2585_v60  ;;  %2409 = vmatprep.mubr.bf16.mxu0 %v1608_v35 }
 0x2cd   : > { %2395 = vmatprep.subr.bf16.mxu0 %v2587_v61 }
 0x2d0   : > { %2396 = vmatpush3.bf16.msra.mxu0 %v2587_v61 }
 0x2d1   : > { %2397 = vmatprep.subr.bf16.mxu0 %v2589_v62 }
 0x2d4   : > { %2398 = vmatpush3.bf16.msra.mxu0 %v2589_v62 }
 0x2d5   : > { %2399 = vmatprep.subr.bf16.mxu0 %v2591_v63 }
 0x2d8   : > { %2400 = vmatpush3.bf16.msra.mxu0 %v2591_v63 }
 0x2d9   : > { %2401 = vmatprep.subr.bf16.mxu0 %v2593_v0 }
 0x2dc   : > { %2402 = vmatpush3.bf16.msra.mxu0 %v2593_v0 }
 0x2dd   : > { %2403 = vmatprep.subr.bf16.mxu0 %v2595_v1 }
 0x2e0   : > { %2404 = vmatpush3.bf16.msra.mxu0 %v2595_v1 }
 0x2e1   : > { %2405 = vmatprep.subr.bf16.mxu0 %v2597_v2 }
 0x2e4   : > { %2406 = vmatpush3.bf16.msra.mxu0 %v2597_v2 }
 0x2e5   : > { %2407 = vmatprep.subr.bf16.mxu0 %v2599_v3 }
 0x2e8   : > { %2408 = vmatpush3.bf16.msra.mxu0 %v2599_v3 }
 0x2eb   : > { %2410 = vmatmul.mubr.bf16.vlgmr.msra.gmra.mrb[4].mxu0 %v1613_v52 }
 0x3be   : > { %v2411_v19 = vpop.f32.mrb[4].mxu0 }
 0x3bf   : > { %v1734_v21 = vmul.f32 %v2411_v19, %v1732_v14  ;;  %v1713_v23 = vpop.f32.mrb[5].mxu0 }
 0x3c0   : > { %v2412_v25 = vpop.f32.mrb[6].mxu0 }
 0x3c1   : > { %v1740_v26 = vadd.f32 %v1738_v17, %v1734_v21  ;;  %v1715_v27 = vpop.f32.mrb[7].mxu0 }
 0x3c2   : > { %v1733_v28 = vmul.f32 %v1732_v14, %v1715_v27 }
 0x3c3   : > { %v1862_v30 = vadd.f32 %v1860_v22, %v1740_v26 }
 0x3c4   : > { %v1739_v32 = vadd.f32 %v1738_v17, %v1733_v28 }
 0x3c5   : > { %v1864_v34 = vmax.f32 %v1862_v30, 0.0 }
 0x3c6   : > { %v1861_v33 = vadd.f32 %v1859_v31, %v1739_v32 }
 0x3c8   : > { %v1863_v36 = vmax.f32 %v1861_v33, 0.0 }
 0x3ca   : > { %v2132_v18 = vpack.c.bf16 %v1864_v34, %v1863_v36 }
 0x3cc   : > { %2133 = vst [vmem:[%s477_s20] sm:$0xff] %v2132_v18  }
 0x3cd PF: > { %s3098_s25 = sld [smem:[#allocation10_spill]]  ;;  %s3099_s13 = sld [smem:[#allocation9_spill]] }
 0x3ce   : > { %s3100_s14 = smov %s3102_s22 }
 0x3d3   : > { %s22_s15 = sadd.s32 1, %s3098_s25  }
 0x3d4   : > { %p19_p5 = scmp.ge.s32.totalorder %s22_s15, 4  }
 0x3d6   :  { %21 = sbr.rel (!%p19_p5) target bundleno = 3 (0x3), region = 112 }
 0x3dd   :  { %1905 = vsyncpa [#allocation3], 1 }
 0x3de   :  { %1907 = vsyncpa [#allocation3 + $0x1], 1 }
 0x3df   :  { %1908 = vsyncpa [#allocation5], 1 }

</bundles_post_ra>
